<compile_context>
chip_gen: v6e
topology: v6e:2x2x1
jax: 0.10.0
libtpu: 0.0.40
codegen_flags: <defaults>
</compile_context>

<pallas_src>
import jax
import jax.numpy as jnp
from jax.experimental import pallas as pl
from jax.experimental.pallas import tpu as pltpu

H = 128  # hidden size fixed by the module: nn.LSTM(E, 128, bidirectional=True)


def _pick_time_chunk(T, B, E, max_chunk=256, step_budget_bytes=12 << 20):
    """Derive (TC, NC) from a VMEM budget; TC is a multiple of 8, NC*TC >= T."""
    # per-time-step VMEM cost inside the kernel:
    #   gx scratch (2 dirs, f32, 4H) + x blocks (2 specs x double buffer, bf16, E)
    per_step = B * (2 * 4 * H * 4 + 2 * 2 * E * 2)
    tc_cap = max(8, min(max_chunk, step_budget_bytes // per_step))
    nc = -(-T // tc_cap)
    tc = -(-T // nc)
    tc = ((tc + 7) // 8) * 8          # multiple of 8: clean unroll + aligned rows
    nc = -(-T // tc)
    return tc, nc


def _vmem_limit_bytes(TC, B, E):
    gx = 2 * TC * B * 4 * H * 4                     # gate pre-activation scratch
    xb = 2 * 2 * TC * B * E * 2                     # 2 specs x double-buffered bf16 x
    wts = 2 * (2 * E * 4 * H * 2 + 2 * H * 4 * H * 4 + 2 * 4 * H * 4 + 2 * 2 * H * 4)
    st = 8 * B * H * 4 + 2 * 2 * B * 4              # state scratch + output
    est = gx + xb + wts + st
    return int(min(56 << 20, max(16 << 20, 2 * est)))


def _make_bilstm_kernel(T, TC, NC, B, E):
    """Fused bi-LSTM (both directions interleaved) + avg/max pool + Linear partials."""
    inv_T = 1.0 / float(T)
    padded = (NC * TC != T)
    unroll = 8 if TC % 8 == 0 else 1

    def kernel(xf_ref, xb_ref, wih_ref, whh_ref, b_ref, wdir_ref, out_ref,
               hf_sc, cf_sc, sf_sc, mf_sc, hb_sc, cb_sc, sb_sc, mb_sc,
               gxf_sc, gxb_sc):
        tc = pl.program_id(0)    # time-chunk counter (chunk order via index_map)

        @pl.when(tc == 0)
        def _():
            for r in (hf_sc, cf_sc, sf_sc, hb_sc, cb_sc, sb_sc):
                r[...] = jnp.zeros_like(r)
            mf_sc[...] = jnp.full_like(mf_sc, -jnp.inf)
            mb_sc[...] = jnp.full_like(mb_sc, -jnp.inf)

        # Hoisted (time-independent) input projection for the whole chunk,
        # both directions: two (TC*B, E) @ (E, 4H) bf16 matmuls, f32 accumulate.
        gxf_sc[...] = (jnp.dot(xf_ref[...], wih_ref[0],
                               preferred_element_type=jnp.float32) + b_ref[0])
        gxb_sc[...] = (jnp.dot(xb_ref[...], wih_ref[1],
                               preferred_element_type=jnp.float32) + b_ref[1])

        def gate_update(gates, c_prev):
            i_g = jax.nn.sigmoid(gates[:, 0 * H:1 * H])
            f_g = jax.nn.sigmoid(gates[:, 1 * H:2 * H])
            g_g = jnp.tanh(gates[:, 2 * H:3 * H])
            o_g = jax.nn.sigmoid(gates[:, 3 * H:4 * H])
            c_new = f_g * c_prev + i_g * g_g
            h_new = o_g * jnp.tanh(c_new)
            return h_new, c_new

        def step(s, carry):
            h_f, c_f, s_f, m_f, h_b, c_b, s_b, m_b = carry
            sb = TC - 1 - s                                   # backward local index
            row_f = pl.multiple_of(s * B, B)
            row_b = pl.multiple_of(sb * B, B)
            # whh is fed to the MXU straight from VMEM each step (not hoisted
            # as a 64-vreg live value) to avoid spills on the serial chain.
            gates_f = (gxf_sc[pl.ds(row_f, B), :]
                       + jnp.dot(h_f, whh_ref[0],
                                 preferred_element_type=jnp.float32))
            gates_b = (gxb_sc[pl.ds(row_b, B), :]
                       + jnp.dot(h_b, whh_ref[1],
                                 preferred_element_type=jnp.float32))
            hf_new, cf_new = gate_update(gates_f, c_f)
            hb_new, cb_new = gate_update(gates_b, c_b)

            if padded:
                # Global time indices; padded steps (>= T) neither update the
                # state nor contribute to the pooled sum / max.
                valid_f = (tc * TC + s) < T
                valid_b = ((NC - 1 - tc) * TC + sb) < T
                hf_new = jnp.where(valid_f, hf_new, h_f)
                cf_new = jnp.where(valid_f, cf_new, c_f)
                hb_new = jnp.where(valid_b, hb_new, h_b)
                cb_new = jnp.where(valid_b, cb_new, c_b)
                s_f = s_f + jnp.where(valid_f, hf_new, 0.0)
                m_f = jnp.maximum(m_f, jnp.where(valid_f, hf_new, -jnp.inf))
                s_b = s_b + jnp.where(valid_b, hb_new, 0.0)
                m_b = jnp.maximum(m_b, jnp.where(valid_b, hb_new, -jnp.inf))
            else:
                s_f = s_f + hf_new
                m_f = jnp.maximum(m_f, hf_new)
                s_b = s_b + hb_new
                m_b = jnp.maximum(m_b, hb_new)
            return (hf_new, cf_new, s_f, m_f, hb_new, cb_new, s_b, m_b)

        carry0 = (hf_sc[...], cf_sc[...], sf_sc[...], mf_sc[...],
                  hb_sc[...], cb_sc[...], sb_sc[...], mb_sc[...])
        (h_f, c_f, s_f, m_f,
         h_b, c_b, s_b, m_b) = jax.lax.fori_loop(0, TC, step, carry0,
                                                 unroll=unroll)
        hf_sc[...] = h_f
        cf_sc[...] = c_f
        sf_sc[...] = s_f
        mf_sc[...] = m_f
        hb_sc[...] = h_b
        cb_sc[...] = c_b
        sb_sc[...] = s_b
        mb_sc[...] = m_b

        # Fused avg/max pooling + per-direction halves of Linear(4H, 1).
        @pl.when(tc == NC - 1)
        def _():
            wd = wdir_ref[...]                                # (2, 2, H)
            feat_f = (s_f * inv_T) * wd[0, 0:1, :] + m_f * wd[0, 1:2, :]
            feat_b = (s_b * inv_T) * wd[1, 0:1, :] + m_b * wd[1, 1:2, :]
            out_ref[...] = jnp.stack(
                [jnp.sum(feat_f, axis=1, keepdims=True),
                 jnp.sum(feat_b, axis=1, keepdims=True)], axis=0)

    return kernel


def bilstm_pool_linear(x_chunks, w_ih_s, w_hh_s, b_s, w_dir, T, TC, NC, B, E):
    """x_chunks: (NC, TC*B, E) bf16; stacked dir weights; returns (2, B, 1) partials."""
    kernel = _make_bilstm_kernel(T, TC, NC, B, E)
    return pl.pallas_call(
        kernel,
        out_shape=jax.ShapeDtypeStruct((2, B, 1), jnp.float32),
        grid=(NC,),
        in_specs=[
            # forward consumes chunks 0..NC-1 in order, backward in reverse;
            # doing the reversal in the index_map avoids any x[::-1] HBM copy.
            pl.BlockSpec((None, TC * B, E), lambda c: (c, 0, 0)),
            pl.BlockSpec((None, TC * B, E), lambda c: (NC - 1 - c, 0, 0)),
            pl.BlockSpec((2, E, 4 * H), lambda c: (0, 0, 0)),
            pl.BlockSpec((2, H, 4 * H), lambda c: (0, 0, 0)),
            pl.BlockSpec((2, 1, 4 * H), lambda c: (0, 0, 0)),
            pl.BlockSpec((2, 2, H), lambda c: (0, 0, 0)),
        ],
        out_specs=pl.BlockSpec((2, B, 1), lambda c: (0, 0, 0)),
        scratch_shapes=(
            [pltpu.VMEM((B, H), jnp.float32) for _ in range(8)]   # h/c/sum/max x 2 dirs
            + [pltpu.VMEM((TC * B, 4 * H), jnp.float32)           # chunk gate pre-acts
               for _ in range(2)]),
        compiler_params=pltpu.CompilerParams(
            dimension_semantics=("arbitrary",),
            vmem_limit_bytes=_vmem_limit_bytes(TC, B, E)),
    )(x_chunks, x_chunks, w_ih_s, w_hh_s, b_s, w_dir)


def lstm_model_forward(ids, emb, params, *, max_time_chunk=256):
    (w_ih_f, w_hh_f, b_f, w_ih_b, w_hh_b, b_b, w_out, b_out) = params
    B, T = ids.shape
    E = emb.shape[1]

    # Pad the batch to a multiple of the f32 sublane count (8); padded rows are
    # computed but discarded at the end.
    B_pad = max(8, ((B + 7) // 8) * 8)
    if B_pad != B:
        ids = jnp.pad(ids, ((0, B_pad - B), (0, 0)))

    TC, NC = _pick_time_chunk(T, B_pad, E, max_chunk=max_time_chunk)
    T_pad = TC * NC

    # Embedding gather directly in time-major order and in bf16 (halves the
    # (T,B,E) HBM intermediate and the kernel's x DMA); the reshape into
    # (NC, TC*B_pad, E) time chunks is contiguous / free.
    x_tm = jnp.take(emb.astype(jnp.bfloat16), ids.T, axis=0)   # (T, B_pad, E)
    if T_pad != T:
        x_tm = jnp.pad(x_tm, ((0, T_pad - T), (0, 0), (0, 0)))
    x_chunks = x_tm.reshape(NC, TC * B_pad, E)

    # Stack both directions so one pallas_call handles the whole bi-LSTM.
    w_ih_s = jnp.stack([w_ih_f.T, w_ih_b.T]).astype(jnp.bfloat16)  # (2, E, 4H)
    w_hh_s = jnp.stack([w_hh_f.T, w_hh_b.T])                        # (2, H, 4H) f32
    b_s = jnp.stack([b_f, b_b])[:, None, :]                         # (2, 1, 4H)
    # Linear(4H, 1) weight reordered per direction: [dir, (avg, max), H].
    w_dir = w_out.reshape(2, 2, H).transpose(1, 0, 2)               # (2, 2, H)

    partials = bilstm_pool_linear(x_chunks, w_ih_s, w_hh_s, b_s, w_dir,
                                  T, TC, NC, B_pad, E)              # (2, B_pad, 1)
    out = partials[0] + partials[1] + b_out[None, :]                # (B_pad, 1)
    return out[:B]


# ----------------------------- pure-JAX reference ---------------------------

def _lstm_ref_direction(x_tm, w_ih, w_hh, b):
    Bx = x_tm.shape[1]
    hp = jax.lax.Precision.HIGHEST

    def step(carry, x_t):
        h, c = carry
        g = (jnp.dot(x_t, w_ih.T, precision=hp)
             + jnp.dot(h, w_hh.T, precision=hp) + b)
        i_g = jax.nn.sigmoid(g[:, 0 * H:1 * H])
        f_g = jax.nn.sigmoid(g[:, 1 * H:2 * H])
        g_g = jnp.tanh(g[:, 2 * H:3 * H])
        o_g = jax.nn.sigmoid(g[:, 3 * H:4 * H])
        c = f_g * c + i_g * g_g
        h = o_g * jnp.tanh(c)
        return (h, c), h

    init = (jnp.zeros((Bx, H), jnp.float32), jnp.zeros((Bx, H), jnp.float32))
    _, ys = jax.lax.scan(step, init, x_tm)
    return ys                                             # (T, B, H)


def lstm_model_reference(ids, emb, params):
    (w_ih_f, w_hh_f, b_f, w_ih_b, w_hh_b, b_b, w_out, b_out) = params
    x = jnp.take(emb, ids, axis=0)                        # (B, T, E)
    x_tm = jnp.transpose(x, (1, 0, 2))                    # (T, B, E)
    y_f = _lstm_ref_direction(x_tm, w_ih_f, w_hh_f, b_f)
    y_b = _lstm_ref_direction(x_tm[::-1], w_ih_b, w_hh_b, b_b)[::-1]
    y = jnp.concatenate([y_f, y_b], axis=-1)              # (T, B, 2H)
    avg = jnp.mean(y, axis=0)
    mx = jnp.max(y, axis=0)
    feat = jnp.concatenate([avg, mx], axis=1)             # (B, 4H)
    return jnp.dot(feat, w_out.T, precision=jax.lax.Precision.HIGHEST) + b_out


if __name__ == "__main__":
    def run_case(B, T, V, E, max_time_chunk=256):
        key = jax.random.PRNGKey(0)
        ks = jax.random.split(key, 10)

        def init(k, shape, scale=0.05):
            return scale * jax.random.normal(k, shape, jnp.float32)

        emb = init(ks[0], (V, E), scale=0.1)               # embedding_matrix
        ids = jax.random.randint(ks[1], (B, T), 0, V, dtype=jnp.int32)

        w_ih_f = init(ks[2], (4 * H, E))   # weight_ih_l0 (gate order i, f, g, o)
        w_hh_f = init(ks[3], (4 * H, H))   # weight_hh_l0
        b_f    = init(ks[4], (4 * H,))     # bias_ih_l0 + bias_hh_l0 (combined)
        w_ih_b = init(ks[5], (4 * H, E))   # weight_ih_l0_reverse
        w_hh_b = init(ks[6], (4 * H, H))   # weight_hh_l0_reverse
        b_b    = init(ks[7], (4 * H,))     # combined reverse bias
        w_out  = init(ks[8], (1, 4 * H))   # nn.Linear(512, 1).weight
        b_out  = init(ks[9], (1,))         # nn.Linear(512, 1).bias

        params = (w_ih_f, w_hh_f, b_f, w_ih_b, w_hh_b, b_b, w_out, b_out)

        out = lstm_model_forward(ids, emb, params, max_time_chunk=max_time_chunk)
        jax.block_until_ready(out)
        assert out.shape == (B, 1) and out.dtype == jnp.float32

        ref = lstm_model_reference(ids, emb, params)
        err = float(jnp.max(jnp.abs(out - ref)))
        # 2e-3 tolerance: the hoisted input projection runs with bf16 operands
        # (f32 accumulation); the recurrence and gate math stay f32.
        assert err < 2e-3, f"mismatch vs reference (B={B}, T={T}): {err}"

    # Case 1: baseline small shapes (no time padding, single chunk).
    run_case(B=2, T=8, V=100, E=64)
    # Case 2: exercises multi-chunk state carry, T padding + per-step masking
    # (T=13 padded to 16 with TC=8) and batch padding (3 -> 8).
    run_case(B=3, T=13, V=50, E=32, max_time_chunk=8)
    print("KERNEL_OK")
</pallas_src>

<mosaic_0001>
module attributes {stable_mosaic.version = 11 : i64} {
  func.func @kernel(%arg0: i32, %arg1: memref<1x64x64xbf16, #tpu.memory_space<vmem>>, %arg2: memref<1x64x64xbf16, #tpu.memory_space<vmem>>, %arg3: memref<2x64x512xbf16, #tpu.memory_space<vmem>>, %arg4: memref<2x128x512xf32, #tpu.memory_space<vmem>>, %arg5: memref<2x1x512xf32, #tpu.memory_space<vmem>>, %arg6: memref<2x2x128xf32, #tpu.memory_space<vmem>>, %arg7: memref<2x8x1xf32, #tpu.memory_space<vmem>>, %arg8: memref<8x128xf32, #tpu.memory_space<vmem>>, %arg9: memref<8x128xf32, #tpu.memory_space<vmem>>, %arg10: memref<8x128xf32, #tpu.memory_space<vmem>>, %arg11: memref<8x128xf32, #tpu.memory_space<vmem>>, %arg12: memref<8x128xf32, #tpu.memory_space<vmem>>, %arg13: memref<8x128xf32, #tpu.memory_space<vmem>>, %arg14: memref<8x128xf32, #tpu.memory_space<vmem>>, %arg15: memref<8x128xf32, #tpu.memory_space<vmem>>, %arg16: memref<64x512xf32, #tpu.memory_space<vmem>>, %arg17: memref<64x512xf32, #tpu.memory_space<vmem>>) attributes {dimension_semantics = [#tpu.dimension_semantics<arbitrary>], iteration_bounds = array<i64: 1>, scalar_prefetch = 0 : i64, scratch_operands = 10 : i64, tpu.core_type = #tpu.core_type<tc>, window_params = [{transform_indices = @transform_0, window_bounds = array<i64: 1, 64, 64>}, {transform_indices = @transform_1, window_bounds = array<i64: 1, 64, 64>}, {pipeline_mode = #tpu.pipeline_mode<synchronous>, transform_indices = @transform_2, window_bounds = array<i64: 2, 64, 512>}, {pipeline_mode = #tpu.pipeline_mode<synchronous>, transform_indices = @transform_3, window_bounds = array<i64: 2, 128, 512>}, {pipeline_mode = #tpu.pipeline_mode<synchronous>, transform_indices = @transform_4, window_bounds = array<i64: 2, 1, 512>}, {pipeline_mode = #tpu.pipeline_mode<synchronous>, transform_indices = @transform_5, window_bounds = array<i64: 2, 2, 128>}, {pipeline_mode = #tpu.pipeline_mode<synchronous>, transform_indices = @transform_6, window_bounds = array<i64: 2, 8, 1>}]} {
    %c0_i32 = arith.constant 0 : i32
    %0 = arith.cmpi eq, %arg0, %c0_i32 : i32
    %1 = arith.extui %0 : i1 to i32
    %c0_i32_0 = arith.constant 0 : i32
    %2 = arith.cmpi ne, %1, %c0_i32_0 : i32
    scf.if %2 {
      %cst_209 = arith.constant 0.000000e+00 : f32
      %610 = vector.broadcast %cst_209 : f32 to vector<8x128xf32>
      %c0_210 = arith.constant 0 : index
      %c0_211 = arith.constant 0 : index
      %611 = vector.load %arg8[%c0_210, %c0_211] : memref<8x128xf32, #tpu.memory_space<vmem>>, vector<8x128xf32>
      tpu.vector_store %arg8[%c0_210, %c0_211], %610 {strides = array<i32>} : memref<8x128xf32, #tpu.memory_space<vmem>>, vector<8x128xf32>,
      %cst_212 = arith.constant 0.000000e+00 : f32
      %612 = vector.broadcast %cst_212 : f32 to vector<8x128xf32>
      %c0_213 = arith.constant 0 : index
      %c0_214 = arith.constant 0 : index
      %613 = vector.load %arg9[%c0_213, %c0_214] : memref<8x128xf32, #tpu.memory_space<vmem>>, vector<8x128xf32>
      tpu.vector_store %arg9[%c0_213, %c0_214], %612 {strides = array<i32>} : memref<8x128xf32, #tpu.memory_space<vmem>>, vector<8x128xf32>,
      %cst_215 = arith.constant 0.000000e+00 : f32
      %614 = vector.broadcast %cst_215 : f32 to vector<8x128xf32>
      %c0_216 = arith.constant 0 : index
      %c0_217 = arith.constant 0 : index
      %615 = vector.load %arg10[%c0_216, %c0_217] : memref<8x128xf32, #tpu.memory_space<vmem>>, vector<8x128xf32>
      tpu.vector_store %arg10[%c0_216, %c0_217], %614 {strides = array<i32>} : memref<8x128xf32, #tpu.memory_space<vmem>>, vector<8x128xf32>,
      %cst_218 = arith.constant 0.000000e+00 : f32
      %616 = vector.broadcast %cst_218 : f32 to vector<8x128xf32>
      %c0_219 = arith.constant 0 : index
      %c0_220 = arith.constant 0 : index
      %617 = vector.load %arg12[%c0_219, %c0_220] : memref<8x128xf32, #tpu.memory_space<vmem>>, vector<8x128xf32>
      tpu.vector_store %arg12[%c0_219, %c0_220], %616 {strides = array<i32>} : memref<8x128xf32, #tpu.memory_space<vmem>>, vector<8x128xf32>,
      %cst_221 = arith.constant 0.000000e+00 : f32
      %618 = vector.broadcast %cst_221 : f32 to vector<8x128xf32>
      %c0_222 = arith.constant 0 : index
      %c0_223 = arith.constant 0 : index
      %619 = vector.load %arg13[%c0_222, %c0_223] : memref<8x128xf32, #tpu.memory_space<vmem>>, vector<8x128xf32>
      tpu.vector_store %arg13[%c0_222, %c0_223], %618 {strides = array<i32>} : memref<8x128xf32, #tpu.memory_space<vmem>>, vector<8x128xf32>,
      %cst_224 = arith.constant 0.000000e+00 : f32
      %620 = vector.broadcast %cst_224 : f32 to vector<8x128xf32>
      %c0_225 = arith.constant 0 : index
      %c0_226 = arith.constant 0 : index
      %621 = vector.load %arg14[%c0_225, %c0_226] : memref<8x128xf32, #tpu.memory_space<vmem>>, vector<8x128xf32>
      tpu.vector_store %arg14[%c0_225, %c0_226], %620 {strides = array<i32>} : memref<8x128xf32, #tpu.memory_space<vmem>>, vector<8x128xf32>,
      %cst_227 = arith.constant 0xFF800000 : f32
      %622 = vector.broadcast %cst_227 : f32 to vector<8x128xf32>
      %c0_228 = arith.constant 0 : index
      %c0_229 = arith.constant 0 : index
      %623 = vector.load %arg11[%c0_228, %c0_229] : memref<8x128xf32, #tpu.memory_space<vmem>>, vector<8x128xf32>
      tpu.vector_store %arg11[%c0_228, %c0_229], %622 {strides = array<i32>} : memref<8x128xf32, #tpu.memory_space<vmem>>, vector<8x128xf32>,
      %cst_230 = arith.constant 0xFF800000 : f32
      %624 = vector.broadcast %cst_230 : f32 to vector<8x128xf32>
      %c0_231 = arith.constant 0 : index
      %c0_232 = arith.constant 0 : index
      %625 = vector.load %arg15[%c0_231, %c0_232] : memref<8x128xf32, #tpu.memory_space<vmem>>, vector<8x128xf32>
      tpu.vector_store %arg15[%c0_231, %c0_232], %624 {strides = array<i32>} : memref<8x128xf32, #tpu.memory_space<vmem>>, vector<8x128xf32>,
    } else {
    }
    %c0 = arith.constant 0 : index
    %c0_1 = arith.constant 0 : index
    %c0_2 = arith.constant 0 : index
    %3 = vector.load %arg1[%c0, %c0_1, %c0_2] : memref<1x64x64xbf16, #tpu.memory_space<vmem>>, vector<1x64x64xbf16>
    %4 = vector.shape_cast %3 : vector<1x64x64xbf16> to vector<64x64xbf16>
    %c0_3 = arith.constant 0 : index
    %c0_4 = arith.constant 0 : index
    %c0_5 = arith.constant 0 : index
    %5 = vector.load %arg3[%c0_3, %c0_4, %c0_5] : memref<2x64x512xbf16, #tpu.memory_space<vmem>>, vector<1x64x512xbf16>
    %6 = vector.shape_cast %5 : vector<1x64x512xbf16> to vector<64x512xbf16>
    %cst = arith.constant dense<0.000000e+00> : vector<64x512xf32>
    %7 = tpu.matmul %4, %6, %cst {dimension_numbers = #tpu.dot_dimension_numbers<[1], [0], [0], [1], [0, 0, 1, 1], [], []>} : vector<64x64xbf16>, vector<64x512xbf16>, vector<64x512xf32> -> vector<64x512xf32>
    %c0_6 = arith.constant 0 : index
    %c0_7 = arith.constant 0 : index
    %c0_8 = arith.constant 0 : index
    %8 = vector.load %arg5[%c0_6, %c0_7, %c0_8] : memref<2x1x512xf32, #tpu.memory_space<vmem>>, vector<1x1x512xf32>
    %9 = vector.shape_cast %8 : vector<1x1x512xf32> to vector<1x512xf32>
    %10 = vector.broadcast %9 : vector<1x512xf32> to vector<64x512xf32>
    %11 = arith.addf %7, %10 : vector<64x512xf32>
    %c0_9 = arith.constant 0 : index
    %c0_10 = arith.constant 0 : index
    %12 = vector.load %arg16[%c0_9, %c0_10] : memref<64x512xf32, #tpu.memory_space<vmem>>, vector<64x512xf32>
    tpu.vector_store %arg16[%c0_9, %c0_10], %11 {strides = array<i32>} : memref<64x512xf32, #tpu.memory_space<vmem>>, vector<64x512xf32>,
    %c0_11 = arith.constant 0 : index
    %c0_12 = arith.constant 0 : index
    %c0_13 = arith.constant 0 : index
    %13 = vector.load %arg2[%c0_11, %c0_12, %c0_13] : memref<1x64x64xbf16, #tpu.memory_space<vmem>>, vector<1x64x64xbf16>
    %14 = vector.shape_cast %13 : vector<1x64x64xbf16> to vector<64x64xbf16>
    %c1 = arith.constant 1 : index
    %c0_14 = arith.constant 0 : index
    %c0_15 = arith.constant 0 : index
    %15 = vector.load %arg3[%c1, %c0_14, %c0_15] : memref<2x64x512xbf16, #tpu.memory_space<vmem>>, vector<1x64x512xbf16>
    %16 = vector.shape_cast %15 : vector<1x64x512xbf16> to vector<64x512xbf16>
    %cst_16 = arith.constant dense<0.000000e+00> : vector<64x512xf32>
    %17 = tpu.matmul %14, %16, %cst_16 {dimension_numbers = #tpu.dot_dimension_numbers<[1], [0], [0], [1], [0, 0, 1, 1], [], []>} : vector<64x64xbf16>, vector<64x512xbf16>, vector<64x512xf32> -> vector<64x512xf32>
    %c1_17 = arith.constant 1 : index
    %c0_18 = arith.constant 0 : index
    %c0_19 = arith.constant 0 : index
    %18 = vector.load %arg5[%c1_17, %c0_18, %c0_19] : memref<2x1x512xf32, #tpu.memory_space<vmem>>, vector<1x1x512xf32>
    %19 = vector.shape_cast %18 : vector<1x1x512xf32> to vector<1x512xf32>
    %20 = vector.broadcast %19 : vector<1x512xf32> to vector<64x512xf32>
    %21 = arith.addf %17, %20 : vector<64x512xf32>
    %c0_20 = arith.constant 0 : index
    %c0_21 = arith.constant 0 : index
    %22 = vector.load %arg17[%c0_20, %c0_21] : memref<64x512xf32, #tpu.memory_space<vmem>>, vector<64x512xf32>
    tpu.vector_store %arg17[%c0_20, %c0_21], %21 {strides = array<i32>} : memref<64x512xf32, #tpu.memory_space<vmem>>, vector<64x512xf32>,
    %c0_22 = arith.constant 0 : index
    %c0_23 = arith.constant 0 : index
    %23 = vector.load %arg8[%c0_22, %c0_23] : memref<8x128xf32, #tpu.memory_space<vmem>>, vector<8x128xf32>
    %c0_24 = arith.constant 0 : index
    %c0_25 = arith.constant 0 : index
    %24 = vector.load %arg9[%c0_24, %c0_25] : memref<8x128xf32, #tpu.memory_space<vmem>>, vector<8x128xf32>
    %c0_26 = arith.constant 0 : index
    %c0_27 = arith.constant 0 : index
    %25 = vector.load %arg10[%c0_26, %c0_27] : memref<8x128xf32, #tpu.memory_space<vmem>>, vector<8x128xf32>
    %c0_28 = arith.constant 0 : index
    %c0_29 = arith.constant 0 : index
    %26 = vector.load %arg11[%c0_28, %c0_29] : memref<8x128xf32, #tpu.memory_space<vmem>>, vector<8x128xf32>
    %c0_30 = arith.constant 0 : index
    %c0_31 = arith.constant 0 : index
    %27 = vector.load %arg12[%c0_30, %c0_31] : memref<8x128xf32, #tpu.memory_space<vmem>>, vector<8x128xf32>
    %c0_32 = arith.constant 0 : index
    %c0_33 = arith.constant 0 : index
    %28 = vector.load %arg13[%c0_32, %c0_33] : memref<8x128xf32, #tpu.memory_space<vmem>>, vector<8x128xf32>
    %c0_34 = arith.constant 0 : index
    %c0_35 = arith.constant 0 : index
    %29 = vector.load %arg14[%c0_34, %c0_35] : memref<8x128xf32, #tpu.memory_space<vmem>>, vector<8x128xf32>
    %c0_36 = arith.constant 0 : index
    %c0_37 = arith.constant 0 : index
    %30 = vector.load %arg15[%c0_36, %c0_37] : memref<8x128xf32, #tpu.memory_space<vmem>>, vector<8x128xf32>
    %c0_i32_38 = arith.constant 0 : i32
    %c7_i32 = arith.constant 7 : i32
    %31 = arith.subi %c7_i32, %c0_i32_38 : i32
    %c8_i32 = arith.constant 8 : i32
    %32 = arith.muli %c0_i32_38, %c8_i32 : i32
    %33 = tpu.assume_multiple %32, 8 : i32
    %c8_i32_39 = arith.constant 8 : i32
    %34 = arith.muli %31, %c8_i32_39 : i32
    %35 = tpu.assume_multiple %34, 8 : i32
    %36 = arith.index_cast %33 : i32 to index
    %c0_40 = arith.constant 0 : index
    %37 = vector.load %arg16[%36, %c0_40] : memref<64x512xf32, #tpu.memory_space<vmem>>, vector<8x512xf32>
    %c0_41 = arith.constant 0 : index
    %c0_42 = arith.constant 0 : index
    %c0_43 = arith.constant 0 : index
    %38 = vector.load %arg4[%c0_41, %c0_42, %c0_43] : memref<2x128x512xf32, #tpu.memory_space<vmem>>, vector<1x128x512xf32>
    %39 = vector.shape_cast %38 : vector<1x128x512xf32> to vector<128x512xf32>
    %cst_44 = arith.constant dense<0.000000e+00> : vector<8x512xf32>
    %40 = tpu.matmul %23, %39, %cst_44 {dimension_numbers = #tpu.dot_dimension_numbers<[1], [0], [0], [1], [0, 0, 1, 1], [], []>} : vector<8x128xf32>, vector<128x512xf32>, vector<8x512xf32> -> vector<8x512xf32>
    %41 = arith.addf %37, %40 : vector<8x512xf32>
    %42 = arith.index_cast %35 : i32 to index
    %c0_45 = arith.constant 0 : index
    %43 = vector.load %arg17[%42, %c0_45] : memref<64x512xf32, #tpu.memory_space<vmem>>, vector<8x512xf32>
    %c1_46 = arith.constant 1 : index
    %c0_47 = arith.constant 0 : index
    %c0_48 = arith.constant 0 : index
    %44 = vector.load %arg4[%c1_46, %c0_47, %c0_48] : memref<2x128x512xf32, #tpu.memory_space<vmem>>, vector<1x128x512xf32>
    %45 = vector.shape_cast %44 : vector<1x128x512xf32> to vector<128x512xf32>
    %cst_49 = arith.constant dense<0.000000e+00> : vector<8x512xf32>
    %46 = tpu.matmul %27, %45, %cst_49 {dimension_numbers = #tpu.dot_dimension_numbers<[1], [0], [0], [1], [0, 0, 1, 1], [], []>} : vector<8x128xf32>, vector<128x512xf32>, vector<8x512xf32> -> vector<8x512xf32>
    %47 = arith.addf %43, %46 : vector<8x512xf32>
    %48 = vector.extract_strided_slice %41 {offsets = [0, 0], sizes = [8, 128], strides = [1, 1]} : vector<8x512xf32> to vector<8x128xf32>
    %49 = arith.negf %48 : vector<8x128xf32>
    %50 = math.exp %49 : vector<8x128xf32>
    %cst_50 = arith.constant 1.000000e+00 : f32
    %51 = vector.broadcast %cst_50 : f32 to vector<8x128xf32>
    %52 = arith.addf %51, %50 : vector<8x128xf32>
    %53 = arith.divf %51, %52 : vector<8x128xf32>
    %54 = vector.extract_strided_slice %41 {offsets = [0, 128], sizes = [8, 128], strides = [1, 1]} : vector<8x512xf32> to vector<8x128xf32>
    %55 = arith.negf %54 : vector<8x128xf32>
    %56 = math.exp %55 : vector<8x128xf32>
    %cst_51 = arith.constant 1.000000e+00 : f32
    %57 = vector.broadcast %cst_51 : f32 to vector<8x128xf32>
    %58 = arith.addf %57, %56 : vector<8x128xf32>
    %59 = arith.divf %57, %58 : vector<8x128xf32>
    %60 = vector.extract_strided_slice %41 {offsets = [0, 256], sizes = [8, 128], strides = [1, 1]} : vector<8x512xf32> to vector<8x128xf32>
    %61 = math.tanh %60 : vector<8x128xf32>
    %62 = vector.extract_strided_slice %41 {offsets = [0, 384], sizes = [8, 128], strides = [1, 1]} : vector<8x512xf32> to vector<8x128xf32>
    %63 = arith.negf %62 : vector<8x128xf32>
    %64 = math.exp %63 : vector<8x128xf32>
    %cst_52 = arith.constant 1.000000e+00 : f32
    %65 = vector.broadcast %cst_52 : f32 to vector<8x128xf32>
    %66 = arith.addf %65, %64 : vector<8x128xf32>
    %67 = arith.divf %65, %66 : vector<8x128xf32>
    %68 = arith.mulf %59, %24 : vector<8x128xf32>
    %69 = arith.mulf %53, %61 : vector<8x128xf32>
    %70 = arith.addf %68, %69 : vector<8x128xf32>
    %71 = math.tanh %70 : vector<8x128xf32>
    %72 = arith.mulf %67, %71 : vector<8x128xf32>
    %73 = vector.extract_strided_slice %47 {offsets = [0, 0], sizes = [8, 128], strides = [1, 1]} : vector<8x512xf32> to vector<8x128xf32>
    %74 = arith.negf %73 : vector<8x128xf32>
    %75 = math.exp %74 : vector<8x128xf32>
    %cst_53 = arith.constant 1.000000e+00 : f32
    %76 = vector.broadcast %cst_53 : f32 to vector<8x128xf32>
    %77 = arith.addf %76, %75 : vector<8x128xf32>
    %78 = arith.divf %76, %77 : vector<8x128xf32>
    %79 = vector.extract_strided_slice %47 {offsets = [0, 128], sizes = [8, 128], strides = [1, 1]} : vector<8x512xf32> to vector<8x128xf32>
    %80 = arith.negf %79 : vector<8x128xf32>
    %81 = math.exp %80 : vector<8x128xf32>
    %cst_54 = arith.constant 1.000000e+00 : f32
    %82 = vector.broadcast %cst_54 : f32 to vector<8x128xf32>
    %83 = arith.addf %82, %81 : vector<8x128xf32>
    %84 = arith.divf %82, %83 : vector<8x128xf32>
    %85 = vector.extract_strided_slice %47 {offsets = [0, 256], sizes = [8, 128], strides = [1, 1]} : vector<8x512xf32> to vector<8x128xf32>
    %86 = math.tanh %85 : vector<8x128xf32>
    %87 = vector.extract_strided_slice %47 {offsets = [0, 384], sizes = [8, 128], strides = [1, 1]} : vector<8x512xf32> to vector<8x128xf32>
    %88 = arith.negf %87 : vector<8x128xf32>
    %89 = math.exp %88 : vector<8x128xf32>
    %cst_55 = arith.constant 1.000000e+00 : f32
    %90 = vector.broadcast %cst_55 : f32 to vector<8x128xf32>
    %91 = arith.addf %90, %89 : vector<8x128xf32>
    %92 = arith.divf %90, %91 : vector<8x128xf32>
    %93 = arith.mulf %84, %28 : vector<8x128xf32>
    %94 = arith.mulf %78, %86 : vector<8x128xf32>
    %95 = arith.addf %93, %94 : vector<8x128xf32>
    %96 = math.tanh %95 : vector<8x128xf32>
    %97 = arith.mulf %92, %96 : vector<8x128xf32>
    %98 = arith.addf %25, %72 : vector<8x128xf32>
    %99 = arith.maximumf %26, %72 : vector<8x128xf32>
    %100 = arith.addf %29, %97 : vector<8x128xf32>
    %101 = arith.maximumf %30, %97 : vector<8x128xf32>
    %c1_i32 = arith.constant 1 : i32
    %c7_i32_56 = arith.constant 7 : i32
    %102 = arith.subi %c7_i32_56, %c1_i32 : i32
    %c8_i32_57 = arith.constant 8 : i32
    %103 = arith.muli %c1_i32, %c8_i32_57 : i32
    %104 = tpu.assume_multiple %103, 8 : i32
    %c8_i32_58 = arith.constant 8 : i32
    %105 = arith.muli %102, %c8_i32_58 : i32
    %106 = tpu.assume_multiple %105, 8 : i32
    %107 = arith.index_cast %104 : i32 to index
    %c0_59 = arith.constant 0 : index
    %108 = vector.load %arg16[%107, %c0_59] : memref<64x512xf32, #tpu.memory_space<vmem>>, vector<8x512xf32>
    %c0_60 = arith.constant 0 : index
    %c0_61 = arith.constant 0 : index
    %c0_62 = arith.constant 0 : index
    %109 = vector.load %arg4[%c0_60, %c0_61, %c0_62] : memref<2x128x512xf32, #tpu.memory_space<vmem>>, vector<1x128x512xf32>
    %110 = vector.shape_cast %109 : vector<1x128x512xf32> to vector<128x512xf32>
    %cst_63 = arith.constant dense<0.000000e+00> : vector<8x512xf32>
    %111 = tpu.matmul %72, %110, %cst_63 {dimension_numbers = #tpu.dot_dimension_numbers<[1], [0], [0], [1], [0, 0, 1, 1], [], []>} : vector<8x128xf32>, vector<128x512xf32>, vector<8x512xf32> -> vector<8x512xf32>
    %112 = arith.addf %108, %111 : vector<8x512xf32>
    %113 = arith.index_cast %106 : i32 to index
    %c0_64 = arith.constant 0 : index
    %114 = vector.load %arg17[%113, %c0_64] : memref<64x512xf32, #tpu.memory_space<vmem>>, vector<8x512xf32>
    %c1_65 = arith.constant 1 : index
    %c0_66 = arith.constant 0 : index
    %c0_67 = arith.constant 0 : index
    %115 = vector.load %arg4[%c1_65, %c0_66, %c0_67] : memref<2x128x512xf32, #tpu.memory_space<vmem>>, vector<1x128x512xf32>
    %116 = vector.shape_cast %115 : vector<1x128x512xf32> to vector<128x512xf32>
    %cst_68 = arith.constant dense<0.000000e+00> : vector<8x512xf32>
    %117 = tpu.matmul %97, %116, %cst_68 {dimension_numbers = #tpu.dot_dimension_numbers<[1], [0], [0], [1], [0, 0, 1, 1], [], []>} : vector<8x128xf32>, vector<128x512xf32>, vector<8x512xf32> -> vector<8x512xf32>
    %118 = arith.addf %114, %117 : vector<8x512xf32>
    %119 = vector.extract_strided_slice %112 {offsets = [0, 0], sizes = [8, 128], strides = [1, 1]} : vector<8x512xf32> to vector<8x128xf32>
    %120 = arith.negf %119 : vector<8x128xf32>
    %121 = math.exp %120 : vector<8x128xf32>
    %cst_69 = arith.constant 1.000000e+00 : f32
    %122 = vector.broadcast %cst_69 : f32 to vector<8x128xf32>
    %123 = arith.addf %122, %121 : vector<8x128xf32>
    %124 = arith.divf %122, %123 : vector<8x128xf32>
    %125 = vector.extract_strided_slice %112 {offsets = [0, 128], sizes = [8, 128], strides = [1, 1]} : vector<8x512xf32> to vector<8x128xf32>
    %126 = arith.negf %125 : vector<8x128xf32>
    %127 = math.exp %126 : vector<8x128xf32>
    %cst_70 = arith.constant 1.000000e+00 : f32
    %128 = vector.broadcast %cst_70 : f32 to vector<8x128xf32>
    %129 = arith.addf %128, %127 : vector<8x128xf32>
    %130 = arith.divf %128, %129 : vector<8x128xf32>
    %131 = vector.extract_strided_slice %112 {offsets = [0, 256], sizes = [8, 128], strides = [1, 1]} : vector<8x512xf32> to vector<8x128xf32>
    %132 = math.tanh %131 : vector<8x128xf32>
    %133 = vector.extract_strided_slice %112 {offsets = [0, 384], sizes = [8, 128], strides = [1, 1]} : vector<8x512xf32> to vector<8x128xf32>
    %134 = arith.negf %133 : vector<8x128xf32>
    %135 = math.exp %134 : vector<8x128xf32>
    %cst_71 = arith.constant 1.000000e+00 : f32
    %136 = vector.broadcast %cst_71 : f32 to vector<8x128xf32>
    %137 = arith.addf %136, %135 : vector<8x128xf32>
    %138 = arith.divf %136, %137 : vector<8x128xf32>
    %139 = arith.mulf %130, %70 : vector<8x128xf32>
    %140 = arith.mulf %124, %132 : vector<8x128xf32>
    %141 = arith.addf %139, %140 : vector<8x128xf32>
    %142 = math.tanh %141 : vector<8x128xf32>
    %143 = arith.mulf %138, %142 : vector<8x128xf32>
    %144 = vector.extract_strided_slice %118 {offsets = [0, 0], sizes = [8, 128], strides = [1, 1]} : vector<8x512xf32> to vector<8x128xf32>
    %145 = arith.negf %144 : vector<8x128xf32>
    %146 = math.exp %145 : vector<8x128xf32>
    %cst_72 = arith.constant 1.000000e+00 : f32
    %147 = vector.broadcast %cst_72 : f32 to vector<8x128xf32>
    %148 = arith.addf %147, %146 : vector<8x128xf32>
    %149 = arith.divf %147, %148 : vector<8x128xf32>
    %150 = vector.extract_strided_slice %118 {offsets = [0, 128], sizes = [8, 128], strides = [1, 1]} : vector<8x512xf32> to vector<8x128xf32>
    %151 = arith.negf %150 : vector<8x128xf32>
    %152 = math.exp %151 : vector<8x128xf32>
    %cst_73 = arith.constant 1.000000e+00 : f32
    %153 = vector.broadcast %cst_73 : f32 to vector<8x128xf32>
    %154 = arith.addf %153, %152 : vector<8x128xf32>
    %155 = arith.divf %153, %154 : vector<8x128xf32>
    %156 = vector.extract_strided_slice %118 {offsets = [0, 256], sizes = [8, 128], strides = [1, 1]} : vector<8x512xf32> to vector<8x128xf32>
    %157 = math.tanh %156 : vector<8x128xf32>
    %158 = vector.extract_strided_slice %118 {offsets = [0, 384], sizes = [8, 128], strides = [1, 1]} : vector<8x512xf32> to vector<8x128xf32>
    %159 = arith.negf %158 : vector<8x128xf32>
    %160 = math.exp %159 : vector<8x128xf32>
    %cst_74 = arith.constant 1.000000e+00 : f32
    %161 = vector.broadcast %cst_74 : f32 to vector<8x128xf32>
    %162 = arith.addf %161, %160 : vector<8x128xf32>
    %163 = arith.divf %161, %162 : vector<8x128xf32>
    %164 = arith.mulf %155, %95 : vector<8x128xf32>
    %165 = arith.mulf %149, %157 : vector<8x128xf32>
    %166 = arith.addf %164, %165 : vector<8x128xf32>
    %167 = math.tanh %166 : vector<8x128xf32>
    %168 = arith.mulf %163, %167 : vector<8x128xf32>
    %169 = arith.addf %98, %143 : vector<8x128xf32>
    %170 = arith.maximumf %99, %143 : vector<8x128xf32>
    %171 = arith.addf %100, %168 : vector<8x128xf32>
    %172 = arith.maximumf %101, %168 : vector<8x128xf32>
    %c2_i32 = arith.constant 2 : i32
    %c7_i32_75 = arith.constant 7 : i32
    %173 = arith.subi %c7_i32_75, %c2_i32 : i32
    %c8_i32_76 = arith.constant 8 : i32
    %174 = arith.muli %c2_i32, %c8_i32_76 : i32
    %175 = tpu.assume_multiple %174, 8 : i32
    %c8_i32_77 = arith.constant 8 : i32
    %176 = arith.muli %173, %c8_i32_77 : i32
    %177 = tpu.assume_multiple %176, 8 : i32
    %178 = arith.index_cast %175 : i32 to index
    %c0_78 = arith.constant 0 : index
    %179 = vector.load %arg16[%178, %c0_78] : memref<64x512xf32, #tpu.memory_space<vmem>>, vector<8x512xf32>
    %c0_79 = arith.constant 0 : index
    %c0_80 = arith.constant 0 : index
    %c0_81 = arith.constant 0 : index
    %180 = vector.load %arg4[%c0_79, %c0_80, %c0_81] : memref<2x128x512xf32, #tpu.memory_space<vmem>>, vector<1x128x512xf32>
    %181 = vector.shape_cast %180 : vector<1x128x512xf32> to vector<128x512xf32>
    %cst_82 = arith.constant dense<0.000000e+00> : vector<8x512xf32>
    %182 = tpu.matmul %143, %181, %cst_82 {dimension_numbers = #tpu.dot_dimension_numbers<[1], [0], [0], [1], [0, 0, 1, 1], [], []>} : vector<8x128xf32>, vector<128x512xf32>, vector<8x512xf32> -> vector<8x512xf32>
    %183 = arith.addf %179, %182 : vector<8x512xf32>
    %184 = arith.index_cast %177 : i32 to index
    %c0_83 = arith.constant 0 : index
    %185 = vector.load %arg17[%184, %c0_83] : memref<64x512xf32, #tpu.memory_space<vmem>>, vector<8x512xf32>
    %c1_84 = arith.constant 1 : index
    %c0_85 = arith.constant 0 : index
    %c0_86 = arith.constant 0 : index
    %186 = vector.load %arg4[%c1_84, %c0_85, %c0_86] : memref<2x128x512xf32, #tpu.memory_space<vmem>>, vector<1x128x512xf32>
    %187 = vector.shape_cast %186 : vector<1x128x512xf32> to vector<128x512xf32>
    %cst_87 = arith.constant dense<0.000000e+00> : vector<8x512xf32>
    %188 = tpu.matmul %168, %187, %cst_87 {dimension_numbers = #tpu.dot_dimension_numbers<[1], [0], [0], [1], [0, 0, 1, 1], [], []>} : vector<8x128xf32>, vector<128x512xf32>, vector<8x512xf32> -> vector<8x512xf32>
    %189 = arith.addf %185, %188 : vector<8x512xf32>
    %190 = vector.extract_strided_slice %183 {offsets = [0, 0], sizes = [8, 128], strides = [1, 1]} : vector<8x512xf32> to vector<8x128xf32>
    %191 = arith.negf %190 : vector<8x128xf32>
    %192 = math.exp %191 : vector<8x128xf32>
    %cst_88 = arith.constant 1.000000e+00 : f32
    %193 = vector.broadcast %cst_88 : f32 to vector<8x128xf32>
    %194 = arith.addf %193, %192 : vector<8x128xf32>
    %195 = arith.divf %193, %194 : vector<8x128xf32>
    %196 = vector.extract_strided_slice %183 {offsets = [0, 128], sizes = [8, 128], strides = [1, 1]} : vector<8x512xf32> to vector<8x128xf32>
    %197 = arith.negf %196 : vector<8x128xf32>
    %198 = math.exp %197 : vector<8x128xf32>
    %cst_89 = arith.constant 1.000000e+00 : f32
    %199 = vector.broadcast %cst_89 : f32 to vector<8x128xf32>
    %200 = arith.addf %199, %198 : vector<8x128xf32>
    %201 = arith.divf %199, %200 : vector<8x128xf32>
    %202 = vector.extract_strided_slice %183 {offsets = [0, 256], sizes = [8, 128], strides = [1, 1]} : vector<8x512xf32> to vector<8x128xf32>
    %203 = math.tanh %202 : vector<8x128xf32>
    %204 = vector.extract_strided_slice %183 {offsets = [0, 384], sizes = [8, 128], strides = [1, 1]} : vector<8x512xf32> to vector<8x128xf32>
    %205 = arith.negf %204 : vector<8x128xf32>
    %206 = math.exp %205 : vector<8x128xf32>
    %cst_90 = arith.constant 1.000000e+00 : f32
    %207 = vector.broadcast %cst_90 : f32 to vector<8x128xf32>
    %208 = arith.addf %207, %206 : vector<8x128xf32>
    %209 = arith.divf %207, %208 : vector<8x128xf32>
    %210 = arith.mulf %201, %141 : vector<8x128xf32>
    %211 = arith.mulf %195, %203 : vector<8x128xf32>
    %212 = arith.addf %210, %211 : vector<8x128xf32>
    %213 = math.tanh %212 : vector<8x128xf32>
    %214 = arith.mulf %209, %213 : vector<8x128xf32>
    %215 = vector.extract_strided_slice %189 {offsets = [0, 0], sizes = [8, 128], strides = [1, 1]} : vector<8x512xf32> to vector<8x128xf32>
    %216 = arith.negf %215 : vector<8x128xf32>
    %217 = math.exp %216 : vector<8x128xf32>
    %cst_91 = arith.constant 1.000000e+00 : f32
    %218 = vector.broadcast %cst_91 : f32 to vector<8x128xf32>
    %219 = arith.addf %218, %217 : vector<8x128xf32>
    %220 = arith.divf %218, %219 : vector<8x128xf32>
    %221 = vector.extract_strided_slice %189 {offsets = [0, 128], sizes = [8, 128], strides = [1, 1]} : vector<8x512xf32> to vector<8x128xf32>
    %222 = arith.negf %221 : vector<8x128xf32>
    %223 = math.exp %222 : vector<8x128xf32>
    %cst_92 = arith.constant 1.000000e+00 : f32
    %224 = vector.broadcast %cst_92 : f32 to vector<8x128xf32>
    %225 = arith.addf %224, %223 : vector<8x128xf32>
    %226 = arith.divf %224, %225 : vector<8x128xf32>
    %227 = vector.extract_strided_slice %189 {offsets = [0, 256], sizes = [8, 128], strides = [1, 1]} : vector<8x512xf32> to vector<8x128xf32>
    %228 = math.tanh %227 : vector<8x128xf32>
    %229 = vector.extract_strided_slice %189 {offsets = [0, 384], sizes = [8, 128], strides = [1, 1]} : vector<8x512xf32> to vector<8x128xf32>
    %230 = arith.negf %229 : vector<8x128xf32>
    %231 = math.exp %230 : vector<8x128xf32>
    %cst_93 = arith.constant 1.000000e+00 : f32
    %232 = vector.broadcast %cst_93 : f32 to vector<8x128xf32>
    %233 = arith.addf %232, %231 : vector<8x128xf32>
    %234 = arith.divf %232, %233 : vector<8x128xf32>
    %235 = arith.mulf %226, %166 : vector<8x128xf32>
    %236 = arith.mulf %220, %228 : vector<8x128xf32>
    %237 = arith.addf %235, %236 : vector<8x128xf32>
    %238 = math.tanh %237 : vector<8x128xf32>
    %239 = arith.mulf %234, %238 : vector<8x128xf32>
    %240 = arith.addf %169, %214 : vector<8x128xf32>
    %241 = arith.maximumf %170, %214 : vector<8x128xf32>
    %242 = arith.addf %171, %239 : vector<8x128xf32>
    %243 = arith.maximumf %172, %239 : vector<8x128xf32>
    %c3_i32 = arith.constant 3 : i32
    %c7_i32_94 = arith.constant 7 : i32
    %244 = arith.subi %c7_i32_94, %c3_i32 : i32
    %c8_i32_95 = arith.constant 8 : i32
    %245 = arith.muli %c3_i32, %c8_i32_95 : i32
    %246 = tpu.assume_multiple %245, 8 : i32
    %c8_i32_96 = arith.constant 8 : i32
    %247 = arith.muli %244, %c8_i32_96 : i32
    %248 = tpu.assume_multiple %247, 8 : i32
    %249 = arith.index_cast %246 : i32 to index
    %c0_97 = arith.constant 0 : index
    %250 = vector.load %arg16[%249, %c0_97] : memref<64x512xf32, #tpu.memory_space<vmem>>, vector<8x512xf32>
    %c0_98 = arith.constant 0 : index
    %c0_99 = arith.constant 0 : index
    %c0_100 = arith.constant 0 : index
    %251 = vector.load %arg4[%c0_98, %c0_99, %c0_100] : memref<2x128x512xf32, #tpu.memory_space<vmem>>, vector<1x128x512xf32>
    %252 = vector.shape_cast %251 : vector<1x128x512xf32> to vector<128x512xf32>
    %cst_101 = arith.constant dense<0.000000e+00> : vector<8x512xf32>
    %253 = tpu.matmul %214, %252, %cst_101 {dimension_numbers = #tpu.dot_dimension_numbers<[1], [0], [0], [1], [0, 0, 1, 1], [], []>} : vector<8x128xf32>, vector<128x512xf32>, vector<8x512xf32> -> vector<8x512xf32>
    %254 = arith.addf %250, %253 : vector<8x512xf32>
    %255 = arith.index_cast %248 : i32 to index
    %c0_102 = arith.constant 0 : index
    %256 = vector.load %arg17[%255, %c0_102] : memref<64x512xf32, #tpu.memory_space<vmem>>, vector<8x512xf32>
    %c1_103 = arith.constant 1 : index
    %c0_104 = arith.constant 0 : index
    %c0_105 = arith.constant 0 : index
    %257 = vector.load %arg4[%c1_103, %c0_104, %c0_105] : memref<2x128x512xf32, #tpu.memory_space<vmem>>, vector<1x128x512xf32>
    %258 = vector.shape_cast %257 : vector<1x128x512xf32> to vector<128x512xf32>
    %cst_106 = arith.constant dense<0.000000e+00> : vector<8x512xf32>
    %259 = tpu.matmul %239, %258, %cst_106 {dimension_numbers = #tpu.dot_dimension_numbers<[1], [0], [0], [1], [0, 0, 1, 1], [], []>} : vector<8x128xf32>, vector<128x512xf32>, vector<8x512xf32> -> vector<8x512xf32>
    %260 = arith.addf %256, %259 : vector<8x512xf32>
    %261 = vector.extract_strided_slice %254 {offsets = [0, 0], sizes = [8, 128], strides = [1, 1]} : vector<8x512xf32> to vector<8x128xf32>
    %262 = arith.negf %261 : vector<8x128xf32>
    %263 = math.exp %262 : vector<8x128xf32>
    %cst_107 = arith.constant 1.000000e+00 : f32
    %264 = vector.broadcast %cst_107 : f32 to vector<8x128xf32>
    %265 = arith.addf %264, %263 : vector<8x128xf32>
    %266 = arith.divf %264, %265 : vector<8x128xf32>
    %267 = vector.extract_strided_slice %254 {offsets = [0, 128], sizes = [8, 128], strides = [1, 1]} : vector<8x512xf32> to vector<8x128xf32>
    %268 = arith.negf %267 : vector<8x128xf32>
    %269 = math.exp %268 : vector<8x128xf32>
    %cst_108 = arith.constant 1.000000e+00 : f32
    %270 = vector.broadcast %cst_108 : f32 to vector<8x128xf32>
    %271 = arith.addf %270, %269 : vector<8x128xf32>
    %272 = arith.divf %270, %271 : vector<8x128xf32>
    %273 = vector.extract_strided_slice %254 {offsets = [0, 256], sizes = [8, 128], strides = [1, 1]} : vector<8x512xf32> to vector<8x128xf32>
    %274 = math.tanh %273 : vector<8x128xf32>
    %275 = vector.extract_strided_slice %254 {offsets = [0, 384], sizes = [8, 128], strides = [1, 1]} : vector<8x512xf32> to vector<8x128xf32>
    %276 = arith.negf %275 : vector<8x128xf32>
    %277 = math.exp %276 : vector<8x128xf32>
    %cst_109 = arith.constant 1.000000e+00 : f32
    %278 = vector.broadcast %cst_109 : f32 to vector<8x128xf32>
    %279 = arith.addf %278, %277 : vector<8x128xf32>
    %280 = arith.divf %278, %279 : vector<8x128xf32>
    %281 = arith.mulf %272, %212 : vector<8x128xf32>
    %282 = arith.mulf %266, %274 : vector<8x128xf32>
    %283 = arith.addf %281, %282 : vector<8x128xf32>
    %284 = math.tanh %283 : vector<8x128xf32>
    %285 = arith.mulf %280, %284 : vector<8x128xf32>
    %286 = vector.extract_strided_slice %260 {offsets = [0, 0], sizes = [8, 128], strides = [1, 1]} : vector<8x512xf32> to vector<8x128xf32>
    %287 = arith.negf %286 : vector<8x128xf32>
    %288 = math.exp %287 : vector<8x128xf32>
    %cst_110 = arith.constant 1.000000e+00 : f32
    %289 = vector.broadcast %cst_110 : f32 to vector<8x128xf32>
    %290 = arith.addf %289, %288 : vector<8x128xf32>
    %291 = arith.divf %289, %290 : vector<8x128xf32>
    %292 = vector.extract_strided_slice %260 {offsets = [0, 128], sizes = [8, 128], strides = [1, 1]} : vector<8x512xf32> to vector<8x128xf32>
    %293 = arith.negf %292 : vector<8x128xf32>
    %294 = math.exp %293 : vector<8x128xf32>
    %cst_111 = arith.constant 1.000000e+00 : f32
    %295 = vector.broadcast %cst_111 : f32 to vector<8x128xf32>
    %296 = arith.addf %295, %294 : vector<8x128xf32>
    %297 = arith.divf %295, %296 : vector<8x128xf32>
    %298 = vector.extract_strided_slice %260 {offsets = [0, 256], sizes = [8, 128], strides = [1, 1]} : vector<8x512xf32> to vector<8x128xf32>
    %299 = math.tanh %298 : vector<8x128xf32>
    %300 = vector.extract_strided_slice %260 {offsets = [0, 384], sizes = [8, 128], strides = [1, 1]} : vector<8x512xf32> to vector<8x128xf32>
    %301 = arith.negf %300 : vector<8x128xf32>
    %302 = math.exp %301 : vector<8x128xf32>
    %cst_112 = arith.constant 1.000000e+00 : f32
    %303 = vector.broadcast %cst_112 : f32 to vector<8x128xf32>
    %304 = arith.addf %303, %302 : vector<8x128xf32>
    %305 = arith.divf %303, %304 : vector<8x128xf32>
    %306 = arith.mulf %297, %237 : vector<8x128xf32>
    %307 = arith.mulf %291, %299 : vector<8x128xf32>
    %308 = arith.addf %306, %307 : vector<8x128xf32>
    %309 = math.tanh %308 : vector<8x128xf32>
    %310 = arith.mulf %305, %309 : vector<8x128xf32>
    %311 = arith.addf %240, %285 : vector<8x128xf32>
    %312 = arith.maximumf %241, %285 : vector<8x128xf32>
    %313 = arith.addf %242, %310 : vector<8x128xf32>
    %314 = arith.maximumf %243, %310 : vector<8x128xf32>
    %c4_i32 = arith.constant 4 : i32
    %c7_i32_113 = arith.constant 7 : i32
    %315 = arith.subi %c7_i32_113, %c4_i32 : i32
    %c8_i32_114 = arith.constant 8 : i32
    %316 = arith.muli %c4_i32, %c8_i32_114 : i32
    %317 = tpu.assume_multiple %316, 8 : i32
    %c8_i32_115 = arith.constant 8 : i32
    %318 = arith.muli %315, %c8_i32_115 : i32
    %319 = tpu.assume_multiple %318, 8 : i32
    %320 = arith.index_cast %317 : i32 to index
    %c0_116 = arith.constant 0 : index
    %321 = vector.load %arg16[%320, %c0_116] : memref<64x512xf32, #tpu.memory_space<vmem>>, vector<8x512xf32>
    %c0_117 = arith.constant 0 : index
    %c0_118 = arith.constant 0 : index
    %c0_119 = arith.constant 0 : index
    %322 = vector.load %arg4[%c0_117, %c0_118, %c0_119] : memref<2x128x512xf32, #tpu.memory_space<vmem>>, vector<1x128x512xf32>
    %323 = vector.shape_cast %322 : vector<1x128x512xf32> to vector<128x512xf32>
    %cst_120 = arith.constant dense<0.000000e+00> : vector<8x512xf32>
    %324 = tpu.matmul %285, %323, %cst_120 {dimension_numbers = #tpu.dot_dimension_numbers<[1], [0], [0], [1], [0, 0, 1, 1], [], []>} : vector<8x128xf32>, vector<128x512xf32>, vector<8x512xf32> -> vector<8x512xf32>
    %325 = arith.addf %321, %324 : vector<8x512xf32>
    %326 = arith.index_cast %319 : i32 to index
    %c0_121 = arith.constant 0 : index
    %327 = vector.load %arg17[%326, %c0_121] : memref<64x512xf32, #tpu.memory_space<vmem>>, vector<8x512xf32>
    %c1_122 = arith.constant 1 : index
    %c0_123 = arith.constant 0 : index
    %c0_124 = arith.constant 0 : index
    %328 = vector.load %arg4[%c1_122, %c0_123, %c0_124] : memref<2x128x512xf32, #tpu.memory_space<vmem>>, vector<1x128x512xf32>
    %329 = vector.shape_cast %328 : vector<1x128x512xf32> to vector<128x512xf32>
    %cst_125 = arith.constant dense<0.000000e+00> : vector<8x512xf32>
    %330 = tpu.matmul %310, %329, %cst_125 {dimension_numbers = #tpu.dot_dimension_numbers<[1], [0], [0], [1], [0, 0, 1, 1], [], []>} : vector<8x128xf32>, vector<128x512xf32>, vector<8x512xf32> -> vector<8x512xf32>
    %331 = arith.addf %327, %330 : vector<8x512xf32>
    %332 = vector.extract_strided_slice %325 {offsets = [0, 0], sizes = [8, 128], strides = [1, 1]} : vector<8x512xf32> to vector<8x128xf32>
    %333 = arith.negf %332 : vector<8x128xf32>
    %334 = math.exp %333 : vector<8x128xf32>
    %cst_126 = arith.constant 1.000000e+00 : f32
    %335 = vector.broadcast %cst_126 : f32 to vector<8x128xf32>
    %336 = arith.addf %335, %334 : vector<8x128xf32>
    %337 = arith.divf %335, %336 : vector<8x128xf32>
    %338 = vector.extract_strided_slice %325 {offsets = [0, 128], sizes = [8, 128], strides = [1, 1]} : vector<8x512xf32> to vector<8x128xf32>
    %339 = arith.negf %338 : vector<8x128xf32>
    %340 = math.exp %339 : vector<8x128xf32>
    %cst_127 = arith.constant 1.000000e+00 : f32
    %341 = vector.broadcast %cst_127 : f32 to vector<8x128xf32>
    %342 = arith.addf %341, %340 : vector<8x128xf32>
    %343 = arith.divf %341, %342 : vector<8x128xf32>
    %344 = vector.extract_strided_slice %325 {offsets = [0, 256], sizes = [8, 128], strides = [1, 1]} : vector<8x512xf32> to vector<8x128xf32>
    %345 = math.tanh %344 : vector<8x128xf32>
    %346 = vector.extract_strided_slice %325 {offsets = [0, 384], sizes = [8, 128], strides = [1, 1]} : vector<8x512xf32> to vector<8x128xf32>
    %347 = arith.negf %346 : vector<8x128xf32>
    %348 = math.exp %347 : vector<8x128xf32>
    %cst_128 = arith.constant 1.000000e+00 : f32
    %349 = vector.broadcast %cst_128 : f32 to vector<8x128xf32>
    %350 = arith.addf %349, %348 : vector<8x128xf32>
    %351 = arith.divf %349, %350 : vector<8x128xf32>
    %352 = arith.mulf %343, %283 : vector<8x128xf32>
    %353 = arith.mulf %337, %345 : vector<8x128xf32>
    %354 = arith.addf %352, %353 : vector<8x128xf32>
    %355 = math.tanh %354 : vector<8x128xf32>
    %356 = arith.mulf %351, %355 : vector<8x128xf32>
    %357 = vector.extract_strided_slice %331 {offsets = [0, 0], sizes = [8, 128], strides = [1, 1]} : vector<8x512xf32> to vector<8x128xf32>
    %358 = arith.negf %357 : vector<8x128xf32>
    %359 = math.exp %358 : vector<8x128xf32>
    %cst_129 = arith.constant 1.000000e+00 : f32
    %360 = vector.broadcast %cst_129 : f32 to vector<8x128xf32>
    %361 = arith.addf %360, %359 : vector<8x128xf32>
    %362 = arith.divf %360, %361 : vector<8x128xf32>
    %363 = vector.extract_strided_slice %331 {offsets = [0, 128], sizes = [8, 128], strides = [1, 1]} : vector<8x512xf32> to vector<8x128xf32>
    %364 = arith.negf %363 : vector<8x128xf32>
    %365 = math.exp %364 : vector<8x128xf32>
    %cst_130 = arith.constant 1.000000e+00 : f32
    %366 = vector.broadcast %cst_130 : f32 to vector<8x128xf32>
    %367 = arith.addf %366, %365 : vector<8x128xf32>
    %368 = arith.divf %366, %367 : vector<8x128xf32>
    %369 = vector.extract_strided_slice %331 {offsets = [0, 256], sizes = [8, 128], strides = [1, 1]} : vector<8x512xf32> to vector<8x128xf32>
    %370 = math.tanh %369 : vector<8x128xf32>
    %371 = vector.extract_strided_slice %331 {offsets = [0, 384], sizes = [8, 128], strides = [1, 1]} : vector<8x512xf32> to vector<8x128xf32>
    %372 = arith.negf %371 : vector<8x128xf32>
    %373 = math.exp %372 : vector<8x128xf32>
    %cst_131 = arith.constant 1.000000e+00 : f32
    %374 = vector.broadcast %cst_131 : f32 to vector<8x128xf32>
    %375 = arith.addf %374, %373 : vector<8x128xf32>
    %376 = arith.divf %374, %375 : vector<8x128xf32>
    %377 = arith.mulf %368, %308 : vector<8x128xf32>
    %378 = arith.mulf %362, %370 : vector<8x128xf32>
    %379 = arith.addf %377, %378 : vector<8x128xf32>
    %380 = math.tanh %379 : vector<8x128xf32>
    %381 = arith.mulf %376, %380 : vector<8x128xf32>
    %382 = arith.addf %311, %356 : vector<8x128xf32>
    %383 = arith.maximumf %312, %356 : vector<8x128xf32>
    %384 = arith.addf %313, %381 : vector<8x128xf32>
    %385 = arith.maximumf %314, %381 : vector<8x128xf32>
    %c5_i32 = arith.constant 5 : i32
    %c7_i32_132 = arith.constant 7 : i32
    %386 = arith.subi %c7_i32_132, %c5_i32 : i32
    %c8_i32_133 = arith.constant 8 : i32
    %387 = arith.muli %c5_i32, %c8_i32_133 : i32
    %388 = tpu.assume_multiple %387, 8 : i32
    %c8_i32_134 = arith.constant 8 : i32
    %389 = arith.muli %386, %c8_i32_134 : i32
    %390 = tpu.assume_multiple %389, 8 : i32
    %391 = arith.index_cast %388 : i32 to index
    %c0_135 = arith.constant 0 : index
    %392 = vector.load %arg16[%391, %c0_135] : memref<64x512xf32, #tpu.memory_space<vmem>>, vector<8x512xf32>
    %c0_136 = arith.constant 0 : index
    %c0_137 = arith.constant 0 : index
    %c0_138 = arith.constant 0 : index
    %393 = vector.load %arg4[%c0_136, %c0_137, %c0_138] : memref<2x128x512xf32, #tpu.memory_space<vmem>>, vector<1x128x512xf32>
    %394 = vector.shape_cast %393 : vector<1x128x512xf32> to vector<128x512xf32>
    %cst_139 = arith.constant dense<0.000000e+00> : vector<8x512xf32>
    %395 = tpu.matmul %356, %394, %cst_139 {dimension_numbers = #tpu.dot_dimension_numbers<[1], [0], [0], [1], [0, 0, 1, 1], [], []>} : vector<8x128xf32>, vector<128x512xf32>, vector<8x512xf32> -> vector<8x512xf32>
    %396 = arith.addf %392, %395 : vector<8x512xf32>
    %397 = arith.index_cast %390 : i32 to index
    %c0_140 = arith.constant 0 : index
    %398 = vector.load %arg17[%397, %c0_140] : memref<64x512xf32, #tpu.memory_space<vmem>>, vector<8x512xf32>
    %c1_141 = arith.constant 1 : index
    %c0_142 = arith.constant 0 : index
    %c0_143 = arith.constant 0 : index
    %399 = vector.load %arg4[%c1_141, %c0_142, %c0_143] : memref<2x128x512xf32, #tpu.memory_space<vmem>>, vector<1x128x512xf32>
    %400 = vector.shape_cast %399 : vector<1x128x512xf32> to vector<128x512xf32>
    %cst_144 = arith.constant dense<0.000000e+00> : vector<8x512xf32>
    %401 = tpu.matmul %381, %400, %cst_144 {dimension_numbers = #tpu.dot_dimension_numbers<[1], [0], [0], [1], [0, 0, 1, 1], [], []>} : vector<8x128xf32>, vector<128x512xf32>, vector<8x512xf32> -> vector<8x512xf32>
    %402 = arith.addf %398, %401 : vector<8x512xf32>
    %403 = vector.extract_strided_slice %396 {offsets = [0, 0], sizes = [8, 128], strides = [1, 1]} : vector<8x512xf32> to vector<8x128xf32>
    %404 = arith.negf %403 : vector<8x128xf32>
    %405 = math.exp %404 : vector<8x128xf32>
    %cst_145 = arith.constant 1.000000e+00 : f32
    %406 = vector.broadcast %cst_145 : f32 to vector<8x128xf32>
    %407 = arith.addf %406, %405 : vector<8x128xf32>
    %408 = arith.divf %406, %407 : vector<8x128xf32>
    %409 = vector.extract_strided_slice %396 {offsets = [0, 128], sizes = [8, 128], strides = [1, 1]} : vector<8x512xf32> to vector<8x128xf32>
    %410 = arith.negf %409 : vector<8x128xf32>
    %411 = math.exp %410 : vector<8x128xf32>
    %cst_146 = arith.constant 1.000000e+00 : f32
    %412 = vector.broadcast %cst_146 : f32 to vector<8x128xf32>
    %413 = arith.addf %412, %411 : vector<8x128xf32>
    %414 = arith.divf %412, %413 : vector<8x128xf32>
    %415 = vector.extract_strided_slice %396 {offsets = [0, 256], sizes = [8, 128], strides = [1, 1]} : vector<8x512xf32> to vector<8x128xf32>
    %416 = math.tanh %415 : vector<8x128xf32>
    %417 = vector.extract_strided_slice %396 {offsets = [0, 384], sizes = [8, 128], strides = [1, 1]} : vector<8x512xf32> to vector<8x128xf32>
    %418 = arith.negf %417 : vector<8x128xf32>
    %419 = math.exp %418 : vector<8x128xf32>
    %cst_147 = arith.constant 1.000000e+00 : f32
    %420 = vector.broadcast %cst_147 : f32 to vector<8x128xf32>
    %421 = arith.addf %420, %419 : vector<8x128xf32>
    %422 = arith.divf %420, %421 : vector<8x128xf32>
    %423 = arith.mulf %414, %354 : vector<8x128xf32>
    %424 = arith.mulf %408, %416 : vector<8x128xf32>
    %425 = arith.addf %423, %424 : vector<8x128xf32>
    %426 = math.tanh %425 : vector<8x128xf32>
    %427 = arith.mulf %422, %426 : vector<8x128xf32>
    %428 = vector.extract_strided_slice %402 {offsets = [0, 0], sizes = [8, 128], strides = [1, 1]} : vector<8x512xf32> to vector<8x128xf32>
    %429 = arith.negf %428 : vector<8x128xf32>
    %430 = math.exp %429 : vector<8x128xf32>
    %cst_148 = arith.constant 1.000000e+00 : f32
    %431 = vector.broadcast %cst_148 : f32 to vector<8x128xf32>
    %432 = arith.addf %431, %430 : vector<8x128xf32>
    %433 = arith.divf %431, %432 : vector<8x128xf32>
    %434 = vector.extract_strided_slice %402 {offsets = [0, 128], sizes = [8, 128], strides = [1, 1]} : vector<8x512xf32> to vector<8x128xf32>
    %435 = arith.negf %434 : vector<8x128xf32>
    %436 = math.exp %435 : vector<8x128xf32>
    %cst_149 = arith.constant 1.000000e+00 : f32
    %437 = vector.broadcast %cst_149 : f32 to vector<8x128xf32>
    %438 = arith.addf %437, %436 : vector<8x128xf32>
    %439 = arith.divf %437, %438 : vector<8x128xf32>
    %440 = vector.extract_strided_slice %402 {offsets = [0, 256], sizes = [8, 128], strides = [1, 1]} : vector<8x512xf32> to vector<8x128xf32>
    %441 = math.tanh %440 : vector<8x128xf32>
    %442 = vector.extract_strided_slice %402 {offsets = [0, 384], sizes = [8, 128], strides = [1, 1]} : vector<8x512xf32> to vector<8x128xf32>
    %443 = arith.negf %442 : vector<8x128xf32>
    %444 = math.exp %443 : vector<8x128xf32>
    %cst_150 = arith.constant 1.000000e+00 : f32
    %445 = vector.broadcast %cst_150 : f32 to vector<8x128xf32>
    %446 = arith.addf %445, %444 : vector<8x128xf32>
    %447 = arith.divf %445, %446 : vector<8x128xf32>
    %448 = arith.mulf %439, %379 : vector<8x128xf32>
    %449 = arith.mulf %433, %441 : vector<8x128xf32>
    %450 = arith.addf %448, %449 : vector<8x128xf32>
    %451 = math.tanh %450 : vector<8x128xf32>
    %452 = arith.mulf %447, %451 : vector<8x128xf32>
    %453 = arith.addf %382, %427 : vector<8x128xf32>
    %454 = arith.maximumf %383, %427 : vector<8x128xf32>
    %455 = arith.addf %384, %452 : vector<8x128xf32>
    %456 = arith.maximumf %385, %452 : vector<8x128xf32>
    %c6_i32 = arith.constant 6 : i32
    %c7_i32_151 = arith.constant 7 : i32
    %457 = arith.subi %c7_i32_151, %c6_i32 : i32
    %c8_i32_152 = arith.constant 8 : i32
    %458 = arith.muli %c6_i32, %c8_i32_152 : i32
    %459 = tpu.assume_multiple %458, 8 : i32
    %c8_i32_153 = arith.constant 8 : i32
    %460 = arith.muli %457, %c8_i32_153 : i32
    %461 = tpu.assume_multiple %460, 8 : i32
    %462 = arith.index_cast %459 : i32 to index
    %c0_154 = arith.constant 0 : index
    %463 = vector.load %arg16[%462, %c0_154] : memref<64x512xf32, #tpu.memory_space<vmem>>, vector<8x512xf32>
    %c0_155 = arith.constant 0 : index
    %c0_156 = arith.constant 0 : index
    %c0_157 = arith.constant 0 : index
    %464 = vector.load %arg4[%c0_155, %c0_156, %c0_157] : memref<2x128x512xf32, #tpu.memory_space<vmem>>, vector<1x128x512xf32>
    %465 = vector.shape_cast %464 : vector<1x128x512xf32> to vector<128x512xf32>
    %cst_158 = arith.constant dense<0.000000e+00> : vector<8x512xf32>
    %466 = tpu.matmul %427, %465, %cst_158 {dimension_numbers = #tpu.dot_dimension_numbers<[1], [0], [0], [1], [0, 0, 1, 1], [], []>} : vector<8x128xf32>, vector<128x512xf32>, vector<8x512xf32> -> vector<8x512xf32>
    %467 = arith.addf %463, %466 : vector<8x512xf32>
    %468 = arith.index_cast %461 : i32 to index
    %c0_159 = arith.constant 0 : index
    %469 = vector.load %arg17[%468, %c0_159] : memref<64x512xf32, #tpu.memory_space<vmem>>, vector<8x512xf32>
    %c1_160 = arith.constant 1 : index
    %c0_161 = arith.constant 0 : index
    %c0_162 = arith.constant 0 : index
    %470 = vector.load %arg4[%c1_160, %c0_161, %c0_162] : memref<2x128x512xf32, #tpu.memory_space<vmem>>, vector<1x128x512xf32>
    %471 = vector.shape_cast %470 : vector<1x128x512xf32> to vector<128x512xf32>
    %cst_163 = arith.constant dense<0.000000e+00> : vector<8x512xf32>
    %472 = tpu.matmul %452, %471, %cst_163 {dimension_numbers = #tpu.dot_dimension_numbers<[1], [0], [0], [1], [0, 0, 1, 1], [], []>} : vector<8x128xf32>, vector<128x512xf32>, vector<8x512xf32> -> vector<8x512xf32>
    %473 = arith.addf %469, %472 : vector<8x512xf32>
    %474 = vector.extract_strided_slice %467 {offsets = [0, 0], sizes = [8, 128], strides = [1, 1]} : vector<8x512xf32> to vector<8x128xf32>
    %475 = arith.negf %474 : vector<8x128xf32>
    %476 = math.exp %475 : vector<8x128xf32>
    %cst_164 = arith.constant 1.000000e+00 : f32
    %477 = vector.broadcast %cst_164 : f32 to vector<8x128xf32>
    %478 = arith.addf %477, %476 : vector<8x128xf32>
    %479 = arith.divf %477, %478 : vector<8x128xf32>
    %480 = vector.extract_strided_slice %467 {offsets = [0, 128], sizes = [8, 128], strides = [1, 1]} : vector<8x512xf32> to vector<8x128xf32>
    %481 = arith.negf %480 : vector<8x128xf32>
    %482 = math.exp %481 : vector<8x128xf32>
    %cst_165 = arith.constant 1.000000e+00 : f32
    %483 = vector.broadcast %cst_165 : f32 to vector<8x128xf32>
    %484 = arith.addf %483, %482 : vector<8x128xf32>
    %485 = arith.divf %483, %484 : vector<8x128xf32>
    %486 = vector.extract_strided_slice %467 {offsets = [0, 256], sizes = [8, 128], strides = [1, 1]} : vector<8x512xf32> to vector<8x128xf32>
    %487 = math.tanh %486 : vector<8x128xf32>
    %488 = vector.extract_strided_slice %467 {offsets = [0, 384], sizes = [8, 128], strides = [1, 1]} : vector<8x512xf32> to vector<8x128xf32>
    %489 = arith.negf %488 : vector<8x128xf32>
    %490 = math.exp %489 : vector<8x128xf32>
    %cst_166 = arith.constant 1.000000e+00 : f32
    %491 = vector.broadcast %cst_166 : f32 to vector<8x128xf32>
    %492 = arith.addf %491, %490 : vector<8x128xf32>
    %493 = arith.divf %491, %492 : vector<8x128xf32>
    %494 = arith.mulf %485, %425 : vector<8x128xf32>
    %495 = arith.mulf %479, %487 : vector<8x128xf32>
    %496 = arith.addf %494, %495 : vector<8x128xf32>
    %497 = math.tanh %496 : vector<8x128xf32>
    %498 = arith.mulf %493, %497 : vector<8x128xf32>
    %499 = vector.extract_strided_slice %473 {offsets = [0, 0], sizes = [8, 128], strides = [1, 1]} : vector<8x512xf32> to vector<8x128xf32>
    %500 = arith.negf %499 : vector<8x128xf32>
    %501 = math.exp %500 : vector<8x128xf32>
    %cst_167 = arith.constant 1.000000e+00 : f32
    %502 = vector.broadcast %cst_167 : f32 to vector<8x128xf32>
    %503 = arith.addf %502, %501 : vector<8x128xf32>
    %504 = arith.divf %502, %503 : vector<8x128xf32>
    %505 = vector.extract_strided_slice %473 {offsets = [0, 128], sizes = [8, 128], strides = [1, 1]} : vector<8x512xf32> to vector<8x128xf32>
    %506 = arith.negf %505 : vector<8x128xf32>
    %507 = math.exp %506 : vector<8x128xf32>
    %cst_168 = arith.constant 1.000000e+00 : f32
    %508 = vector.broadcast %cst_168 : f32 to vector<8x128xf32>
    %509 = arith.addf %508, %507 : vector<8x128xf32>
    %510 = arith.divf %508, %509 : vector<8x128xf32>
    %511 = vector.extract_strided_slice %473 {offsets = [0, 256], sizes = [8, 128], strides = [1, 1]} : vector<8x512xf32> to vector<8x128xf32>
    %512 = math.tanh %511 : vector<8x128xf32>
    %513 = vector.extract_strided_slice %473 {offsets = [0, 384], sizes = [8, 128], strides = [1, 1]} : vector<8x512xf32> to vector<8x128xf32>
    %514 = arith.negf %513 : vector<8x128xf32>
    %515 = math.exp %514 : vector<8x128xf32>
    %cst_169 = arith.constant 1.000000e+00 : f32
    %516 = vector.broadcast %cst_169 : f32 to vector<8x128xf32>
    %517 = arith.addf %516, %515 : vector<8x128xf32>
    %518 = arith.divf %516, %517 : vector<8x128xf32>
    %519 = arith.mulf %510, %450 : vector<8x128xf32>
    %520 = arith.mulf %504, %512 : vector<8x128xf32>
    %521 = arith.addf %519, %520 : vector<8x128xf32>
    %522 = math.tanh %521 : vector<8x128xf32>
    %523 = arith.mulf %518, %522 : vector<8x128xf32>
    %524 = arith.addf %453, %498 : vector<8x128xf32>
    %525 = arith.maximumf %454, %498 : vector<8x128xf32>
    %526 = arith.addf %455, %523 : vector<8x128xf32>
    %527 = arith.maximumf %456, %523 : vector<8x128xf32>
    %c7_i32_170 = arith.constant 7 : i32
    %c7_i32_171 = arith.constant 7 : i32
    %528 = arith.subi %c7_i32_171, %c7_i32_170 : i32
    %c8_i32_172 = arith.constant 8 : i32
    %529 = arith.muli %c7_i32_170, %c8_i32_172 : i32
    %530 = tpu.assume_multiple %529, 8 : i32
    %c8_i32_173 = arith.constant 8 : i32
    %531 = arith.muli %528, %c8_i32_173 : i32
    %532 = tpu.assume_multiple %531, 8 : i32
    %533 = arith.index_cast %530 : i32 to index
    %c0_174 = arith.constant 0 : index
    %534 = vector.load %arg16[%533, %c0_174] : memref<64x512xf32, #tpu.memory_space<vmem>>, vector<8x512xf32>
    %c0_175 = arith.constant 0 : index
    %c0_176 = arith.constant 0 : index
    %c0_177 = arith.constant 0 : index
    %535 = vector.load %arg4[%c0_175, %c0_176, %c0_177] : memref<2x128x512xf32, #tpu.memory_space<vmem>>, vector<1x128x512xf32>
    %536 = vector.shape_cast %535 : vector<1x128x512xf32> to vector<128x512xf32>
    %cst_178 = arith.constant dense<0.000000e+00> : vector<8x512xf32>
    %537 = tpu.matmul %498, %536, %cst_178 {dimension_numbers = #tpu.dot_dimension_numbers<[1], [0], [0], [1], [0, 0, 1, 1], [], []>} : vector<8x128xf32>, vector<128x512xf32>, vector<8x512xf32> -> vector<8x512xf32>
    %538 = arith.addf %534, %537 : vector<8x512xf32>
    %539 = arith.index_cast %532 : i32 to index
    %c0_179 = arith.constant 0 : index
    %540 = vector.load %arg17[%539, %c0_179] : memref<64x512xf32, #tpu.memory_space<vmem>>, vector<8x512xf32>
    %c1_180 = arith.constant 1 : index
    %c0_181 = arith.constant 0 : index
    %c0_182 = arith.constant 0 : index
    %541 = vector.load %arg4[%c1_180, %c0_181, %c0_182] : memref<2x128x512xf32, #tpu.memory_space<vmem>>, vector<1x128x512xf32>
    %542 = vector.shape_cast %541 : vector<1x128x512xf32> to vector<128x512xf32>
    %cst_183 = arith.constant dense<0.000000e+00> : vector<8x512xf32>
    %543 = tpu.matmul %523, %542, %cst_183 {dimension_numbers = #tpu.dot_dimension_numbers<[1], [0], [0], [1], [0, 0, 1, 1], [], []>} : vector<8x128xf32>, vector<128x512xf32>, vector<8x512xf32> -> vector<8x512xf32>
    %544 = arith.addf %540, %543 : vector<8x512xf32>
    %545 = vector.extract_strided_slice %538 {offsets = [0, 0], sizes = [8, 128], strides = [1, 1]} : vector<8x512xf32> to vector<8x128xf32>
    %546 = arith.negf %545 : vector<8x128xf32>
    %547 = math.exp %546 : vector<8x128xf32>
    %cst_184 = arith.constant 1.000000e+00 : f32
    %548 = vector.broadcast %cst_184 : f32 to vector<8x128xf32>
    %549 = arith.addf %548, %547 : vector<8x128xf32>
    %550 = arith.divf %548, %549 : vector<8x128xf32>
    %551 = vector.extract_strided_slice %538 {offsets = [0, 128], sizes = [8, 128], strides = [1, 1]} : vector<8x512xf32> to vector<8x128xf32>
    %552 = arith.negf %551 : vector<8x128xf32>
    %553 = math.exp %552 : vector<8x128xf32>
    %cst_185 = arith.constant 1.000000e+00 : f32
    %554 = vector.broadcast %cst_185 : f32 to vector<8x128xf32>
    %555 = arith.addf %554, %553 : vector<8x128xf32>
    %556 = arith.divf %554, %555 : vector<8x128xf32>
    %557 = vector.extract_strided_slice %538 {offsets = [0, 256], sizes = [8, 128], strides = [1, 1]} : vector<8x512xf32> to vector<8x128xf32>
    %558 = math.tanh %557 : vector<8x128xf32>
    %559 = vector.extract_strided_slice %538 {offsets = [0, 384], sizes = [8, 128], strides = [1, 1]} : vector<8x512xf32> to vector<8x128xf32>
    %560 = arith.negf %559 : vector<8x128xf32>
    %561 = math.exp %560 : vector<8x128xf32>
    %cst_186 = arith.constant 1.000000e+00 : f32
    %562 = vector.broadcast %cst_186 : f32 to vector<8x128xf32>
    %563 = arith.addf %562, %561 : vector<8x128xf32>
    %564 = arith.divf %562, %563 : vector<8x128xf32>
    %565 = arith.mulf %556, %496 : vector<8x128xf32>
    %566 = arith.mulf %550, %558 : vector<8x128xf32>
    %567 = arith.addf %565, %566 : vector<8x128xf32>
    %568 = math.tanh %567 : vector<8x128xf32>
    %569 = arith.mulf %564, %568 : vector<8x128xf32>
    %570 = vector.extract_strided_slice %544 {offsets = [0, 0], sizes = [8, 128], strides = [1, 1]} : vector<8x512xf32> to vector<8x128xf32>
    %571 = arith.negf %570 : vector<8x128xf32>
    %572 = math.exp %571 : vector<8x128xf32>
    %cst_187 = arith.constant 1.000000e+00 : f32
    %573 = vector.broadcast %cst_187 : f32 to vector<8x128xf32>
    %574 = arith.addf %573, %572 : vector<8x128xf32>
    %575 = arith.divf %573, %574 : vector<8x128xf32>
    %576 = vector.extract_strided_slice %544 {offsets = [0, 128], sizes = [8, 128], strides = [1, 1]} : vector<8x512xf32> to vector<8x128xf32>
    %577 = arith.negf %576 : vector<8x128xf32>
    %578 = math.exp %577 : vector<8x128xf32>
    %cst_188 = arith.constant 1.000000e+00 : f32
    %579 = vector.broadcast %cst_188 : f32 to vector<8x128xf32>
    %580 = arith.addf %579, %578 : vector<8x128xf32>
    %581 = arith.divf %579, %580 : vector<8x128xf32>
    %582 = vector.extract_strided_slice %544 {offsets = [0, 256], sizes = [8, 128], strides = [1, 1]} : vector<8x512xf32> to vector<8x128xf32>
    %583 = math.tanh %582 : vector<8x128xf32>
    %584 = vector.extract_strided_slice %544 {offsets = [0, 384], sizes = [8, 128], strides = [1, 1]} : vector<8x512xf32> to vector<8x128xf32>
    %585 = arith.negf %584 : vector<8x128xf32>
    %586 = math.exp %585 : vector<8x128xf32>
    %cst_189 = arith.constant 1.000000e+00 : f32
    %587 = vector.broadcast %cst_189 : f32 to vector<8x128xf32>
    %588 = arith.addf %587, %586 : vector<8x128xf32>
    %589 = arith.divf %587, %588 : vector<8x128xf32>
    %590 = arith.mulf %581, %521 : vector<8x128xf32>
    %591 = arith.mulf %575, %583 : vector<8x128xf32>
    %592 = arith.addf %590, %591 : vector<8x128xf32>
    %593 = math.tanh %592 : vector<8x128xf32>
    %594 = arith.mulf %589, %593 : vector<8x128xf32>
    %595 = arith.addf %524, %569 : vector<8x128xf32>
    %596 = arith.maximumf %525, %569 : vector<8x128xf32>
    %597 = arith.addf %526, %594 : vector<8x128xf32>
    %598 = arith.maximumf %527, %594 : vector<8x128xf32>
    %c8_i32_190 = arith.constant 8 : i32
    %c0_191 = arith.constant 0 : index
    %c0_192 = arith.constant 0 : index
    %599 = vector.load %arg8[%c0_191, %c0_192] : memref<8x128xf32, #tpu.memory_space<vmem>>, vector<8x128xf32>
    tpu.vector_store %arg8[%c0_191, %c0_192], %569 {strides = array<i32>} : memref<8x128xf32, #tpu.memory_space<vmem>>, vector<8x128xf32>,
    %c0_193 = arith.constant 0 : index
    %c0_194 = arith.constant 0 : index
    %600 = vector.load %arg9[%c0_193, %c0_194] : memref<8x128xf32, #tpu.memory_space<vmem>>, vector<8x128xf32>
    tpu.vector_store %arg9[%c0_193, %c0_194], %567 {strides = array<i32>} : memref<8x128xf32, #tpu.memory_space<vmem>>, vector<8x128xf32>,
    %c0_195 = arith.constant 0 : index
    %c0_196 = arith.constant 0 : index
    %601 = vector.load %arg10[%c0_195, %c0_196] : memref<8x128xf32, #tpu.memory_space<vmem>>, vector<8x128xf32>
    tpu.vector_store %arg10[%c0_195, %c0_196], %595 {strides = array<i32>} : memref<8x128xf32, #tpu.memory_space<vmem>>, vector<8x128xf32>,
    %c0_197 = arith.constant 0 : index
    %c0_198 = arith.constant 0 : index
    %602 = vector.load %arg11[%c0_197, %c0_198] : memref<8x128xf32, #tpu.memory_space<vmem>>, vector<8x128xf32>
    tpu.vector_store %arg11[%c0_197, %c0_198], %596 {strides = array<i32>} : memref<8x128xf32, #tpu.memory_space<vmem>>, vector<8x128xf32>,
    %c0_199 = arith.constant 0 : index
    %c0_200 = arith.constant 0 : index
    %603 = vector.load %arg12[%c0_199, %c0_200] : memref<8x128xf32, #tpu.memory_space<vmem>>, vector<8x128xf32>
    tpu.vector_store %arg12[%c0_199, %c0_200], %594 {strides = array<i32>} : memref<8x128xf32, #tpu.memory_space<vmem>>, vector<8x128xf32>,
    %c0_201 = arith.constant 0 : index
    %c0_202 = arith.constant 0 : index
    %604 = vector.load %arg13[%c0_201, %c0_202] : memref<8x128xf32, #tpu.memory_space<vmem>>, vector<8x128xf32>
    tpu.vector_store %arg13[%c0_201, %c0_202], %592 {strides = array<i32>} : memref<8x128xf32, #tpu.memory_space<vmem>>, vector<8x128xf32>,
    %c0_203 = arith.constant 0 : index
    %c0_204 = arith.constant 0 : index
    %605 = vector.load %arg14[%c0_203, %c0_204] : memref<8x128xf32, #tpu.memory_space<vmem>>, vector<8x128xf32>
    tpu.vector_store %arg14[%c0_203, %c0_204], %597 {strides = array<i32>} : memref<8x128xf32, #tpu.memory_space<vmem>>, vector<8x128xf32>,
    %c0_205 = arith.constant 0 : index
    %c0_206 = arith.constant 0 : index
    %606 = vector.load %arg15[%c0_205, %c0_206] : memref<8x128xf32, #tpu.memory_space<vmem>>, vector<8x128xf32>
    tpu.vector_store %arg15[%c0_205, %c0_206], %598 {strides = array<i32>} : memref<8x128xf32, #tpu.memory_space<vmem>>, vector<8x128xf32>,
    %c0_i32_207 = arith.constant 0 : i32
    %607 = arith.cmpi eq, %arg0, %c0_i32_207 : i32
    %608 = arith.extui %607 : i1 to i32
    %c0_i32_208 = arith.constant 0 : i32
    %609 = arith.cmpi ne, %608, %c0_i32_208 : i32
    scf.if %609 {
      %c0_209 = arith.constant 0 : index
      %c0_210 = arith.constant 0 : index
      %c0_211 = arith.constant 0 : index
      %610 = vector.load %arg6[%c0_209, %c0_210, %c0_211] : memref<2x2x128xf32, #tpu.memory_space<vmem>>, vector<2x2x128xf32>
      %cst_212 = arith.constant 1.250000e-01 : f32
      %611 = vector.broadcast %cst_212 : f32 to vector<8x128xf32>
      %612 = arith.mulf %595, %611 : vector<8x128xf32>
      %613 = vector.extract_strided_slice %610 {offsets = [0, 0, 0], sizes = [1, 1, 128], strides = [1, 1, 1]} : vector<2x2x128xf32> to vector<1x1x128xf32>
      %614 = vector.shape_cast %613 : vector<1x1x128xf32> to vector<1x128xf32>
      %615 = vector.broadcast %614 : vector<1x128xf32> to vector<8x128xf32>
      %616 = arith.mulf %612, %615 : vector<8x128xf32>
      %617 = vector.extract_strided_slice %610 {offsets = [0, 1, 0], sizes = [1, 1, 128], strides = [1, 1, 1]} : vector<2x2x128xf32> to vector<1x1x128xf32>
      %618 = vector.shape_cast %617 : vector<1x1x128xf32> to vector<1x128xf32>
      %619 = vector.broadcast %618 : vector<1x128xf32> to vector<8x128xf32>
      %620 = arith.mulf %596, %619 : vector<8x128xf32>
      %621 = arith.addf %616, %620 : vector<8x128xf32>
      %cst_213 = arith.constant 1.250000e-01 : f32
      %622 = vector.broadcast %cst_213 : f32 to vector<8x128xf32>
      %623 = arith.mulf %597, %622 : vector<8x128xf32>
      %624 = vector.extract_strided_slice %610 {offsets = [1, 0, 0], sizes = [1, 1, 128], strides = [1, 1, 1]} : vector<2x2x128xf32> to vector<1x1x128xf32>
      %625 = vector.shape_cast %624 : vector<1x1x128xf32> to vector<1x128xf32>
      %626 = vector.broadcast %625 : vector<1x128xf32> to vector<8x128xf32>
      %627 = arith.mulf %623, %626 : vector<8x128xf32>
      %628 = vector.extract_strided_slice %610 {offsets = [1, 1, 0], sizes = [1, 1, 128], strides = [1, 1, 1]} : vector<2x2x128xf32> to vector<1x1x128xf32>
      %629 = vector.shape_cast %628 : vector<1x1x128xf32> to vector<1x128xf32>
      %630 = vector.broadcast %629 : vector<1x128xf32> to vector<8x128xf32>
      %631 = arith.mulf %598, %630 : vector<8x128xf32>
      %632 = arith.addf %627, %631 : vector<8x128xf32>
      %cst_214 = arith.constant dense<0.000000e+00> : vector<8xf32>
      %633 = vector.multi_reduction <add>, %621, %cst_214 [1] : vector<8x128xf32> to vector<8xf32>
      %634 = vector.shape_cast %633 : vector<8xf32> to vector<8x1xf32>
      %cst_215 = arith.constant dense<0.000000e+00> : vector<8xf32>
      %635 = vector.multi_reduction <add>, %632, %cst_215 [1] : vector<8x128xf32> to vector<8xf32>
      %636 = vector.shape_cast %635 : vector<8xf32> to vector<8x1xf32>
      %637 = vector.shape_cast %634 : vector<8x1xf32> to vector<1x8x1xf32>
      %638 = vector.shape_cast %636 : vector<8x1xf32> to vector<1x8x1xf32>
      %639 = tpu.concatenate %637, %638 in 0 : vector<1x8x1xf32>, vector<1x8x1xf32> -> vector<2x8x1xf32>
      %c0_216 = arith.constant 0 : index
      %c0_217 = arith.constant 0 : index
      %c0_218 = arith.constant 0 : index
      %640 = vector.load %arg7[%c0_216, %c0_217, %c0_218] : memref<2x8x1xf32, #tpu.memory_space<vmem>>, vector<2x8x1xf32>
      tpu.vector_store %arg7[%c0_216, %c0_217, %c0_218], %639 {strides = array<i32>} : memref<2x8x1xf32, #tpu.memory_space<vmem>>, vector<2x8x1xf32>,
    } else {
    }
    return
  }
  func.func @transform_0(%arg0: i32) -> (i32, i32, i32) {
    %c0_i32 = arith.constant 0 : i32
    %c0_i32_0 = arith.constant 0 : i32
    %c0_i32_1 = arith.constant 0 : i32
    return %arg0, %c0_i32, %c0_i32_0 : i32, i32, i32
  }
  func.func @transform_1(%arg0: i32) -> (i32, i32, i32) {
    %c0_i32 = arith.constant 0 : i32
    %0 = arith.subi %c0_i32, %arg0 : i32
    %c0_i32_0 = arith.constant 0 : i32
    %c0_i32_1 = arith.constant 0 : i32
    %c0_i32_2 = arith.constant 0 : i32
    return %0, %c0_i32_0, %c0_i32_1 : i32, i32, i32
  }
  func.func @transform_2(%arg0: i32) -> (i32, i32, i32) {
    %c0_i32 = arith.constant 0 : i32
    %c0_i32_0 = arith.constant 0 : i32
    %c0_i32_1 = arith.constant 0 : i32
    %c0_i32_2 = arith.constant 0 : i32
    return %c0_i32, %c0_i32_0, %c0_i32_1 : i32, i32, i32
  }
  func.func @transform_3(%arg0: i32) -> (i32, i32, i32) {
    %c0_i32 = arith.constant 0 : i32
    %c0_i32_0 = arith.constant 0 : i32
    %c0_i32_1 = arith.constant 0 : i32
    %c0_i32_2 = arith.constant 0 : i32
    return %c0_i32, %c0_i32_0, %c0_i32_1 : i32, i32, i32
  }
  func.func @transform_4(%arg0: i32) -> (i32, i32, i32) {
    %c0_i32 = arith.constant 0 : i32
    %c0_i32_0 = arith.constant 0 : i32
    %c0_i32_1 = arith.constant 0 : i32
    %c0_i32_2 = arith.constant 0 : i32
    return %c0_i32, %c0_i32_0, %c0_i32_1 : i32, i32, i32
  }
  func.func @transform_5(%arg0: i32) -> (i32, i32, i32) {
    %c0_i32 = arith.constant 0 : i32
    %c0_i32_0 = arith.constant 0 : i32
    %c0_i32_1 = arith.constant 0 : i32
    %c0_i32_2 = arith.constant 0 : i32
    return %c0_i32, %c0_i32_0, %c0_i32_1 : i32, i32, i32
  }
  func.func @transform_6(%arg0: i32) -> (i32, i32, i32) {
    %c0_i32 = arith.constant 0 : i32
    %c0_i32_0 = arith.constant 0 : i32
    %c0_i32_1 = arith.constant 0 : i32
    %c0_i32_2 = arith.constant 0 : i32
    return %c0_i32, %c0_i32_0, %c0_i32_1 : i32, i32, i32
  }
}

</mosaic_0001>

<bundles_post_ra>
// kernel: tpu_custom_call.1
= control target key start
LH: loop header
LB: loop body
LE: loop exit
PB: predicated region body
PF: predicated region fallthrough
CT: control target
= control target key end

     0   :  { %11 = vsyncpa [#allocation13], 0  ;;  %s7029_s0 = inlined_call_operand.hbm [shape: bf16[1,64,64], index: 0, kind: input, shape index: {}]   ;;  %s7030_s1 = inlined_call_operand.hbm [shape: bf16[1,64,64], index: 1, kind: input, shape index: {}]   ;;  %s7031_s2 = inlined_call_operand.hbm [shape: bf16[2,64,512], index: 2, kind: input, shape index: {}]   ;;  %s7032_s3 = inlined_call_operand.hbm [shape: f32[2,128,512], index: 3, kind: input, shape index: {}]   ;;  %s7033_s4 = inlined_call_operand.hbm [shape: f32[2,1,512], index: 4, kind: input, shape index: {}]   ;;  %s7034_s5 = inlined_call_operand.vmem [shape: f32[2,2,128], index: 5, kind: input, shape index: {}]   ;;  %s7035_s6 = inlined_call_operand.vmem [shape: f32[2,8,1], index: 6, kind: output, shape index: {}]  }
   0x1   :  { %12 = vsyncpa [#allocation15], 0 }
   0x2   :  { %13 = vsyncpa [#allocation18], 0  ;;  %s4635_s21 = smov [#allocation14]   ;;  %s4636_s23 = smov [#allocation17]  }
   0x3   :  { %s35_s22 = sshll.u32 %s4635_s21, 4  ;;  %s59_s24 = sshll.u32 %s4636_s23, 4  ;;  %s36_s22 = int_to_ptr.vmem [resolvable:$true] %s35_s22  ;;  %s60_s24 = int_to_ptr.vmem [resolvable:$true] %s59_s24 }
   0x4   :  { %s4537_s25 = scalar_lea.vmem %s36_s22, 512  ;;  %p4542_p1 = scmp.lt.s32.totalorder %s36_s22, %s36_s22 }
   0x5   :  { %p4538_p0 = scmp.ne.s32.totalorder %s36_s22, %s4537_s25  ;;  %p4543_p2 = scmp.lt.s32.totalorder %s4537_s25, %s4537_s25 }
   0x7   :  { %p4544_p3 = por %p4543_p2, %p4542_p1 }
   0x9   :  { %p4545_p4 = pnand %p4544_p3, %p4538_p0 }
   0xb   :  { %4548 = shalt.err (!%p4545_p4)
}
   0xc   :  { %s4637_s26 = smov 64   ;;  %s4638_s27 = smov 4  }
   0xd   :  { %41 = dma.hbm_to_vmem [thread:$0]  %s7030_s1, 512, %s36_s22, [#allocation15], %s4637_s26, %s4637_s26, %s4638_s27  }
   0xe   :  { %s4557_s30 = scalar_lea.vmem %s60_s24, 16384  ;;  %p4562_p6 = scmp.lt.s32.totalorder %s60_s24, %s60_s24 }
   0xf   :  { %p4558_p5 = scmp.ne.s32.totalorder %s60_s24, %s4557_s30  ;;  %p4563_p7 = scmp.lt.s32.totalorder %s4557_s30, %s4557_s30 }
  0x11   :  { %p4564_p8 = por %p4563_p7, %p4562_p6 }
  0x13   :  { %p4565_p9 = pnand %p4564_p8, %p4558_p5 }
  0x15   :  { %4568 = shalt.err (!%p4565_p9)
}
  0x16   :  { %s4639_s7 = smov 512   ;;  %s4640_s8 = smov 32  }
  0x17   :  { %65 = dma.hbm_to_vmem [thread:$0]  %s7032_s3, 16384, %s60_s24, [#allocation18], %s4639_s7, %s4639_s7, %s4640_s8  }
  0x18   :  { %s4641_s11 = smov [#allocation12]   ;;  %s4642_s13 = smov [#allocation16]  }
  0x19   :  { %s19_s12 = sshll.u32 %s4641_s11, 4  ;;  %s47_s14 = sshll.u32 %s4642_s13, 4  ;;  %s20_s12 = int_to_ptr.vmem [resolvable:$true] %s19_s12  ;;  %s48_s14 = int_to_ptr.vmem [resolvable:$true] %s47_s14 }
  0x1a   :  { %s4577_s1 = scalar_lea.vmem %s20_s12, 512  ;;  %p4582_p11 = scmp.lt.s32.totalorder %s20_s12, %s20_s12 }
  0x1b   :  { %p4578_p10 = scmp.ne.s32.totalorder %s20_s12, %s4577_s1  ;;  %p4583_p12 = scmp.lt.s32.totalorder %s4577_s1, %s4577_s1 }
  0x1d   :  { %p4584_p13 = por %p4583_p12, %p4582_p11 }
  0x1f   :  { %p4585_p0 = pnand %p4584_p13, %p4578_p10 }
  0x21   :  { %4588 = shalt.err (!%p4585_p0)
}
  0x22   :  { %25 = dma.hbm_to_vmem [thread:$0]  %s7029_s0, 512, %s20_s12, [#allocation13], %s4637_s26, %s4637_s26, %s4638_s27  }
  0x23   :  { %s4597_s3 = scalar_lea.vmem %s48_s14, 4096  ;;  %p4602_p2 = scmp.lt.s32.totalorder %s48_s14, %s48_s14 }
  0x24   :  { %p4598_p1 = scmp.ne.s32.totalorder %s48_s14, %s4597_s3  ;;  %p4603_p3 = scmp.lt.s32.totalorder %s4597_s3, %s4597_s3 }
  0x26   :  { %p4604_p4 = por %p4603_p3, %p4602_p2 }
  0x28   :  { %p4605_p5 = pnand %p4604_p4, %p4598_p1 }
  0x2a   :  { %4608 = shalt.err (!%p4605_p5)
}
  0x2b   :  { %s4643_s17 = smov 256   ;;  %s4644_s18 = smov 16  }
  0x2c   :  { %53 = dma.hbm_to_vmem [thread:$0]  %s7031_s2, 4096, %s48_s14, [#allocation15], %s4643_s17, %s4643_s17, %s4644_s18  }
  0x2d   :  { %s4645_s21 = smov [#allocation19]  }
  0x2e   :  { %s71_s22 = sshll.u32 %s4645_s21, 4  ;;  %s72_s22 = int_to_ptr.vmem [resolvable:$true] %s71_s22 }
  0x2f   :  { %s4617_s23 = scalar_lea.vmem %s72_s22, 128  ;;  %p4622_p7 = scmp.lt.s32.totalorder %s72_s22, %s72_s22 }
  0x30   :  { %p4618_p6 = scmp.ne.s32.totalorder %s72_s22, %s4617_s23  ;;  %p4623_p8 = scmp.lt.s32.totalorder %s4617_s23, %s4617_s23 }
  0x32   :  { %p4624_p9 = por %p4623_p8, %p4622_p7 }
  0x34   :  { %p4625_p10 = pnand %p4624_p9, %p4618_p6 }
  0x36   :  { %4628 = shalt.err (!%p4625_p10)
}
  0x37   :  { %77 = dma.hbm_to_vmem [thread:$0]  %s7033_s4, 128, %s72_s22, [#allocation18], %s4637_s26, %s4637_s26, %s4638_s27  }
  0x38   :  { %4629 = dma.done.wait [#allocation13], 512  }
  0x39   :  { %4630 = vsyncadd [#allocation13], 4294966784 }
  0x3a   :  { %4631 = dma.done.wait [#allocation15], 4608  }
  0x3b   :  { %4632 = vsyncadd [#allocation15], 4294962688 }
  0x3c   :  { %4633 = dma.done.wait [#allocation18], 16512  }
  0x3d   :  { %4634 = vsyncadd [#allocation18], 4294950784  ;;  %v4646_v0 = vmov 0   ;;  %v3961_v1 = vld [vmem:[#allocation16 + $0x64] ss:$16 sps:$4 sm:$0xff]   ;;  %vm255_vm0 = vcmask 523264  }
  0x3e   :  { %300 = vmatprep.mubr.bf16.mxu0 %v4646_v0  ;;  %373 = vmatprep.mubr.bf16.mxu1 %v4646_v0  ;;  %v3963_v2 = vld [vmem:[#allocation16 + $0x6c] ss:$16 sps:$4 sm:$0xff]   ;;  %v3965_v3 = vld [vmem:[#allocation16 + $0x60] ss:$16 sps:$4 sm:$0xff]   ;;  %v3966_v4 = vld [vmem:[#allocation16 + $0x68] ss:$16 sps:$4 sm:$0xff]  }
  0x3f   :  { %276 = vmatprep.subr.bf16.mxu0 %v3961_v1  ;;  %349 = vmatprep.subr.bf16.mxu1 %v3963_v2  ;;  %v3967_v5 = vld [vmem:[#allocation16 + $0x44] ss:$16 sps:$4 sm:$0xff]   ;;  %v3969_v6 = vld [vmem:[#allocation16 + $0x4c] ss:$16 sps:$4 sm:$0xff]   ;;  %v3971_v7 = vld [vmem:[#allocation16 + $0x40] ss:$16 sps:$4 sm:$0xff]  }
  0x40   :  { %277 = vmatpush1.bf16.msra.mxu0 %v3965_v3  ;;  %350 = vmatpush1.bf16.msra.mxu1 %v3966_v4  ;;  %v3972_v8 = vld [vmem:[#allocation16 + $0x48] ss:$16 sps:$4 sm:$0xff]   ;;  %v3973_v9 = vld [vmem:[#allocation16 + $0x24] ss:$16 sps:$4 sm:$0xff]   ;;  %v3975_v10 = vld [vmem:[#allocation16 + $0x2c] ss:$16 sps:$4 sm:$0xff]  }
  0x41   :  { %278 = vmatprep.subr.bf16.mxu0 %v3967_v5  ;;  %351 = vmatprep.subr.bf16.mxu1 %v3969_v6  ;;  %v3977_v11 = vld [vmem:[#allocation16 + $0x20] ss:$16 sps:$4 sm:$0xff]   ;;  %v3978_v12 = vld [vmem:[#allocation16 + $0x28] ss:$16 sps:$4 sm:$0xff]   ;;  %v3979_v13 = vld [vmem:[#allocation16 + $0x4] ss:$16 sps:$4 sm:$0xff]  }
  0x42   :  { %v3981_v14 = vld [vmem:[#allocation16 + $0xc] ss:$16 sps:$4 sm:$0xff]   ;;  %v3983_v15 = vld [vmem:[#allocation16] ss:$16 sps:$4 sm:$0xff]   ;;  %v3984_v16 = vld [vmem:[#allocation16 + $0x8] ss:$16 sps:$4 sm:$0xff]  }
  0x43   :  { %v3988_v17 = vld [vmem:[#allocation16 + $0xe4] ss:$16 sps:$4 sm:$0xff]   ;;  %v3986_v19 = vld [vmem:[#allocation16 + $0xe0] ss:$16 sps:$4 sm:$0xff]   ;;  %v3995_v20 = vld [vmem:[#allocation16 + $0xec] ss:$16 sps:$4 sm:$0xff]  }
  0x44   :  { %279 = vmatpush1.bf16.msra.mxu0 %v3971_v7  ;;  %352 = vmatpush1.bf16.msra.mxu1 %v3972_v8  ;;  %v3985_v18 = vld [vmem:[#allocation12] sm:$0xff]   ;;  %v3993_v22 = vld [vmem:[#allocation16 + $0xe8] ss:$16 sps:$4 sm:$0xff]   ;;  %v4002_v24 = vld [vmem:[#allocation16 + $0xcc] ss:$16 sps:$4 sm:$0xff]   ;;  %vm3818_vm1 = vcmask 7168  }
  0x45   :  { %280 = vmatprep.subr.bf16.mxu0 %v3973_v9  ;;  %353 = vmatprep.subr.bf16.mxu1 %v3975_v10  ;;  %v3992_v21 = vld [vmem:[#allocation16 + $0xc4] ss:$16 sps:$4 sm:$0xff]   ;;  %v3990_v23 = vld [vmem:[#allocation16 + $0xc0] ss:$16 sps:$4 sm:$0xff]   ;;  %v4000_v26 = vld [vmem:[#allocation16 + $0xc8] ss:$16 sps:$4 sm:$0xff]  }
  0x46   :  { %v3999_v25 = vld [vmem:[#allocation16 + $0xa4] ss:$16 sps:$4 sm:$0xff]   ;;  %v3989_v27 = vld [vmem:[#allocation12 + $0x8] sm:$0xff]   ;;  %v3997_v28 = vld [vmem:[#allocation16 + $0xa0] ss:$16 sps:$4 sm:$0xff]  }
  0x47   :  { %v4003_v29 = vld [vmem:[#allocation16 + $0xa8] ss:$16 sps:$4 sm:$0xff]   ;;  %v4005_v30 = vld [vmem:[#allocation16 + $0xac] ss:$16 sps:$4 sm:$0xff]   ;;  %v4009_v31 = vld [vmem:[#allocation16 + $0x84] ss:$16 sps:$4 sm:$0xff]  }
  0x48   :  { %281 = vmatpush1.bf16.msra.mxu0 %v3977_v11  ;;  %354 = vmatpush1.bf16.msra.mxu1 %v3978_v12  ;;  %v4012_v32 = vld [vmem:[#allocation16 + $0x8c] ss:$16 sps:$4 sm:$0xff]   ;;  %v4007_v33 = vld [vmem:[#allocation16 + $0x80] ss:$16 sps:$4 sm:$0xff]   ;;  %v4010_v34 = vld [vmem:[#allocation16 + $0x88] ss:$16 sps:$4 sm:$0xff]  }
  0x49   :  { %282 = vmatprep.subr.bf16.mxu0 %v3979_v13  ;;  %355 = vmatprep.subr.bf16.mxu1 %v3981_v14  ;;  %v3996_v35 = vld [vmem:[#allocation12 + $0x10] sm:$0xff]   ;;  %v4717_v36 = vld [vmem:[#allocation17 + $0x1e8] sm:$0xff]  ;;  %v4720_v37 = vld [vmem:[#allocation17 + $0x1f8] sm:$0xff] }
  0x4a   :  { %v4006_v38 = vld [vmem:[#allocation12 + $0x18] sm:$0xff]   ;;  %v4013_v39 = vld [vmem:[#allocation14] sm:$0xff]   ;;  %v4733_v41 = vld [vmem:[#allocation17 + $0x1f0] sm:$0xff] }
  0x4b   :  { %v4731_v40 = vld [vmem:[#allocation17 + $0x1e0] sm:$0xff]  ;;  %v4735_v42 = vld [vmem:[#allocation17 + $0x1c8] sm:$0xff]  ;;  %v4737_v43 = vld [vmem:[#allocation17 + $0x1d8] sm:$0xff] }
  0x4c   :  { %283 = vmatpush1.bf16.msra.mxu0 %v3983_v15  ;;  %356 = vmatpush1.bf16.msra.mxu1 %v3984_v16  ;;  %v4741_v44 = vld [vmem:[#allocation17 + $0x1c0] sm:$0xff]  ;;  %v4743_v45 = vld [vmem:[#allocation17 + $0x1d0] sm:$0xff]  ;;  %v4747_v46 = vld [vmem:[#allocation17 + $0x1a8] sm:$0xff] }
  0x4d   :  { %614 = vmatprep.subr.bf16.mxu0 %v3988_v17  ;;  %687 = vmatprep.subr.bf16.mxu1 %v3995_v20  ;;  %v4749_v47 = vld [vmem:[#allocation17 + $0x1b8] sm:$0xff]  ;;  %v4753_v48 = vld [vmem:[#allocation17 + $0x1a0] sm:$0xff]  ;;  %v4755_v49 = vld [vmem:[#allocation17 + $0x1b0] sm:$0xff] }
  0x4e   :  { %v4759_v50 = vld [vmem:[#allocation17 + $0x188] sm:$0xff]  ;;  %v4761_v51 = vld [vmem:[#allocation17 + $0x198] sm:$0xff]  ;;  %v4765_v52 = vld [vmem:[#allocation17 + $0x180] sm:$0xff] }
  0x4f   :  { %3864 = vmatmul.mubr.msk.bf16.vlgmr.msra.gmra.mxu0 %vm255_vm0, %v3985_v18  ;;  %3868 = vmatmul.mubr.msk.bf16.vlgmr.msra.gmra.mxu1 %vm255_vm0, %v3985_v18  ;;  %v4767_v53 = vld [vmem:[#allocation17 + $0x190] sm:$0xff]  ;;  %v4773_v54 = vld [vmem:[#allocation17 + $0x168] sm:$0xff]  ;;  %v4775_v55 = vld [vmem:[#allocation17 + $0x178] sm:$0xff] }
  0x50   :  { %615 = vmatpush1.bf16.msra.mxu0 %v3986_v19  ;;  %310 = vmatprep.mubr.bf16.mxu0 %v4646_v0  ;;  %v4014_v56 = vld [vmem:[#allocation14 + $0x8] sm:$0xff]   ;;  %v4781_v57 = vld [vmem:[#allocation17 + $0x160] sm:$0xff]  ;;  %v4783_v58 = vld [vmem:[#allocation17 + $0x170] sm:$0xff] }
  0x51   :  { %383 = vmatprep.mubr.bf16.mxu1 %v4646_v0  ;;  %616 = vmatprep.subr.bf16.mxu0 %v3992_v21  ;;  %v4787_v59 = vld [vmem:[#allocation17 + $0x148] sm:$0xff]  ;;  %v4789_v60 = vld [vmem:[#allocation17 + $0x158] sm:$0xff]  ;;  %v4793_v61 = vld [vmem:[#allocation17 + $0x140] sm:$0xff] }
  0x52   :  { %688 = vmatpush1.bf16.msra.mxu1 %v3993_v22  ;;  %v4795_v62 = vld [vmem:[#allocation17 + $0x150] sm:$0xff]  ;;  %v4799_v63 = vld [vmem:[#allocation17 + $0x128] sm:$0xff]  ;;  %v4801_v1 = vld [vmem:[#allocation17 + $0x138] sm:$0xff] }
  0x53   :  { %689 = vmatprep.subr.bf16.mxu1 %v4002_v24  ;;  %v4805_v2 = vld [vmem:[#allocation17 + $0x120] sm:$0xff]  ;;  %v4807_v3 = vld [vmem:[#allocation17 + $0x130] sm:$0xff]  ;;  %v4811_v4 = vld [vmem:[#allocation17 + $0x108] sm:$0xff] }
  0x54   :  { %617 = vmatpush1.bf16.msra.mxu0 %v3990_v23  ;;  %v4813_v5 = vld [vmem:[#allocation17 + $0x118] sm:$0xff]  ;;  %v4817_v6 = vld [vmem:[#allocation17 + $0x100] sm:$0xff]  ;;  %v4819_v7 = vld [vmem:[#allocation17 + $0x110] sm:$0xff] }
  0x55   :  { %618 = vmatprep.subr.bf16.mxu0 %v3999_v25  ;;  %v4825_v8 = vld [vmem:[#allocation17 + $0xe8] sm:$0xff]  ;;  %v4827_v9 = vld [vmem:[#allocation17 + $0xf8] sm:$0xff]  ;;  %v4015_v10 = vld [vmem:[#allocation14 + $0x10] sm:$0xff]  }
  0x56   :  { %690 = vmatpush1.bf16.msra.mxu1 %v4000_v26  ;;  %v4833_v11 = vld [vmem:[#allocation17 + $0xe0] sm:$0xff]  ;;  %v4835_v12 = vld [vmem:[#allocation17 + $0xf0] sm:$0xff]  ;;  %v4839_v13 = vld [vmem:[#allocation17 + $0xc8] sm:$0xff] }
  0x57   :  { %3865 = vmatmul.mubr.msk.bf16.gmra.mxu0 %vm255_vm0, %v3989_v27  ;;  %3869 = vmatmul.mubr.msk.bf16.gmra.mxu1 %vm255_vm0, %v3989_v27  ;;  %v4841_v14 = vld [vmem:[#allocation17 + $0xd8] sm:$0xff]  ;;  %v4845_v15 = vld [vmem:[#allocation17 + $0xc0] sm:$0xff]  ;;  %v4847_v16 = vld [vmem:[#allocation17 + $0xd0] sm:$0xff] }
  0x58   :  { %320 = vmatprep.mubr.bf16.mxu0 %v4646_v0  ;;  %393 = vmatprep.mubr.bf16.mxu1 %v4646_v0  ;;  %v4851_v17 = vld [vmem:[#allocation17 + $0xa8] sm:$0xff]  ;;  %v4853_v18 = vld [vmem:[#allocation17 + $0xb8] sm:$0xff]  ;;  %v4857_v19 = vld [vmem:[#allocation17 + $0xa0] sm:$0xff] }
  0x59   :  { %619 = vmatpush1.bf16.msra.mxu0 %v3997_v28  ;;  %691 = vmatprep.subr.bf16.mxu1 %v4005_v30  ;;  %v4859_v20 = vld [vmem:[#allocation17 + $0xb0] sm:$0xff]  ;;  %v4863_v21 = vld [vmem:[#allocation17 + $0x88] sm:$0xff]  ;;  %v4865_v22 = vld [vmem:[#allocation17 + $0x98] sm:$0xff] }
  0x5a   :  { %620 = vmatprep.subr.bf16.mxu0 %v4009_v31  ;;  %692 = vmatpush1.bf16.msra.mxu1 %v4003_v29  ;;  %v4869_v23 = vld [vmem:[#allocation17 + $0x80] sm:$0xff]  ;;  %v4871_v24 = vld [vmem:[#allocation17 + $0x90] sm:$0xff]  ;;  %v4877_v25 = vld [vmem:[#allocation17 + $0x68] sm:$0xff] }
  0x5b   :  { %693 = vmatprep.subr.bf16.mxu1 %v4012_v32  ;;  %v4879_v26 = vld [vmem:[#allocation17 + $0x78] sm:$0xff]  ;;  %v4885_v28 = vld [vmem:[#allocation17 + $0x60] sm:$0xff]  ;;  %v4887_v29 = vld [vmem:[#allocation17 + $0x70] sm:$0xff] }
  0x5c   :  { %v4016_v27 = vld [vmem:[#allocation14 + $0x18] sm:$0xff]   ;;  %v4891_v30 = vld [vmem:[#allocation17 + $0x48] sm:$0xff]  ;;  %v4897_v32 = vld [vmem:[#allocation17 + $0x40] sm:$0xff] }
  0x5d   :  { %621 = vmatpush1.bf16.msra.mxu0 %v4007_v33  ;;  %v4893_v31 = vld [vmem:[#allocation17 + $0x58] sm:$0xff]  ;;  %7444 = vst [vmem:[#allocation24_spill] sm:$0xff] %v4897_v32  ;;  %v4899_v33 = vld [vmem:[#allocation17 + $0x50] sm:$0xff] }
  0x5e   :  { %694 = vmatpush1.bf16.msra.mxu1 %v4010_v34  ;;  %863 = vmatprep.subr.mxu0 %v4717_v36  ;;  %7443 = vst [vmem:[#allocation23_spill] sm:$0xff] %v4893_v31  ;;  %7445 = vst [vmem:[#allocation25_spill] sm:$0xff] %v4899_v33  ;;  %v4905_v34 = vld [vmem:[#allocation17 + $0x38] sm:$0xff] }
  0x5f   :  { %3866 = vmatmul.mubr.msk.bf16.gmra.mxu0 %vm255_vm0, %v3996_v35  ;;  %3870 = vmatmul.mubr.msk.bf16.gmra.mxu1 %vm255_vm0, %v3996_v35  ;;  %7447 = vst [vmem:[#allocation27_spill] sm:$0xff] %v4905_v34  ;;  %v4909_v35 = vld [vmem:[#allocation17 + $0x20] sm:$0xff] }
  0x60   :  { %330 = vmatprep.mubr.bf16.mxu0 %v4646_v0  ;;  %403 = vmatprep.mubr.bf16.mxu1 %v4646_v0  ;;  %7448 = vst [vmem:[#allocation28_spill] sm:$0xff] %v4909_v35 }
  0x61   :  { %934 = vmatprep.subr.mxu1 %v4720_v37 }
  0x67   :  { %3867 = vmatmul.mubr.msk.bf16.gmra.mxu0 %vm255_vm0, %v4006_v38  ;;  %3871 = vmatmul.mubr.msk.bf16.gmra.mxu1 %vm255_vm0, %v4006_v38  ;;  %v4911_v38 = vld [vmem:[#allocation17 + $0x30] sm:$0xff] }
  0x68   :  { %638 = vmatprep.mubr.bf16.mxu0 %v4646_v0  ;;  %711 = vmatprep.mubr.bf16.mxu1 %v4646_v0  ;;  %7449 = vst [vmem:[#allocation29_spill] sm:$0xff] %v4911_v38 }
  0x6f   :  { %3892 = vmatmul.mubr.msk.bf16.vlgmr.msra.gmra.mxu0 %vm255_vm0, %v4013_v39  ;;  %3896 = vmatmul.mubr.msk.bf16.vlgmr.msra.gmra.mxu1 %vm255_vm0, %v4013_v39  ;;  %v4915_v39 = vld [vmem:[#allocation17 + $0x8] sm:$0xff] }
  0x70   :  { %864 = vmatpush1.msra.mxu0 %v4731_v40  ;;  %935 = vmatpush1.msra.mxu1 %v4733_v41  ;;  %7450 = vst [vmem:[#allocation30_spill] sm:$0xff] %v4915_v39 }
  0x71   :  { %865 = vmatprep.subr.mxu0 %v4735_v42  ;;  %936 = vmatprep.subr.mxu1 %v4737_v43 }
  0x72   :  { %866 = vmatpush1.msra.mxu0 %v4741_v44  ;;  %937 = vmatpush1.msra.mxu1 %v4743_v45 }
  0x73   :  { %867 = vmatprep.subr.mxu0 %v4747_v46  ;;  %938 = vmatprep.subr.mxu1 %v4749_v47 }
  0x74   :  { %868 = vmatpush1.msra.mxu0 %v4753_v48  ;;  %939 = vmatpush1.msra.mxu1 %v4755_v49 }
  0x75   :  { %869 = vmatprep.subr.mxu0 %v4759_v50  ;;  %940 = vmatprep.subr.mxu1 %v4761_v51 }
  0x76   :  { %870 = vmatpush1.msra.mxu0 %v4765_v52  ;;  %941 = vmatpush1.msra.mxu1 %v4767_v53 }
  0x77   :  { %648 = vmatprep.mubr.bf16.mxu0 %v4646_v0  ;;  %721 = vmatprep.mubr.bf16.mxu1 %v4646_v0 }
  0x78   :  { %871 = vmatprep.subr.mxu0 %v4773_v54  ;;  %942 = vmatprep.subr.mxu1 %v4775_v55 }
  0x79   :  { %3893 = vmatmul.mubr.msk.bf16.gmra.mxu0 %vm255_vm0, %v4014_v56  ;;  %3897 = vmatmul.mubr.msk.bf16.gmra.mxu1 %vm255_vm0, %v4014_v56  ;;  %v4917_v56 = vld [vmem:[#allocation17 + $0x18] sm:$0xff] }
  0x7a   :  { %872 = vmatpush1.msra.mxu0 %v4781_v57  ;;  %943 = vmatpush1.msra.mxu1 %v4783_v58  ;;  %7451 = vst [vmem:[#allocation31_spill] sm:$0xff] %v4917_v56 }
  0x7b   :  { %873 = vmatprep.subr.mxu0 %v4787_v59  ;;  %944 = vmatprep.subr.mxu1 %v4789_v60 }
  0x7c   :  { %874 = vmatpush1.msra.mxu0 %v4793_v61  ;;  %945 = vmatpush1.msra.mxu1 %v4795_v62 }
  0x7d   :  { %875 = vmatprep.subr.mxu0 %v4799_v63  ;;  %946 = vmatprep.subr.mxu1 %v4801_v1 }
  0x7e   :  { %876 = vmatpush1.msra.mxu0 %v4805_v2  ;;  %947 = vmatpush1.msra.mxu1 %v4807_v3 }
  0x7f   :  { %877 = vmatprep.subr.mxu0 %v4811_v4  ;;  %948 = vmatprep.subr.mxu1 %v4813_v5 }
  0x80   :  { %878 = vmatpush1.msra.mxu0 %v4817_v6  ;;  %949 = vmatpush1.msra.mxu1 %v4819_v7 }
  0x81   :  { %658 = vmatprep.mubr.bf16.mxu0 %v4646_v0  ;;  %731 = vmatprep.mubr.bf16.mxu1 %v4646_v0 }
  0x82   :  { %879 = vmatprep.subr.mxu0 %v4825_v8  ;;  %950 = vmatprep.subr.mxu1 %v4827_v9 }
  0x83   :  { %3894 = vmatmul.mubr.msk.bf16.gmra.mxu0 %vm255_vm0, %v4015_v10  ;;  %3898 = vmatmul.mubr.msk.bf16.gmra.mxu1 %vm255_vm0, %v4015_v10  ;;  %v4921_v10 = vld [vmem:[#allocation17] sm:$0xff] }
  0x84   :  { %880 = vmatpush1.msra.mxu0 %v4833_v11  ;;  %951 = vmatpush1.msra.mxu1 %v4835_v12  ;;  %7452 = vst [vmem:[#allocation32_spill] sm:$0xff] %v4921_v10 }
  0x85   :  { %881 = vmatprep.subr.mxu0 %v4839_v13  ;;  %952 = vmatprep.subr.mxu1 %v4841_v14 }
  0x86   :  { %882 = vmatpush1.msra.mxu0 %v4845_v15  ;;  %953 = vmatpush1.msra.mxu1 %v4847_v16 }
  0x87   :  { %883 = vmatprep.subr.mxu0 %v4851_v17  ;;  %954 = vmatprep.subr.mxu1 %v4853_v18 }
  0x88   :  { %884 = vmatpush1.msra.mxu0 %v4857_v19  ;;  %955 = vmatpush1.msra.mxu1 %v4859_v20 }
  0x89   :  { %885 = vmatprep.subr.mxu0 %v4863_v21  ;;  %956 = vmatprep.subr.mxu1 %v4865_v22 }
  0x8a   :  { %886 = vmatpush1.msra.mxu0 %v4869_v23  ;;  %957 = vmatpush1.msra.mxu1 %v4871_v24 }
  0x8b   :  { %668 = vmatprep.mubr.bf16.mxu0 %v4646_v0  ;;  %741 = vmatprep.mubr.bf16.mxu1 %v4646_v0  ;;  %v4903_v0 = vld [vmem:[#allocation17 + $0x28] sm:$0xff] }
  0x8c   :  { %887 = vmatprep.subr.mxu0 %v4877_v25  ;;  %958 = vmatprep.subr.mxu1 %v4879_v26  ;;  %7446 = vst [vmem:[#allocation26_spill] sm:$0xff] %v4903_v0 }
  0x8d   :  { %3895 = vmatmul.mubr.msk.bf16.gmra.mxu0 %vm255_vm0, %v4016_v27  ;;  %3899 = vmatmul.mubr.msk.bf16.gmra.mxu1 %vm255_vm0, %v4016_v27  ;;  %v4923_v27 = vld [vmem:[#allocation17 + $0x10] sm:$0xff] }
  0x8e   :  { %888 = vmatpush1.msra.mxu0 %v4885_v28  ;;  %959 = vmatpush1.msra.mxu1 %v4887_v29  ;;  %7453 = vst [vmem:[#allocation33_spill] sm:$0xff] %v4923_v27 }
  0x8f   :  { %889 = vmatprep.subr.mxu0 %v4891_v30  ;;  %960 = vmatprep.subr.mxu1 %v4893_v31  ;;  %v4963_v31 = vld [vmem:[#allocation17 + $0x3b0] sm:$0xff] }
  0x90   :  { %890 = vmatpush1.msra.mxu0 %v4897_v32  ;;  %961 = vmatpush1.msra.mxu1 %v4899_v33  ;;  %v4929_v33 = vld [vmem:[#allocation17 + $0x3e8] sm:$0xff]  ;;  %v4931_v32 = vld [vmem:[#allocation17 + $0x3f8] sm:$0xff]  ;;  %7465 = vst [vmem:[#allocation45_spill] sm:$0xff] %v4963_v31 }
  0x91   :  { %891 = vmatprep.subr.mxu0 %v4903_v0  ;;  %962 = vmatprep.subr.mxu1 %v4905_v34  ;;  %7454 = vst [vmem:[#allocation34_spill] sm:$0xff] %v4929_v33  ;;  %7455 = vst [vmem:[#allocation35_spill] sm:$0xff] %v4931_v32  ;;  %v7049_v34 = vmov 0.0   ;;  %v4955_v0 = vld [vmem:[#allocation17 + $0x3a8] sm:$0xff] }
  0x92   :  { %892 = vmatpush1.msra.mxu0 %v4909_v35  ;;  %963 = vmatpush1.msra.mxu1 %v4911_v38  ;;  %v4937_v35 = vld [vmem:[#allocation17 + $0x3e0] sm:$0xff]  ;;  %v4939_v38 = vld [vmem:[#allocation17 + $0x3f0] sm:$0xff]  ;;  %7462 = vst [vmem:[#allocation42_spill] sm:$0xff] %v4955_v0 }
  0x93   :  { %893 = vmatprep.subr.mxu0 %v4915_v39  ;;  %964 = vmatprep.subr.mxu1 %v4917_v56  ;;  %7456 = vst [vmem:[#allocation36_spill] sm:$0xff] %v4937_v35  ;;  %7457 = vst [vmem:[#allocation37_spill] sm:$0xff] %v4939_v38  ;;  %v4943_v56 = vld [vmem:[#allocation17 + $0x3c8] sm:$0xff]  ;;  %v4945_v39 = vld [vmem:[#allocation17 + $0x3d8] sm:$0xff] }
  0x94   :  { %894 = vmatpush1.msra.mxu0 %v4921_v10  ;;  %965 = vmatpush1.msra.mxu1 %v4923_v27  ;;  %7458 = vst [vmem:[#allocation38_spill] sm:$0xff] %v4943_v56  ;;  %7459 = vst [vmem:[#allocation39_spill] sm:$0xff] %v4945_v39  ;;  %v4949_v27 = vld [vmem:[#allocation17 + $0x3c0] sm:$0xff]  ;;  %v4951_v10 = vld [vmem:[#allocation17 + $0x3d0] sm:$0xff] }
  0x95   :  { %927 = vmatprep.mubr.f32.mxu0 %v7049_v34  ;;  %998 = vmatprep.mubr.f32.mxu1 %v7049_v34  ;;  %7460 = vst [vmem:[#allocation40_spill] sm:$0xff] %v4949_v27  ;;  %7461 = vst [vmem:[#allocation41_spill] sm:$0xff] %v4951_v10 }
  0x96   :  { %1081 = vmatprep.subr.mxu0 %v4929_v33  ;;  %1152 = vmatprep.subr.mxu1 %v4931_v32  ;;  %v4957_v33 = vld [vmem:[#allocation17 + $0x3b8] sm:$0xff]  ;;  %v4961_v32 = vld [vmem:[#allocation17 + $0x3a0] sm:$0xff] }
  0x97   :  { %928 = vmatmul.mubr.f32.vlgmr.msra.gmra.mxu0 %v7049_v34  ;;  %999 = vmatmul.mubr.f32.vlgmr.msra.gmra.mxu1 %v7049_v34  ;;  %7463 = vst [vmem:[#allocation43_spill] sm:$0xff] %v4957_v33  ;;  %7464 = vst [vmem:[#allocation44_spill] sm:$0xff] %v4961_v32  ;;  %v4967_v34 = vld [vmem:[#allocation17 + $0x388] sm:$0xff] }
  0x98   :  { %1082 = vmatpush1.msra.mxu0 %v4937_v35  ;;  %1153 = vmatpush1.msra.mxu1 %v4939_v38  ;;  %7466 = vst [vmem:[#allocation46_spill] sm:$0xff] %v4967_v34  ;;  %v4969_v35 = vld [vmem:[#allocation17 + $0x398] sm:$0xff]  ;;  %v4973_v38 = vld [vmem:[#allocation17 + $0x380] sm:$0xff] }
  0x99   :  { %1083 = vmatprep.subr.mxu0 %v4943_v56  ;;  %1154 = vmatprep.subr.mxu1 %v4945_v39  ;;  %7467 = vst [vmem:[#allocation47_spill] sm:$0xff] %v4969_v35  ;;  %7468 = vst [vmem:[#allocation48_spill] sm:$0xff] %v4973_v38  ;;  %v4975_v56 = vld [vmem:[#allocation17 + $0x390] sm:$0xff]  ;;  %v4979_v39 = vld [vmem:[#allocation17 + $0x368] sm:$0xff] }
  0x9a   :  { %1084 = vmatpush1.msra.mxu0 %v4949_v27  ;;  %1155 = vmatpush1.msra.mxu1 %v4951_v10  ;;  %7469 = vst [vmem:[#allocation49_spill] sm:$0xff] %v4975_v56  ;;  %7470 = vst [vmem:[#allocation50_spill] sm:$0xff] %v4979_v39  ;;  %v4981_v27 = vld [vmem:[#allocation17 + $0x378] sm:$0xff]  ;;  %v4985_v10 = vld [vmem:[#allocation17 + $0x360] sm:$0xff] }
  0x9b   :  { %1085 = vmatprep.subr.mxu0 %v4955_v0  ;;  %1156 = vmatprep.subr.mxu1 %v4957_v33  ;;  %7471 = vst [vmem:[#allocation51_spill] sm:$0xff] %v4981_v27  ;;  %7472 = vst [vmem:[#allocation52_spill] sm:$0xff] %v4985_v10  ;;  %v4987_v0 = vld [vmem:[#allocation17 + $0x370] sm:$0xff]  ;;  %v4991_v33 = vld [vmem:[#allocation17 + $0x348] sm:$0xff] }
  0x9c   :  { %1086 = vmatpush1.msra.mxu0 %v4961_v32  ;;  %1157 = vmatpush1.msra.mxu1 %v4963_v31  ;;  %7473 = vst [vmem:[#allocation53_spill] sm:$0xff] %v4987_v0  ;;  %7474 = vst [vmem:[#allocation54_spill] sm:$0xff] %v4991_v33  ;;  %v4993_v32 = vld [vmem:[#allocation17 + $0x358] sm:$0xff]  ;;  %v4997_v31 = vld [vmem:[#allocation17 + $0x340] sm:$0xff] }
  0x9d   :  { %1087 = vmatprep.subr.mxu0 %v4967_v34  ;;  %1158 = vmatprep.subr.mxu1 %v4969_v35  ;;  %7475 = vst [vmem:[#allocation55_spill] sm:$0xff] %v4993_v32  ;;  %7476 = vst [vmem:[#allocation56_spill] sm:$0xff] %v4997_v31  ;;  %v4999_v34 = vld [vmem:[#allocation17 + $0x350] sm:$0xff]  ;;  %v5003_v35 = vld [vmem:[#allocation17 + $0x328] sm:$0xff] }
  0x9e   :  { %1088 = vmatpush1.msra.mxu0 %v4973_v38  ;;  %1159 = vmatpush1.msra.mxu1 %v4975_v56  ;;  %7477 = vst [vmem:[#allocation57_spill] sm:$0xff] %v4999_v34  ;;  %7478 = vst [vmem:[#allocation58_spill] sm:$0xff] %v5003_v35  ;;  %v5005_v38 = vld [vmem:[#allocation17 + $0x338] sm:$0xff]  ;;  %v5009_v56 = vld [vmem:[#allocation17 + $0x320] sm:$0xff] }
  0x9f   :  { %1089 = vmatprep.subr.mxu0 %v4979_v39  ;;  %1160 = vmatprep.subr.mxu1 %v4981_v27  ;;  %7479 = vst [vmem:[#allocation59_spill] sm:$0xff] %v5005_v38  ;;  %7480 = vst [vmem:[#allocation60_spill] sm:$0xff] %v5009_v56  ;;  %v5011_v39 = vld [vmem:[#allocation17 + $0x330] sm:$0xff]  ;;  %v5015_v27 = vld [vmem:[#allocation17 + $0x308] sm:$0xff] }
  0xa0   :  { %1090 = vmatpush1.msra.mxu0 %v4985_v10  ;;  %1161 = vmatpush1.msra.mxu1 %v4987_v0  ;;  %7481 = vst [vmem:[#allocation61_spill] sm:$0xff] %v5011_v39  ;;  %7482 = vst [vmem:[#allocation62_spill] sm:$0xff] %v5015_v27  ;;  %v5017_v10 = vld [vmem:[#allocation17 + $0x318] sm:$0xff]  ;;  %v5021_v0 = vld [vmem:[#allocation17 + $0x300] sm:$0xff] }
  0xa1   :  { %1091 = vmatprep.subr.mxu0 %v4991_v33  ;;  %1162 = vmatprep.subr.mxu1 %v4993_v32  ;;  %7483 = vst [vmem:[#allocation63_spill] sm:$0xff] %v5017_v10  ;;  %7484 = vst [vmem:[#allocation64_spill] sm:$0xff] %v5021_v0  ;;  %v5023_v33 = vld [vmem:[#allocation17 + $0x310] sm:$0xff]  ;;  %v5027_v32 = vld [vmem:[#allocation17 + $0x2e8] sm:$0xff] }
  0xa2   :  { %1092 = vmatpush1.msra.mxu0 %v4997_v31  ;;  %1163 = vmatpush1.msra.mxu1 %v4999_v34  ;;  %7485 = vst [vmem:[#allocation65_spill] sm:$0xff] %v5023_v33  ;;  %7486 = vst [vmem:[#allocation66_spill] sm:$0xff] %v5027_v32  ;;  %v5029_v31 = vld [vmem:[#allocation17 + $0x2f8] sm:$0xff]  ;;  %v5033_v34 = vld [vmem:[#allocation17 + $0x2e0] sm:$0xff] }
  0xa3   :  { %1093 = vmatprep.subr.mxu0 %v5003_v35  ;;  %1164 = vmatprep.subr.mxu1 %v5005_v38  ;;  %7487 = vst [vmem:[#allocation67_spill] sm:$0xff] %v5029_v31  ;;  %7488 = vst [vmem:[#allocation68_spill] sm:$0xff] %v5033_v34  ;;  %v5035_v35 = vld [vmem:[#allocation17 + $0x2f0] sm:$0xff]  ;;  %v5039_v38 = vld [vmem:[#allocation17 + $0x2c8] sm:$0xff] }
  0xa4   :  { %1094 = vmatpush1.msra.mxu0 %v5009_v56  ;;  %1165 = vmatpush1.msra.mxu1 %v5011_v39  ;;  %7489 = vst [vmem:[#allocation69_spill] sm:$0xff] %v5035_v35  ;;  %7490 = vst [vmem:[#allocation70_spill] sm:$0xff] %v5039_v38  ;;  %v5041_v56 = vld [vmem:[#allocation17 + $0x2d8] sm:$0xff]  ;;  %v5045_v39 = vld [vmem:[#allocation17 + $0x2c0] sm:$0xff] }
  0xa5   :  { %1095 = vmatprep.subr.mxu0 %v5015_v27  ;;  %1166 = vmatprep.subr.mxu1 %v5017_v10  ;;  %7491 = vst [vmem:[#allocation71_spill] sm:$0xff] %v5041_v56  ;;  %7492 = vst [vmem:[#allocation72_spill] sm:$0xff] %v5045_v39  ;;  %v5047_v27 = vld [vmem:[#allocation17 + $0x2d0] sm:$0xff]  ;;  %v5051_v10 = vld [vmem:[#allocation17 + $0x2a8] sm:$0xff] }
  0xa6   :  { %1096 = vmatpush1.msra.mxu0 %v5021_v0  ;;  %1167 = vmatpush1.msra.mxu1 %v5023_v33  ;;  %7493 = vst [vmem:[#allocation73_spill] sm:$0xff] %v5047_v27  ;;  %7494 = vst [vmem:[#allocation74_spill] sm:$0xff] %v5051_v10  ;;  %v5053_v0 = vld [vmem:[#allocation17 + $0x2b8] sm:$0xff]  ;;  %v5057_v33 = vld [vmem:[#allocation17 + $0x2a0] sm:$0xff] }
  0xa7   :  { %1097 = vmatprep.subr.mxu0 %v5027_v32  ;;  %1168 = vmatprep.subr.mxu1 %v5029_v31  ;;  %7495 = vst [vmem:[#allocation75_spill] sm:$0xff] %v5053_v0  ;;  %7496 = vst [vmem:[#allocation76_spill] sm:$0xff] %v5057_v33  ;;  %v5059_v32 = vld [vmem:[#allocation17 + $0x2b0] sm:$0xff]  ;;  %v5063_v31 = vld [vmem:[#allocation17 + $0x288] sm:$0xff] }
  0xa8   :  { %1098 = vmatpush1.msra.mxu0 %v5033_v34  ;;  %1169 = vmatpush1.msra.mxu1 %v5035_v35  ;;  %7497 = vst [vmem:[#allocation77_spill] sm:$0xff] %v5059_v32  ;;  %7498 = vst [vmem:[#allocation78_spill] sm:$0xff] %v5063_v31  ;;  %v5065_v34 = vld [vmem:[#allocation17 + $0x298] sm:$0xff]  ;;  %v5069_v35 = vld [vmem:[#allocation17 + $0x280] sm:$0xff] }
  0xa9   :  { %1099 = vmatprep.subr.mxu0 %v5039_v38  ;;  %1170 = vmatprep.subr.mxu1 %v5041_v56  ;;  %7499 = vst [vmem:[#allocation79_spill] sm:$0xff] %v5065_v34  ;;  %7500 = vst [vmem:[#allocation80_spill] sm:$0xff] %v5069_v35  ;;  %v5071_v38 = vld [vmem:[#allocation17 + $0x290] sm:$0xff]  ;;  %v5075_v56 = vld [vmem:[#allocation17 + $0x268] sm:$0xff] }
  0xaa   :  { %1100 = vmatpush1.msra.mxu0 %v5045_v39  ;;  %1171 = vmatpush1.msra.mxu1 %v5047_v27  ;;  %7501 = vst [vmem:[#allocation81_spill] sm:$0xff] %v5071_v38  ;;  %7502 = vst [vmem:[#allocation82_spill] sm:$0xff] %v5075_v56  ;;  %v5077_v39 = vld [vmem:[#allocation17 + $0x278] sm:$0xff]  ;;  %v5081_v27 = vld [vmem:[#allocation17 + $0x260] sm:$0xff] }
  0xab   :  { %1101 = vmatprep.subr.mxu0 %v5051_v10  ;;  %1172 = vmatprep.subr.mxu1 %v5053_v0  ;;  %7503 = vst [vmem:[#allocation83_spill] sm:$0xff] %v5077_v39  ;;  %7504 = vst [vmem:[#allocation84_spill] sm:$0xff] %v5081_v27  ;;  %v5083_v10 = vld [vmem:[#allocation17 + $0x270] sm:$0xff]  ;;  %v5087_v0 = vld [vmem:[#allocation17 + $0x248] sm:$0xff] }
  0xac   :  { %1102 = vmatpush1.msra.mxu0 %v5057_v33  ;;  %1173 = vmatpush1.msra.mxu1 %v5059_v32  ;;  %7505 = vst [vmem:[#allocation85_spill] sm:$0xff] %v5083_v10  ;;  %v5089_v33 = vld [vmem:[#allocation17 + $0x258] sm:$0xff]  ;;  %v5093_v32 = vld [vmem:[#allocation17 + $0x240] sm:$0xff] }
  0xad   :  { %1103 = vmatprep.subr.mxu0 %v5063_v31  ;;  %1174 = vmatprep.subr.mxu1 %v5065_v34  ;;  %7506 = vst [vmem:[#allocation86_spill] sm:$0xff] %v5089_v33  ;;  %v5095_v31 = vld [vmem:[#allocation17 + $0x250] sm:$0xff]  ;;  %v5099_v34 = vld [vmem:[#allocation17 + $0x228] sm:$0xff] }
  0xae   :  { %1104 = vmatpush1.msra.mxu0 %v5069_v35  ;;  %1175 = vmatpush1.msra.mxu1 %v5071_v38  ;;  %7507 = vst [vmem:[#allocation87_spill] sm:$0xff] %v5095_v31  ;;  %v5101_v35 = vld [vmem:[#allocation17 + $0x238] sm:$0xff]  ;;  %v5105_v38 = vld [vmem:[#allocation17 + $0x220] sm:$0xff] }
  0xaf   :  { %1105 = vmatprep.subr.mxu0 %v5075_v56  ;;  %1176 = vmatprep.subr.mxu1 %v5077_v39  ;;  %v5107_v56 = vld [vmem:[#allocation17 + $0x230] sm:$0xff]  ;;  %v5111_v39 = vld [vmem:[#allocation17 + $0x208] sm:$0xff] }
  0xb0   :  { %1106 = vmatpush1.msra.mxu0 %v5081_v27  ;;  %1177 = vmatpush1.msra.mxu1 %v5083_v10  ;;  %v5113_v27 = vld [vmem:[#allocation17 + $0x218] sm:$0xff]  ;;  %v5117_v10 = vld [vmem:[#allocation17 + $0x200] sm:$0xff] }
  0xb1   :  { %1107 = vmatprep.subr.mxu0 %v5087_v0  ;;  %1178 = vmatprep.subr.mxu1 %v5089_v33  ;;  %v5121_v33 = vld [vmem:[#allocation17 + $0x210] sm:$0xff] }
  0xb2   :  { %1108 = vmatpush1.msra.mxu0 %v5093_v32  ;;  %1179 = vmatpush1.msra.mxu1 %v5095_v31  ;;  %v7508_v31 = vmov 0.0  }
  0xb3   :  { %1109 = vmatprep.subr.mxu0 %v5099_v34  ;;  %1180 = vmatprep.subr.mxu1 %v5101_v35 }
  0xb4   :  { %1110 = vmatpush1.msra.mxu0 %v5105_v38  ;;  %1181 = vmatpush1.msra.mxu1 %v5107_v56 }
  0xb5   :  { %1111 = vmatprep.subr.mxu0 %v5111_v39  ;;  %1182 = vmatprep.subr.mxu1 %v5113_v27 }
  0xb6   :  { %1112 = vmatpush1.msra.mxu0 %v5117_v10  ;;  %1145 = vmatprep.mubr.f32.mxu0 %v7508_v31 }
  0xb7   :  { %1183 = vmatpush1.msra.mxu1 %v5121_v33  ;;  %1216 = vmatprep.mubr.f32.mxu1 %v7508_v31 }
  0xb8   :  { %1146 = vmatmul.mubr.f32.vlgmr.msra.gmra.mxu0 %v7508_v31  ;;  %1217 = vmatmul.mubr.f32.vlgmr.msra.gmra.mxu1 %v7508_v31 }
  0xb9   :  { %1286 = vmatprep.subr.mxu0 %v4717_v36  ;;  %1357 = vmatprep.subr.mxu1 %v4720_v37  ;;  %v7509_v36 = vld [vmem:[#allocation23_spill] sm:$0xff]  ;;  %v7510_v37 = vld [vmem:[#allocation24_spill] sm:$0xff] }
  0xba   :  { %1287 = vmatpush1.msra.mxu0 %v4731_v40  ;;  %1358 = vmatpush1.msra.mxu1 %v4733_v41  ;;  %v7511_v40 = vld [vmem:[#allocation25_spill] sm:$0xff]  ;;  %v7512_v41 = vld [vmem:[#allocation26_spill] sm:$0xff] }
  0xbb   :  { %1288 = vmatprep.subr.mxu0 %v4735_v42  ;;  %1359 = vmatprep.subr.mxu1 %v4737_v43  ;;  %v7513_v42 = vld [vmem:[#allocation27_spill] sm:$0xff]  ;;  %v7514_v43 = vld [vmem:[#allocation28_spill] sm:$0xff] }
  0xbc   :  { %1289 = vmatpush1.msra.mxu0 %v4741_v44  ;;  %1360 = vmatpush1.msra.mxu1 %v4743_v45  ;;  %v7515_v44 = vld [vmem:[#allocation29_spill] sm:$0xff]  ;;  %v7516_v45 = vld [vmem:[#allocation30_spill] sm:$0xff] }
  0xbd   :  { %1290 = vmatprep.subr.mxu0 %v4747_v46  ;;  %1361 = vmatprep.subr.mxu1 %v4749_v47  ;;  %v7517_v46 = vld [vmem:[#allocation31_spill] sm:$0xff]  ;;  %v7518_v47 = vld [vmem:[#allocation32_spill] sm:$0xff] }
  0xbe   :  { %1291 = vmatpush1.msra.mxu0 %v4753_v48  ;;  %1362 = vmatpush1.msra.mxu1 %v4755_v49  ;;  %v7519_v48 = vld [vmem:[#allocation33_spill] sm:$0xff]  ;;  %v7520_v49 = vld [vmem:[#allocation34_spill] sm:$0xff] }
  0xbf   :  { %1292 = vmatprep.subr.mxu0 %v4759_v50  ;;  %1363 = vmatprep.subr.mxu1 %v4761_v51  ;;  %v7521_v50 = vld [vmem:[#allocation35_spill] sm:$0xff]  ;;  %v135_v51 = vlaneseq }
  0xc0   :  { %1293 = vmatpush1.msra.mxu0 %v4765_v52  ;;  %1364 = vmatpush1.msra.mxu1 %v4767_v53 }
  0xc1   :  { %1294 = vmatprep.subr.mxu0 %v4773_v54  ;;  %1365 = vmatprep.subr.mxu1 %v4775_v55  ;;  %v5199_v52 = vshrl.u32 %v135_v51, 7 }
  0xc2   :  { %1295 = vmatpush1.msra.mxu0 %v4781_v57  ;;  %1366 = vmatpush1.msra.mxu1 %v4783_v58  ;;  %v133_v57 = vld [vmem:[#allocation19] sm:$0xf] }
  0xc3   :  { %1296 = vmatprep.subr.mxu0 %v4787_v59  ;;  %1367 = vmatprep.subr.mxu1 %v4789_v60  ;;  %v145_v53 = vsub.s32 2, %v5199_v52  ;;  %v5203_v54 = vsub.s32 0, %v5199_v52  ;;  %v149_v55 = vsub.s32 3, %v5199_v52 }
  0xc4   :  { %1297 = vmatpush1.msra.mxu0 %v4793_v61  ;;  %1368 = vmatpush1.msra.mxu1 %v4795_v62  ;;  %v5215_v61 = vsub.s32 1, %v5199_v52 }
  0xc5   :  { %1298 = vmatprep.subr.mxu0 %v4799_v63  ;;  %1369 = vmatprep.subr.mxu1 %v4801_v1  ;;  %7522 = vst [vmem:[#allocation23_spill] sm:$0xff] %v5203_v54  ;;  %v5212_v60 = vrot.slane %v133_v57, %v145_v53  ;;  %v5222_v1 = vrot.slane %v133_v57, %v5203_v54 }
  0xc6   :  { %1299 = vmatpush1.msra.mxu0 %v4805_v2  ;;  %1370 = vmatpush1.msra.mxu1 %v4807_v3  ;;  %7523 = vst [vmem:[#allocation24_spill] sm:$0xff] %v5215_v61  ;;  %v5226_v2 = vrot.slane %v133_v57, %v149_v55 }
  0xc7   :  { %1300 = vmatprep.subr.mxu0 %v4811_v4  ;;  %1371 = vmatprep.subr.mxu1 %v4813_v5  ;;  %v5229_v5 = vrot.slane %v133_v57, %v5215_v61 }
  0xc8   :  { %1301 = vmatpush1.msra.mxu0 %v4817_v6  ;;  %1372 = vmatpush1.msra.mxu1 %v4819_v7 }
  0xc9   :  { %1302 = vmatprep.subr.mxu0 %v4825_v8  ;;  %1373 = vmatprep.subr.mxu1 %v4827_v9 }
  0xca   :  { %1303 = vmatpush1.msra.mxu0 %v4833_v11  ;;  %1374 = vmatpush1.msra.mxu1 %v4835_v12 }
  0xcb   :  { %1304 = vmatprep.subr.mxu0 %v4839_v13  ;;  %1375 = vmatprep.subr.mxu1 %v4841_v14 }
  0xcc   :  { %1305 = vmatpush1.msra.mxu0 %v4845_v15  ;;  %1376 = vmatpush1.msra.mxu1 %v4847_v16 }
  0xcd   :  { %1306 = vmatprep.subr.mxu0 %v4851_v17  ;;  %1377 = vmatprep.subr.mxu1 %v4853_v18 }
  0xce   :  { %1307 = vmatpush1.msra.mxu0 %v4857_v19  ;;  %1378 = vmatpush1.msra.mxu1 %v4859_v20 }
  0xcf   :  { %1308 = vmatprep.subr.mxu0 %v4863_v21  ;;  %1379 = vmatprep.subr.mxu1 %v4865_v22 }
  0xd0   :  { %1309 = vmatpush1.msra.mxu0 %v4869_v23  ;;  %1380 = vmatpush1.msra.mxu1 %v4871_v24 }
  0xd1   :  { %1310 = vmatprep.subr.mxu0 %v4877_v25  ;;  %1381 = vmatprep.subr.mxu1 %v4879_v26 }
  0xd2   :  { %1311 = vmatpush1.msra.mxu0 %v4885_v28  ;;  %1382 = vmatpush1.msra.mxu1 %v4887_v29 }
  0xd3   :  { %1312 = vmatprep.subr.mxu0 %v4891_v30  ;;  %1383 = vmatprep.subr.mxu1 %v7509_v36 }
  0xd4   :  { %1313 = vmatpush1.msra.mxu0 %v7510_v37  ;;  %1384 = vmatpush1.msra.mxu1 %v7511_v40 }
  0xd5   :  { %1314 = vmatprep.subr.mxu0 %v7512_v41  ;;  %1385 = vmatprep.subr.mxu1 %v7513_v42 }
  0xd6   :  { %1315 = vmatpush1.msra.mxu0 %v7514_v43  ;;  %1386 = vmatpush1.msra.mxu1 %v7515_v44 }
  0xd7   :  { %1316 = vmatprep.subr.mxu0 %v7516_v45  ;;  %1387 = vmatprep.subr.mxu1 %v7517_v46 }
  0xd8   :  { %1317 = vmatpush1.msra.mxu0 %v7518_v47  ;;  %1388 = vmatpush1.msra.mxu1 %v7519_v48 }
  0xd9   :  { %1350 = vmatprep.mubr.f32.mxu0 %v7508_v31  ;;  %1421 = vmatprep.mubr.f32.mxu1 %v7508_v31 }
  0xda   :  { %1439 = vmatprep.subr.mxu0 %v7520_v49  ;;  %1510 = vmatprep.subr.mxu1 %v7521_v50 }
 0x10f   :  { %v5206_v58 = vpop.f32.mrf.mxu0  ;;  %v5208_v59 = vpop.f32.mrf.mxu1 }
 0x111   :  { %v5217_v62 = vpop.f32.mrf.mxu0  ;;  %v5219_v63 = vpop.f32.mrf.mxu1 }
 0x113   :  { %v306_v3 = vpop.f32.mrf.mxu0  ;;  %v379_v4 = vpop.f32.mrf.mxu1 }
 0x114   :  { %v5232_v6 = vadd.f32 %v306_v3, %v5222_v1  ;;  %v5235_v7 = vadd.f32 %v379_v4, %v5212_v60 }
 0x115   :  { %v308_v8 = vpop.f32.mrf.mxu0  ;;  %v381_v9 = vpop.f32.mrf.mxu1 }
 0x116   :  { %v5238_v11 = vadd.f32 %v308_v8, %v5229_v5  ;;  %v5241_v12 = vadd.f32 %v381_v9, %v5226_v2 }
 0x117   :  { %v312_v13 = vpop.f32.mrf.mxu0  ;;  %v385_v14 = vpop.f32.mrf.mxu1 }
 0x118   :  { %v5244_v15 = vadd.f32 %v312_v13, %v5222_v1  ;;  %v5247_v16 = vadd.f32 %v385_v14, %v5212_v60 }
 0x119   :  { %v314_v17 = vpop.f32.mrf.mxu0  ;;  %v387_v18 = vpop.f32.mrf.mxu1 }
 0x11a   :  { %7524 = vst [vmem:[#allocation25_spill] sm:$0xff] %v5244_v15  ;;  %7525 = vst [vmem:[#allocation26_spill] sm:$0xff] %v5247_v16  ;;  %v5250_v19 = vadd.f32 %v314_v17, %v5229_v5  ;;  %v5253_v20 = vadd.f32 %v387_v18, %v5226_v2  ;;  %v472_v17 = vld [vmem:[#allocation19 + $0x4] sm:$0xf]  ;;  %v5650_v16 = vld [vmem:[#allocation17 + $0x78] sm:$0xff] }
 0x11b   :  { %v316_v21 = vpop.f32.mrf.mxu0  ;;  %v389_v22 = vpop.f32.mrf.mxu1  ;;  %v5659_v15 = vld [vmem:[#allocation17 + $0x48] sm:$0xff] }
 0x11c   :  { %7526 = vst [vmem:[#allocation27_spill] sm:$0xff] %v5250_v19  ;;  %7527 = vst [vmem:[#allocation28_spill] sm:$0xff] %v5253_v20  ;;  %v5256_v23 = vadd.f32 %v316_v21, %v5222_v1  ;;  %v5259_v24 = vadd.f32 %v389_v22, %v5212_v60  ;;  %v5653_v20 = vld [vmem:[#allocation17 + $0x60] sm:$0xff]  ;;  %v5656_v19 = vld [vmem:[#allocation17 + $0x70] sm:$0xff] }
 0x11d   :  { %v318_v25 = vpop.f32.mrf.mxu0  ;;  %v391_v26 = vpop.f32.mrf.mxu1 }
 0x11e   :  { %7528 = vst [vmem:[#allocation29_spill] sm:$0xff] %v5256_v23  ;;  %7529 = vst [vmem:[#allocation30_spill] sm:$0xff] %v5259_v24  ;;  %v5262_v28 = vadd.f32 %v318_v25, %v5229_v5  ;;  %v5265_v29 = vadd.f32 %v391_v26, %v5226_v2  ;;  %v5620_v24 = vld [vmem:[#allocation17 + $0xd0] sm:$0xff]  ;;  %v5629_v23 = vld [vmem:[#allocation17 + $0xa0] sm:$0xff] }
 0x11f   :  { %v322_v30 = vpop.f32.mrf.mxu0  ;;  %v395_v36 = vpop.f32.mrf.mxu1 }
 0x120   :  { %7530 = vst [vmem:[#allocation31_spill] sm:$0xff] %v5262_v28  ;;  %7531 = vst [vmem:[#allocation32_spill] sm:$0xff] %v5265_v29  ;;  %v5268_v37 = vadd.f32 %v322_v30, %v5222_v1  ;;  %v5271_v40 = vadd.f32 %v395_v36, %v5212_v60  ;;  %v5310_v36 = vrot.slane %v472_v17, %v5203_v54  ;;  %v5623_v29 = vld [vmem:[#allocation17 + $0xa8] sm:$0xff]  ;;  %v5626_v28 = vld [vmem:[#allocation17 + $0xb8] sm:$0xff] }
 0x121   :  { %v324_v41 = vpop.f32.mrf.mxu0  ;;  %v397_v42 = vpop.f32.mrf.mxu1 }
 0x122   :  { %7532 = vst [vmem:[#allocation33_spill] sm:$0xff] %v5268_v37  ;;  %7533 = vst [vmem:[#allocation34_spill] sm:$0xff] %v5271_v40  ;;  %v5274_v43 = vadd.f32 %v324_v41, %v5229_v5  ;;  %v5277_v44 = vadd.f32 %v397_v42, %v5226_v2  ;;  %v5314_v41 = vrot.slane %v472_v17, %v145_v53 }
 0x123   :  { %v326_v45 = vpop.f32.mrf.mxu0  ;;  %v399_v46 = vpop.f32.mrf.mxu1 }
 0x124   :  { %7534 = vst [vmem:[#allocation35_spill] sm:$0xff] %v5274_v43  ;;  %7535 = vst [vmem:[#allocation88_spill] sm:$0xff] %v5277_v44  ;;  %v5280_v47 = vadd.f32 %v326_v45, %v5222_v1  ;;  %v5283_v48 = vadd.f32 %v399_v46, %v5212_v60  ;;  %v378_v44 = vadd.f32 %v5219_v63, %v5226_v2 }
 0x125   :  { %v328_v49 = vpop.f32.mrf.mxu0  ;;  %v401_v50 = vpop.f32.mrf.mxu1 }
 0x126   :  { %7536 = vst [vmem:[#allocation89_spill] sm:$0xff] %v5280_v47  ;;  %7537 = vst [vmem:[#allocation90_spill] sm:$0xff] %v5283_v48  ;;  %v5286_v51 = vadd.f32 %v328_v49, %v5229_v5  ;;  %v5289_v57 = vadd.f32 %v401_v50, %v5226_v2  ;;  %v5323_v50 = vrot.slane %v472_v17, %v5215_v61 }
 0x127   :  { %v332_v3 = vpop.f32.mrf.mxu0  ;;  %v405_v4 = vpop.f32.mrf.mxu1 }
 0x128   :  { %7538 = vst [vmem:[#allocation91_spill] sm:$0xff] %v5286_v51  ;;  %7539 = vst [vmem:[#allocation92_spill] sm:$0xff] %v5289_v57  ;;  %v5292_v8 = vadd.f32 %v332_v3, %v5222_v1  ;;  %v5295_v9 = vadd.f32 %v405_v4, %v5212_v60  ;;  %v5327_v3 = vrot.slane %v472_v17, %v149_v55 }
 0x129   :  { %v334_v13 = vpop.f32.mrf.mxu0  ;;  %v407_v14 = vpop.f32.mrf.mxu1  ;;  %v303_v51 = vadd.f32 %v5206_v58, %v5222_v1  ;;  %v376_v58 = vadd.f32 %v5208_v59, %v5212_v60 }
 0x12a   :  { %7540 = vst [vmem:[#allocation93_spill] sm:$0xff] %v5292_v8  ;;  %7541 = vst [vmem:[#allocation94_spill] sm:$0xff] %v5295_v9  ;;  %v5298_v18 = vadd.f32 %v334_v13, %v5229_v5  ;;  %v5301_v21 = vadd.f32 %v407_v14, %v5226_v2 }
 0x12b   :  { %v336_v22 = vpop.f32.mrf.mxu0  ;;  %v409_v25 = vpop.f32.mrf.mxu1 }
 0x12c   :  { %7542 = vst [vmem:[#allocation95_spill] sm:$0xff] %v5298_v18  ;;  %7543 = vst [vmem:[#allocation96_spill] sm:$0xff] %v5301_v21  ;;  %v5304_v26 = vadd.f32 %v336_v22, %v5222_v1  ;;  %v5307_v30 = vadd.f32 %v409_v25, %v5212_v60 }
 0x12d   :  { %v338_v42 = vpop.f32.mrf.mxu0  ;;  %v411_v45 = vpop.f32.mrf.mxu1 }
 0x12e   :  { %7544 = vst [vmem:[#allocation97_spill] sm:$0xff] %v5304_v26  ;;  %7545 = vst [vmem:[#allocation98_spill] sm:$0xff] %v5307_v30  ;;  %v5317_v46 = vadd.f32 %v338_v42, %v5229_v5  ;;  %v5320_v49 = vadd.f32 %v411_v45, %v5226_v2 }
 0x12f   :  { %v640_v4 = vpop.f32.mrf.mxu0  ;;  %v713_v13 = vpop.f32.mrf.mxu1 }
 0x130   :  { %7546 = vst [vmem:[#allocation99_spill] sm:$0xff] %v5317_v46  ;;  %7547 = vst [vmem:[#allocation100_spill] sm:$0xff] %v5320_v49  ;;  %v5330_v53 = vadd.f32 %v640_v4, %v5310_v36  ;;  %v5333_v14 = vadd.f32 %v713_v13, %v5314_v41 }
 0x131   :  { %v642_v22 = vpop.f32.mrf.mxu0  ;;  %v715_v25 = vpop.f32.mrf.mxu1 }
 0x132   :  { %7548 = vst [vmem:[#allocation101_spill] sm:$0xff] %v5330_v53  ;;  %7549 = vst [vmem:[#allocation102_spill] sm:$0xff] %v5333_v14  ;;  %v5336_v42 = vadd.f32 %v642_v22, %v5323_v50  ;;  %v5339_v45 = vadd.f32 %v715_v25, %v5327_v3 }
 0x133   :  { %v644_v61 = vpop.f32.mrf.mxu0  ;;  %v717_v52 = vpop.f32.mrf.mxu1 }
 0x134   :  { %7550 = vst [vmem:[#allocation103_spill] sm:$0xff] %v5336_v42  ;;  %7551 = vst [vmem:[#allocation104_spill] sm:$0xff] %v5339_v45  ;;  %v5342_v55 = vadd.f32 %v644_v61, %v5310_v36  ;;  %v5345_v17 = vadd.f32 %v717_v52, %v5314_v41 }
 0x135   :  { %v646_v4 = vpop.f32.mrf.mxu0  ;;  %v719_v54 = vpop.f32.mrf.mxu1 }
 0x136   :  { %7552 = vst [vmem:[#allocation105_spill] sm:$0xff] %v5342_v55  ;;  %7553 = vst [vmem:[#allocation106_spill] sm:$0xff] %v5345_v17  ;;  %v5348_v13 = vadd.f32 %v646_v4, %v5323_v50  ;;  %v5351_v14 = vadd.f32 %v719_v54, %v5327_v3 }
 0x138   :  { %7554 = vst [vmem:[#allocation107_spill] sm:$0xff] %v5348_v13  ;;  %7555 = vst [vmem:[#allocation108_spill] sm:$0xff] %v5351_v14 }
 0x139   :  { %v650_v22 = vpop.f32.mrf.mxu0  ;;  %v723_v42 = vpop.f32.mrf.mxu1 }
 0x13a   :  { %v5354_v25 = vadd.f32 %v650_v22, %v5310_v36  ;;  %v5357_v45 = vadd.f32 %v723_v42, %v5314_v41 }
 0x13b   :  { %v652_v61 = vpop.f32.mrf.mxu0  ;;  %v725_v53 = vpop.f32.mrf.mxu1 }
 0x13c   :  { %7556 = vst [vmem:[#allocation109_spill] sm:$0xff] %v5354_v25  ;;  %7557 = vst [vmem:[#allocation110_spill] sm:$0xff] %v5357_v45  ;;  %v5360_v52 = vadd.f32 %v652_v61, %v5323_v50  ;;  %v5363_v30 = vadd.f32 %v725_v53, %v5327_v3 }
 0x13d   :  { %v654_v4 = vpop.f32.mrf.mxu0  ;;  %v727_v49 = vpop.f32.mrf.mxu1 }
 0x13e   :  { %7558 = vst [vmem:[#allocation111_spill] sm:$0xff] %v5360_v52  ;;  %7559 = vst [vmem:[#allocation112_spill] sm:$0xff] %v5363_v30  ;;  %v5366_v54 = vadd.f32 %v654_v4, %v5310_v36  ;;  %v5369_v46 = vadd.f32 %v727_v49, %v5314_v41 }
 0x13f   :  { %v656_v22 = vpop.f32.mrf.mxu0  ;;  %v729_v26 = vpop.f32.mrf.mxu1 }
 0x140   :  { %7560 = vst [vmem:[#allocation113_spill] sm:$0xff] %v5366_v54  ;;  %7561 = vst [vmem:[#allocation114_spill] sm:$0xff] %v5369_v46  ;;  %v5372_v42 = vadd.f32 %v656_v22, %v5323_v50  ;;  %v5375_v17 = vadd.f32 %v729_v26, %v5327_v3 }
 0x142   :  { %7562 = vst [vmem:[#allocation115_spill] sm:$0xff] %v5372_v42  ;;  %7563 = vst [vmem:[#allocation116_spill] sm:$0xff] %v5375_v17 }
 0x143   :  { %v660_v61 = vpop.f32.mrf.mxu0  ;;  %v733_v14 = vpop.f32.mrf.mxu1 }
 0x144   :  { %v5378_v53 = vadd.f32 %v660_v61, %v5310_v36  ;;  %v5381_v13 = vadd.f32 %v733_v14, %v5314_v41 }
 0x145   :  { %v662_v4 = vpop.f32.mrf.mxu0  ;;  %v735_v55 = vpop.f32.mrf.mxu1 }
 0x146   :  { %7564 = vst [vmem:[#allocation117_spill] sm:$0xff] %v5378_v53  ;;  %7565 = vst [vmem:[#allocation118_spill] sm:$0xff] %v5381_v13  ;;  %v5384_v49 = vadd.f32 %v662_v4, %v5323_v50  ;;  %v5387_v9 = vadd.f32 %v735_v55, %v5327_v3  ;;  %v5617_v53 = vld [vmem:[#allocation17 + $0xc0] sm:$0xff] }
 0x147   :  { %v664_v22 = vpop.f32.mrf.mxu0  ;;  %v737_v21 = vpop.f32.mrf.mxu1 }
 0x148   :  { %7566 = vst [vmem:[#allocation119_spill] sm:$0xff] %v5384_v49  ;;  %7567 = vst [vmem:[#allocation120_spill] sm:$0xff] %v5387_v9  ;;  %v5390_v26 = vadd.f32 %v664_v22, %v5310_v36  ;;  %v5393_v18 = vadd.f32 %v737_v21, %v5314_v41  ;;  %v5611_v9 = vld [vmem:[#allocation17 + $0xc8] sm:$0xff]  ;;  %v5614_v49 = vld [vmem:[#allocation17 + $0xd8] sm:$0xff] }
 0x149   :  { %v666_v61 = vpop.f32.mrf.mxu0  ;;  %v739_v8 = vpop.f32.mrf.mxu1 }
 0x14a   :  { %7568 = vst [vmem:[#allocation121_spill] sm:$0xff] %v5390_v26  ;;  %7569 = vst [vmem:[#allocation122_spill] sm:$0xff] %v5393_v18  ;;  %v5396_v14 = vadd.f32 %v666_v61, %v5323_v50  ;;  %v5399_v45 = vadd.f32 %v739_v8, %v5327_v3  ;;  %v5638_v18 = vld [vmem:[#allocation17 + $0x98] sm:$0xff]  ;;  %v5647_v26 = vld [vmem:[#allocation17 + $0x68] sm:$0xff] }
 0x14c   :  { %7570 = vst [vmem:[#allocation123_spill] sm:$0xff] %v5396_v14  ;;  %7571 = vst [vmem:[#allocation124_spill] sm:$0xff] %v5399_v45  ;;  %v5641_v45 = vld [vmem:[#allocation17 + $0x80] sm:$0xff]  ;;  %v5644_v14 = vld [vmem:[#allocation17 + $0x90] sm:$0xff] }
 0x14d   :  { %v670_v4 = vpop.f32.mrf.mxu0  ;;  %v743_v30 = vpop.f32.mrf.mxu1 }
 0x14e   :  { %v5402_v55 = vadd.f32 %v670_v4, %v5310_v36  ;;  %v5405_v52 = vadd.f32 %v743_v30, %v5314_v41  ;;  %v305_v30 = vadd.f32 %v5217_v62, %v5229_v5 }
 0x14f   :  { %v672_v22 = vpop.f32.mrf.mxu0  ;;  %v745_v25 = vpop.f32.mrf.mxu1 }
 0x150   :  { %v5408_v21 = vadd.f32 %v672_v22, %v5323_v50  ;;  %v5411_v48 = vadd.f32 %v745_v25, %v5327_v3 }
 0x151   :  { %v674_v61 = vpop.f32.mrf.mxu0  ;;  %v747_v57 = vpop.f32.mrf.mxu1 }
 0x153   :  { %v676_v8 = vpop.f32.mrf.mxu0  ;;  %v749_v47 = vpop.f32.mrf.mxu1 }
 0x154   :  { %v677_v2 = vadd.f32 %v676_v8, %v5323_v50  ;;  %v750_v50 = vadd.f32 %v749_v47, %v5327_v3  ;;  %v748_v8 = vadd.f32 %v747_v57, %v5314_v41  ;;  %v7573_v47 = vld [vmem:[#allocation36_spill] sm:$0xff]  ;;  %v7574_v57 = vld [vmem:[#allocation37_spill] sm:$0xff]  ;;  %v7575_v41 = vld [vmem:[#allocation38_spill] sm:$0xff] }
 0x155   :  { %v7576_v3 = vld [vmem:[#allocation39_spill] sm:$0xff] }
 0x157   :  { %v929_v4 = vpop.f32.mrf.mxu0  ;;  %v1000_v22 = vpop.f32.mrf.mxu1 }
 0x158   :  { %v1005_v46 = vadd.f32 %v929_v4, %v303_v51  ;;  %v1007_v37 = vadd.f32 %v1000_v22, %v376_v58 }
 0x159   :  { %v931_v17 = vpop.f32.mrf.mxu0  ;;  %v1002_v25 = vpop.f32.mrf.mxu1 }
 0x15a   :  { %v3900_v42 = vmul.f32 -1.442695, %v1005_v46  ;;  %v1006_v54 = vadd.f32 %v931_v17, %v305_v30  ;;  %v1008_v43 = vadd.f32 %v1002_v25, %v378_v44 }
 0x15c   :  { %4017 = vpow2.f32 %v3900_v42  ;;  %v3901_v40 = vmul.f32 -1.442695, %v1006_v54  ;;  %v3902_v1 = vmul.f32 -1.442695, %v1008_v43 }
 0x15e   :  { %4019 = vpow2.f32 %v3901_v40  ;;  %v675_v40 = vadd.f32 %v674_v61, %v5310_v36 }
 0x15f   :  { %4021 = vpow2.f32 %v3902_v1 }
 0x160   :  { %4023 = vtanh.f32 %v1007_v37 }
 0x169   :  { %v4018_v13 = vpop.eup %4017 }
 0x16a   :  { %v1230_v62 = vadd.f32 1.0, %v4018_v13 }
 0x16b   :  { %v4020_v5 = vpop.eup %4019 }
 0x16c   :  { %4025 = vrcp.f32 %v1230_v62  ;;  %v1236_v51 = vadd.f32 1.0, %v4020_v5  ;;  %v4022_v46 = vpop.eup %4021 }
 0x16d   :  { %v4024_v17 = vpop.eup %4023  ;;  %v1243_v60 = vadd.f32 1.0, %v4022_v46 }
 0x16e   :  { %4027 = vrcp.f32 %v1236_v51 }
 0x178   :  { %v1147_v54 = vpop.f32.mrf.mxu0  ;;  %v1218_v37 = vpop.f32.mrf.mxu1 }
 0x179   :  { %v4026_v63 = vpop.eup %4025  ;;  %v1223_v44 = vadd.f32 %v1147_v54, %v675_v40  ;;  %v1225_v62 = vadd.f32 %v1218_v37, %v748_v8  ;;  %v7587_v37 = vld [vmem:[#allocation50_spill] sm:$0xff] }
 0x17a   :  { %v1247_v59 = vmul.f32 %v4026_v63, %v4024_v17  ;;  %v1149_v43 = vpop.f32.mrf.mxu0  ;;  %v1220_v36 = vpop.f32.mrf.mxu1  ;;  %v7577_v63 = vld [vmem:[#allocation40_spill] sm:$0xff] }
 0x17b   :  { %v4028_v42 = vpop.eup %4027  ;;  %v3903_v13 = vmul.f32 -1.442695, %v1223_v44  ;;  %v1224_v4 = vadd.f32 %v1149_v43, %v677_v2  ;;  %v1226_v61 = vadd.f32 %v1220_v36, %v750_v50  ;;  %v7578_v2 = vld [vmem:[#allocation41_spill] sm:$0xff]  ;;  %v7579_v44 = vld [vmem:[#allocation42_spill] sm:$0xff]  ;;  %v7589_v50 = vld [vmem:[#allocation52_spill] sm:$0xff] }
 0x17c   :  { %v1246_v30 = vmul.f32 0.0, %v4028_v42  ;;  %v7582_v43 = vld [vmem:[#allocation45_spill] sm:$0xff]  ;;  %v7583_v42 = vld [vmem:[#allocation46_spill] sm:$0xff]  ;;  %7641 = vst [vmem:[#allocation52_spill] sm:$0xff] %v5614_v49 }
 0x17d   :  { %4029 = vpow2.f32 %v3903_v13  ;;  %v3904_v22 = vmul.f32 -1.442695, %v1224_v4  ;;  %v3905_v58 = vmul.f32 -1.442695, %v1226_v61  ;;  %v7584_v13 = vld [vmem:[#allocation47_spill] sm:$0xff]  ;;  %v7585_v4 = vld [vmem:[#allocation48_spill] sm:$0xff] }
 0x17e   :  { %v5423_v25 = vadd.f32 %v1247_v59, %v1246_v30  ;;  %4031 = vrcp.f32 %v1243_v60  ;;  %v7580_v59 = vld [vmem:[#allocation43_spill] sm:$0xff]  ;;  %v7581_v60 = vld [vmem:[#allocation44_spill] sm:$0xff]  ;;  %v7586_v30 = vld [vmem:[#allocation49_spill] sm:$0xff] }
 0x17f   :  { %4033 = vpow2.f32 %v3904_v22  ;;  %v7588_v22 = vld [vmem:[#allocation51_spill] sm:$0xff]  ;;  %v7590_v61 = vld [vmem:[#allocation53_spill] sm:$0xff] }
 0x180   :  { %4035 = vtanh.f32 %v5423_v25  ;;  %7640 = vst [vmem:[#allocation51_spill] sm:$0xff] %v5611_v9  ;;  %7642 = vst [vmem:[#allocation53_spill] sm:$0xff] %v5617_v53 }
 0x181   :  { %4037 = vpow2.f32 %v3905_v58  ;;  %v7591_v58 = vld [vmem:[#allocation54_spill] sm:$0xff] }
 0x182   :  { %7643 = vst [vmem:[#allocation54_spill] sm:$0xff] %v5620_v24 }
 0x18a   :  { %v4030_v1 = vpop.eup %4029 }
 0x18b   :  { %v4032_v5 = vpop.eup %4031  ;;  %v1254_v51 = vadd.f32 1.0, %v4030_v1  ;;  %v7592_v1 = vld [vmem:[#allocation55_spill] sm:$0xff] }
 0x18c   :  { %v4034_v46 = vpop.eup %4033  ;;  %7644 = vst [vmem:[#allocation55_spill] sm:$0xff] %v5623_v29 }
 0x18d   :  { %v4036_v40 = vpop.eup %4035  ;;  %4039 = vrcp.f32 %v1254_v51  ;;  %v1260_v17 = vadd.f32 1.0, %v4034_v46  ;;  %v7594_v51 = vld [vmem:[#allocation57_spill] sm:$0xff] }
 0x18e   :  { %4041 = vtanh.f32 %v1225_v62  ;;  %v5428_v54 = vmul.f32 %v4036_v40, %v4032_v5  ;;  %v4038_v36 = vpop.eup %4037  ;;  %v7593_v5 = vld [vmem:[#allocation56_spill] sm:$0xff]  ;;  %7646 = vst [vmem:[#allocation57_spill] sm:$0xff] %v5629_v23 }
 0x18f   :  { %4043 = vrcp.f32 %v1260_v17  ;;  %v1267_v40 = vadd.f32 1.0, %v4038_v36  ;;  %v7595_v17 = vld [vmem:[#allocation58_spill] sm:$0xff]  ;;  %v7609_v36 = vld [vmem:[#allocation72_spill] sm:$0xff]  ;;  %7645 = vst [vmem:[#allocation56_spill] sm:$0xff] %v5626_v28 }
 0x190   :  { %7572 = vst [vmem:[#allocation125_spill] sm:$0xff] %v5428_v54  ;;  %1351 = vmatmul.mubr.f32.vlgmr.msra.gmra.mxu0 %v5428_v54  ;;  %1422 = vmatmul.mubr.f32.vlgmr.msra.gmra.mxu1 %v5428_v54  ;;  %v5635_v54 = vld [vmem:[#allocation17 + $0x88] sm:$0xff] }
 0x191   :  { %1440 = vmatpush1.msra.mxu0 %v7573_v47  ;;  %1511 = vmatpush1.msra.mxu1 %v7574_v57  ;;  %v7596_v47 = vld [vmem:[#allocation59_spill] sm:$0xff]  ;;  %4045 = vrcp.f32 %v1267_v40  ;;  %v7619_v40 = vld [vmem:[#allocation82_spill] sm:$0xff] }
 0x192   :  { %1441 = vmatprep.subr.mxu0 %v7575_v41  ;;  %1512 = vmatprep.subr.mxu1 %v7576_v3  ;;  %v7597_v3 = vld [vmem:[#allocation60_spill] sm:$0xff]  ;;  %7648 = vst [vmem:[#allocation59_spill] sm:$0xff] %v5635_v54 }
 0x193   :  { %1442 = vmatpush1.msra.mxu0 %v7577_v63  ;;  %1513 = vmatpush1.msra.mxu1 %v7578_v2  ;;  %v7598_v63 = vld [vmem:[#allocation61_spill] sm:$0xff]  ;;  %v7599_v2 = vld [vmem:[#allocation62_spill] sm:$0xff]  ;;  %7649 = vst [vmem:[#allocation60_spill] sm:$0xff] %v5638_v18 }
 0x194   :  { %1443 = vmatprep.subr.mxu0 %v7579_v44  ;;  %1514 = vmatprep.subr.mxu1 %v7580_v59  ;;  %v7600_v44 = vld [vmem:[#allocation63_spill] sm:$0xff]  ;;  %7650 = vst [vmem:[#allocation61_spill] sm:$0xff] %v5641_v45  ;;  %7651 = vst [vmem:[#allocation62_spill] sm:$0xff] %v5644_v14 }
 0x195   :  { %1444 = vmatpush1.msra.mxu0 %v7581_v60  ;;  %1515 = vmatpush1.msra.mxu1 %v7582_v43  ;;  %v7601_v60 = vld [vmem:[#allocation64_spill] sm:$0xff]  ;;  %v7602_v43 = vld [vmem:[#allocation65_spill] sm:$0xff]  ;;  %7652 = vst [vmem:[#allocation63_spill] sm:$0xff] %v5647_v26 }
 0x196   :  { %1445 = vmatprep.subr.mxu0 %v7583_v42  ;;  %1516 = vmatprep.subr.mxu1 %v7584_v13  ;;  %v7603_v42 = vld [vmem:[#allocation66_spill] sm:$0xff]  ;;  %v7604_v13 = vld [vmem:[#allocation67_spill] sm:$0xff]  ;;  %7653 = vst [vmem:[#allocation64_spill] sm:$0xff] %v5650_v16  ;;  %7654 = vst [vmem:[#allocation65_spill] sm:$0xff] %v5653_v20 }
 0x197   :  { %1446 = vmatpush1.msra.mxu0 %v7585_v4  ;;  %1517 = vmatpush1.msra.mxu1 %v7586_v30  ;;  %v7605_v4 = vld [vmem:[#allocation68_spill] sm:$0xff]  ;;  %v7606_v30 = vld [vmem:[#allocation69_spill] sm:$0xff]  ;;  %7655 = vst [vmem:[#allocation66_spill] sm:$0xff] %v5656_v19  ;;  %7656 = vst [vmem:[#allocation67_spill] sm:$0xff] %v5659_v15 }
 0x198   :  { %1447 = vmatprep.subr.mxu0 %v7587_v37  ;;  %1518 = vmatprep.subr.mxu1 %v7588_v22  ;;  %v7607_v37 = vld [vmem:[#allocation70_spill] sm:$0xff]  ;;  %v7608_v22 = vld [vmem:[#allocation71_spill] sm:$0xff] }
 0x199   :  { %1448 = vmatpush1.msra.mxu0 %v7589_v50  ;;  %1519 = vmatpush1.msra.mxu1 %v7590_v61  ;;  %v7610_v50 = vld [vmem:[#allocation73_spill] sm:$0xff]  ;;  %v7611_v61 = vld [vmem:[#allocation74_spill] sm:$0xff] }
 0x19a   :  { %v4040_v8 = vpop.eup %4039  ;;  %1449 = vmatprep.subr.mxu0 %v7591_v58  ;;  %1520 = vmatprep.subr.mxu1 %v7592_v1  ;;  %v7613_v58 = vld [vmem:[#allocation76_spill] sm:$0xff]  ;;  %v7614_v1 = vld [vmem:[#allocation77_spill] sm:$0xff] }
 0x19b   :  { %v4042_v62 = vpop.eup %4041  ;;  %1450 = vmatpush1.msra.mxu0 %v7593_v5  ;;  %1521 = vmatpush1.msra.mxu1 %v7594_v51  ;;  %v7616_v5 = vld [vmem:[#allocation79_spill] sm:$0xff]  ;;  %v7617_v51 = vld [vmem:[#allocation80_spill] sm:$0xff] }
 0x19c   :  { %v4044_v46 = vpop.eup %4043  ;;  %1451 = vmatprep.subr.mxu0 %v7595_v17  ;;  %1522 = vmatprep.subr.mxu1 %v7596_v47  ;;  %v1271_v41 = vmul.f32 %v4042_v62, %v4040_v8  ;;  %v7612_v8 = vld [vmem:[#allocation75_spill] sm:$0xff]  ;;  %v7615_v62 = vld [vmem:[#allocation78_spill] sm:$0xff]  ;;  %v7621_v47 = vld [vmem:[#allocation84_spill] sm:$0xff] }
 0x19d   :  { %v1270_v57 = vmul.f32 0.0, %v4044_v46  ;;  %1452 = vmatpush1.msra.mxu0 %v7597_v3  ;;  %1523 = vmatpush1.msra.mxu1 %v7598_v63  ;;  %v7618_v46 = vld [vmem:[#allocation81_spill] sm:$0xff]  ;;  %v7620_v17 = vld [vmem:[#allocation83_spill] sm:$0xff] }
 0x19e   :  { %1453 = vmatprep.subr.mxu0 %v7599_v2  ;;  %1524 = vmatprep.subr.mxu1 %v7600_v44  ;;  %v7624_v3 = vld [vmem:[#allocation87_spill] sm:$0xff]  ;;  %v4046_v63 = vpop.eup %4045  ;;  %v5530_v44 = vld [vmem:[#allocation17 + $0x1b8] sm:$0xff] }
 0x19f   :  { %v5460_v59 = vadd.f32 %v1271_v41, %v1270_v57  ;;  %1454 = vmatpush1.msra.mxu0 %v7601_v60  ;;  %1525 = vmatpush1.msra.mxu1 %v7602_v43  ;;  %v7622_v57 = vld [vmem:[#allocation85_spill] sm:$0xff]  ;;  %v7623_v41 = vld [vmem:[#allocation86_spill] sm:$0xff]  ;;  %v5536_v43 = vld [vmem:[#allocation17 + $0x1b0] sm:$0xff] }
 0x1a0   :  { %1455 = vmatprep.subr.mxu0 %v7603_v42  ;;  %1526 = vmatprep.subr.mxu1 %v7604_v13  ;;  %v5533_v60 = vld [vmem:[#allocation17 + $0x1a0] sm:$0xff]  ;;  %v5539_v42 = vld [vmem:[#allocation17 + $0x188] sm:$0xff]  ;;  %v5542_v13 = vld [vmem:[#allocation17 + $0x198] sm:$0xff] }
 0x1a1   :  { %4047 = vtanh.f32 %v5460_v59  ;;  %1456 = vmatpush1.msra.mxu0 %v7605_v4  ;;  %1527 = vmatpush1.msra.mxu1 %v7606_v30  ;;  %v5545_v4 = vld [vmem:[#allocation17 + $0x180] sm:$0xff]  ;;  %v5548_v30 = vld [vmem:[#allocation17 + $0x190] sm:$0xff] }
 0x1a2   :  { %1457 = vmatprep.subr.mxu0 %v7607_v37  ;;  %1528 = vmatprep.subr.mxu1 %v7608_v22  ;;  %v5551_v37 = vld [vmem:[#allocation17 + $0x168] sm:$0xff]  ;;  %v5554_v22 = vld [vmem:[#allocation17 + $0x178] sm:$0xff] }
 0x1a3   :  { %1458 = vmatpush1.msra.mxu0 %v7609_v36  ;;  %1529 = vmatpush1.msra.mxu1 %v7610_v50  ;;  %v5557_v36 = vld [vmem:[#allocation17 + $0x160] sm:$0xff]  ;;  %v5560_v50 = vld [vmem:[#allocation17 + $0x170] sm:$0xff] }
 0x1a4   :  { %1459 = vmatprep.subr.mxu0 %v7611_v61  ;;  %1530 = vmatprep.subr.mxu1 %v7612_v8  ;;  %v5563_v61 = vld [vmem:[#allocation17 + $0x148] sm:$0xff]  ;;  %v5566_v8 = vld [vmem:[#allocation17 + $0x158] sm:$0xff] }
 0x1a5   :  { %1460 = vmatpush1.msra.mxu0 %v7613_v58  ;;  %1531 = vmatpush1.msra.mxu1 %v7614_v1  ;;  %v5569_v58 = vld [vmem:[#allocation17 + $0x140] sm:$0xff]  ;;  %v5572_v1 = vld [vmem:[#allocation17 + $0x150] sm:$0xff] }
 0x1a6   :  { %1461 = vmatprep.subr.mxu0 %v7615_v62  ;;  %1532 = vmatprep.subr.mxu1 %v7616_v5  ;;  %7626 = vst [vmem:[#allocation37_spill] sm:$0xff] %v5569_v58  ;;  %7627 = vst [vmem:[#allocation38_spill] sm:$0xff] %v5572_v1  ;;  %v5575_v62 = vld [vmem:[#allocation17 + $0x128] sm:$0xff]  ;;  %v5578_v5 = vld [vmem:[#allocation17 + $0x138] sm:$0xff] }
 0x1a7   :  { %1462 = vmatpush1.msra.mxu0 %v7617_v51  ;;  %1533 = vmatpush1.msra.mxu1 %v7618_v46  ;;  %7628 = vst [vmem:[#allocation39_spill] sm:$0xff] %v5575_v62  ;;  %7629 = vst [vmem:[#allocation40_spill] sm:$0xff] %v5578_v5  ;;  %v5581_v51 = vld [vmem:[#allocation17 + $0x120] sm:$0xff]  ;;  %v5584_v46 = vld [vmem:[#allocation17 + $0x130] sm:$0xff] }
 0x1a8   :  { %1463 = vmatprep.subr.mxu0 %v7619_v40  ;;  %1534 = vmatprep.subr.mxu1 %v7620_v17  ;;  %7630 = vst [vmem:[#allocation41_spill] sm:$0xff] %v5581_v51  ;;  %7631 = vst [vmem:[#allocation42_spill] sm:$0xff] %v5584_v46  ;;  %v5587_v40 = vld [vmem:[#allocation17 + $0x108] sm:$0xff]  ;;  %v5590_v17 = vld [vmem:[#allocation17 + $0x118] sm:$0xff] }
 0x1a9   :  { %1464 = vmatpush1.msra.mxu0 %v7621_v47  ;;  %1535 = vmatpush1.msra.mxu1 %v7622_v57  ;;  %7632 = vst [vmem:[#allocation43_spill] sm:$0xff] %v5587_v40  ;;  %7633 = vst [vmem:[#allocation44_spill] sm:$0xff] %v5590_v17  ;;  %v5593_v47 = vld [vmem:[#allocation17 + $0x100] sm:$0xff]  ;;  %v5596_v57 = vld [vmem:[#allocation17 + $0x110] sm:$0xff] }
 0x1aa   :  { %1465 = vmatprep.subr.mxu0 %v5087_v0  ;;  %1536 = vmatprep.subr.mxu1 %v7623_v41  ;;  %v5503_v0 = vld [vmem:[#allocation17 + $0x1e8] sm:$0xff]  ;;  %7634 = vst [vmem:[#allocation45_spill] sm:$0xff] %v5593_v47  ;;  %7635 = vst [vmem:[#allocation46_spill] sm:$0xff] %v5596_v57 }
 0x1ab   :  { %1466 = vmatpush1.msra.mxu0 %v5093_v32  ;;  %1537 = vmatpush1.msra.mxu1 %v7624_v3  ;;  %v5599_v41 = vld [vmem:[#allocation17 + $0xe8] sm:$0xff]  ;;  %v5602_v3 = vld [vmem:[#allocation17 + $0xf8] sm:$0xff] }
 0x1ac   :  { %1467 = vmatprep.subr.mxu0 %v5099_v34  ;;  %1538 = vmatprep.subr.mxu1 %v5101_v35  ;;  %v5506_v34 = vld [vmem:[#allocation17 + $0x1f8] sm:$0xff]  ;;  %v5509_v35 = vld [vmem:[#allocation17 + $0x1e0] sm:$0xff]  ;;  %7636 = vst [vmem:[#allocation47_spill] sm:$0xff] %v5599_v41  ;;  %7637 = vst [vmem:[#allocation48_spill] sm:$0xff] %v5602_v3 }
 0x1ad   :  { %1468 = vmatpush1.msra.mxu0 %v5105_v38  ;;  %1539 = vmatpush1.msra.mxu1 %v5107_v56  ;;  %v5512_v38 = vld [vmem:[#allocation17 + $0x1f0] sm:$0xff]  ;;  %v5521_v56 = vld [vmem:[#allocation17 + $0x1c0] sm:$0xff] }
 0x1ae   :  { %v4048_v2 = vpop.eup %4047  ;;  %1469 = vmatprep.subr.mxu0 %v5111_v39  ;;  %1540 = vmatprep.subr.mxu1 %v5113_v27  ;;  %v5518_v39 = vld [vmem:[#allocation17 + $0x1d8] sm:$0xff]  ;;  %v5527_v27 = vld [vmem:[#allocation17 + $0x1a8] sm:$0xff] }
 0x1af   :  { %1470 = vmatpush1.msra.mxu0 %v5117_v10  ;;  %1503 = vmatprep.mubr.f32.mxu0 %v7508_v31  ;;  %v5497_v32 = vmul.f32 %v4048_v2, %v4046_v63  ;;  %v5524_v10 = vld [vmem:[#allocation17 + $0x1d0] sm:$0xff]  ;;  %v5605_v63 = vld [vmem:[#allocation17 + $0xe0] sm:$0xff] }
 0x1b0   :  { %1541 = vmatpush1.msra.mxu1 %v5121_v33  ;;  %1574 = vmatprep.mubr.f32.mxu1 %v7508_v31  ;;  %v5515_v33 = vld [vmem:[#allocation17 + $0x1c8] sm:$0xff]  ;;  %7638 = vst [vmem:[#allocation49_spill] sm:$0xff] %v5605_v63  ;;  %v5608_v2 = vld [vmem:[#allocation17 + $0xf0] sm:$0xff] }
 0x1b1   :  { %7625 = vst [vmem:[#allocation36_spill] sm:$0xff] %v5497_v32  ;;  %1504 = vmatmul.mubr.f32.vlgmr.msra.gmra.mxu0 %v5497_v32  ;;  %1575 = vmatmul.mubr.f32.vlgmr.msra.gmra.mxu1 %v5497_v32  ;;  %7639 = vst [vmem:[#allocation50_spill] sm:$0xff] %v5608_v2  ;;  %v5632_v32 = vld [vmem:[#allocation17 + $0xb0] sm:$0xff] }
 0x1b2   :  { %1644 = vmatprep.subr.mxu0 %v5503_v0  ;;  %1715 = vmatprep.subr.mxu1 %v5506_v34  ;;  %7647 = vst [vmem:[#allocation58_spill] sm:$0xff] %v5632_v32 }
 0x1b3   :  { %1645 = vmatpush1.msra.mxu0 %v5509_v35  ;;  %1716 = vmatpush1.msra.mxu1 %v5512_v38 }
 0x1b4   :  { %1646 = vmatprep.subr.mxu0 %v5515_v33  ;;  %1717 = vmatprep.subr.mxu1 %v5518_v39 }
 0x1b5   :  { %1647 = vmatpush1.msra.mxu0 %v5521_v56  ;;  %1718 = vmatpush1.msra.mxu1 %v5524_v10 }
 0x1b6   :  { %1648 = vmatprep.subr.mxu0 %v5527_v27  ;;  %1719 = vmatprep.subr.mxu1 %v5530_v44 }
 0x1b7   :  { %1649 = vmatpush1.msra.mxu0 %v5533_v60  ;;  %1720 = vmatpush1.msra.mxu1 %v5536_v43 }
 0x1b8   :  { %1650 = vmatprep.subr.mxu0 %v5539_v42  ;;  %1721 = vmatprep.subr.mxu1 %v5542_v13 }
 0x1b9   :  { %1651 = vmatpush1.msra.mxu0 %v5545_v4  ;;  %1722 = vmatpush1.msra.mxu1 %v5548_v30 }
 0x1ba   :  { %1652 = vmatprep.subr.mxu0 %v5551_v37  ;;  %1723 = vmatprep.subr.mxu1 %v5554_v22 }
 0x1bb   :  { %1653 = vmatpush1.msra.mxu0 %v5557_v36  ;;  %1724 = vmatpush1.msra.mxu1 %v5560_v50 }
 0x1bc   :  { %1654 = vmatprep.subr.mxu0 %v5563_v61  ;;  %1725 = vmatprep.subr.mxu1 %v5566_v8 }
 0x1bd   :  { %1655 = vmatpush1.msra.mxu0 %v5569_v58  ;;  %1726 = vmatpush1.msra.mxu1 %v5572_v1 }
 0x1be   :  { %1656 = vmatprep.subr.mxu0 %v5575_v62  ;;  %1727 = vmatprep.subr.mxu1 %v5578_v5 }
 0x1bf   :  { %1657 = vmatpush1.msra.mxu0 %v5581_v51  ;;  %1728 = vmatpush1.msra.mxu1 %v5584_v46 }
 0x1c0   :  { %1658 = vmatprep.subr.mxu0 %v5587_v40  ;;  %1729 = vmatprep.subr.mxu1 %v5590_v17 }
 0x1c1   :  { %1659 = vmatpush1.msra.mxu0 %v5593_v47  ;;  %1730 = vmatpush1.msra.mxu1 %v5596_v57 }
 0x1c2   :  { %1660 = vmatprep.subr.mxu0 %v5599_v41  ;;  %1731 = vmatprep.subr.mxu1 %v5602_v3 }
 0x1c3   :  { %1661 = vmatpush1.msra.mxu0 %v5605_v63  ;;  %1732 = vmatpush1.msra.mxu1 %v5608_v2 }
 0x1c4   :  { %1662 = vmatprep.subr.mxu0 %v5611_v9  ;;  %1733 = vmatprep.subr.mxu1 %v5614_v49 }
 0x1c5   :  { %1663 = vmatpush1.msra.mxu0 %v5617_v53  ;;  %1734 = vmatpush1.msra.mxu1 %v5620_v24 }
 0x1c6   :  { %1664 = vmatprep.subr.mxu0 %v5623_v29  ;;  %1735 = vmatprep.subr.mxu1 %v5626_v28 }
 0x1c7   :  { %1665 = vmatpush1.msra.mxu0 %v5629_v23  ;;  %1736 = vmatpush1.msra.mxu1 %v5632_v32 }
 0x1c8   :  { %1666 = vmatprep.subr.mxu0 %v5635_v54  ;;  %1737 = vmatprep.subr.mxu1 %v5638_v18 }
 0x1c9   :  { %1667 = vmatpush1.msra.mxu0 %v5641_v45  ;;  %1738 = vmatpush1.msra.mxu1 %v5644_v14  ;;  %v5662_v14 = vld [vmem:[#allocation17 + $0x58] sm:$0xff] }
 0x1ca   :  { %1668 = vmatprep.subr.mxu0 %v5647_v26  ;;  %1739 = vmatprep.subr.mxu1 %v5650_v16  ;;  %7657 = vst [vmem:[#allocation68_spill] sm:$0xff] %v5662_v14  ;;  %v5665_v26 = vld [vmem:[#allocation17 + $0x40] sm:$0xff]  ;;  %v5668_v16 = vld [vmem:[#allocation17 + $0x50] sm:$0xff] }
 0x1cb   :  { %1669 = vmatpush1.msra.mxu0 %v5653_v20  ;;  %1740 = vmatpush1.msra.mxu1 %v5656_v19  ;;  %7658 = vst [vmem:[#allocation69_spill] sm:$0xff] %v5665_v26  ;;  %7659 = vst [vmem:[#allocation70_spill] sm:$0xff] %v5668_v16  ;;  %v5671_v20 = vld [vmem:[#allocation17 + $0x28] sm:$0xff]  ;;  %v5674_v19 = vld [vmem:[#allocation17 + $0x38] sm:$0xff] }
 0x1cc   :  { %1670 = vmatprep.subr.mxu0 %v5659_v15  ;;  %1741 = vmatprep.subr.mxu1 %v5662_v14  ;;  %7660 = vst [vmem:[#allocation71_spill] sm:$0xff] %v5671_v20  ;;  %7661 = vst [vmem:[#allocation72_spill] sm:$0xff] %v5674_v19  ;;  %v5677_v15 = vld [vmem:[#allocation17 + $0x20] sm:$0xff]  ;;  %v5680_v14 = vld [vmem:[#allocation17 + $0x30] sm:$0xff] }
 0x1cd   :  { %1671 = vmatpush1.msra.mxu0 %v5665_v26  ;;  %1742 = vmatpush1.msra.mxu1 %v5668_v16  ;;  %7662 = vst [vmem:[#allocation73_spill] sm:$0xff] %v5677_v15  ;;  %7663 = vst [vmem:[#allocation74_spill] sm:$0xff] %v5680_v14  ;;  %v5683_v26 = vld [vmem:[#allocation17 + $0x8] sm:$0xff]  ;;  %v5686_v16 = vld [vmem:[#allocation17 + $0x18] sm:$0xff] }
 0x1ce   :  { %1672 = vmatprep.subr.mxu0 %v5671_v20  ;;  %1743 = vmatprep.subr.mxu1 %v5674_v19  ;;  %7664 = vst [vmem:[#allocation75_spill] sm:$0xff] %v5683_v26  ;;  %7665 = vst [vmem:[#allocation76_spill] sm:$0xff] %v5686_v16  ;;  %v5689_v20 = vld [vmem:[#allocation17] sm:$0xff]  ;;  %v5692_v19 = vld [vmem:[#allocation17 + $0x10] sm:$0xff] }
 0x1cf   :  { %1673 = vmatpush1.msra.mxu0 %v5677_v15  ;;  %1744 = vmatpush1.msra.mxu1 %v5680_v14  ;;  %7666 = vst [vmem:[#allocation77_spill] sm:$0xff] %v5689_v20  ;;  %7667 = vst [vmem:[#allocation78_spill] sm:$0xff] %v5692_v19  ;;  %v5697_v14 = vld [vmem:[#allocation17 + $0x3e8] sm:$0xff] }
 0x1d0   :  { %1674 = vmatprep.subr.mxu0 %v5683_v26  ;;  %1745 = vmatprep.subr.mxu1 %v5686_v16  ;;  %7668 = vst [vmem:[#allocation79_spill] sm:$0xff] %v5697_v14  ;;  %v5700_v26 = vld [vmem:[#allocation17 + $0x3f8] sm:$0xff] }
 0x1d1   :  { %1675 = vmatpush1.msra.mxu0 %v5689_v20  ;;  %1746 = vmatpush1.msra.mxu1 %v5692_v19  ;;  %7669 = vst [vmem:[#allocation80_spill] sm:$0xff] %v5700_v26 }
 0x1d2   :  { %1708 = vmatprep.mubr.f32.mxu0 %v7508_v31  ;;  %1779 = vmatprep.mubr.f32.mxu1 %v7508_v31 }
 0x1d3   :  { %1797 = vmatprep.subr.mxu0 %v5697_v14  ;;  %1868 = vmatprep.subr.mxu1 %v5700_v26 }
 0x250   :  { %v1352_v16 = vpop.f32.mrf.mxu0  ;;  %v1423_v19 = vpop.f32.mrf.mxu1 }
 0x251   :  { %v1428_v15 = vadd.f32 %v1352_v16, %v5232_v6  ;;  %v1430_v14 = vadd.f32 %v1423_v19, %v5235_v7 }
 0x252   :  { %v1354_v20 = vpop.f32.mrf.mxu0  ;;  %v1425_v32 = vpop.f32.mrf.mxu1 }
 0x253   :  { %v3906_v45 = vmul.f32 -1.442695, %v1428_v15  ;;  %v1429_v18 = vadd.f32 %v1354_v20, %v5238_v11  ;;  %v1431_v23 = vadd.f32 %v1425_v32, %v5241_v12 }
 0x255   :  { %4049 = vpow2.f32 %v3906_v45  ;;  %v3907_v54 = vmul.f32 -1.442695, %v1429_v18  ;;  %v3908_v28 = vmul.f32 -1.442695, %v1431_v23 }
 0x257   :  { %4051 = vpow2.f32 %v3907_v54 }
 0x258   :  { %4053 = vtanh.f32 %v1430_v14 }
 0x259   :  { %4055 = vpow2.f32 %v3908_v28 }
 0x262   :  { %v4050_v29 = vpop.eup %4049 }
 0x263   :  { %v1588_v24 = vadd.f32 1.0, %v4050_v29 }
 0x264   :  { %v4052_v26 = vpop.eup %4051 }
 0x265   :  { %4057 = vrcp.f32 %v1588_v24  ;;  %v1594_v6 = vadd.f32 1.0, %v4052_v26  ;;  %v4054_v15 = vpop.eup %4053 }
 0x266   :  { %v4056_v11 = vpop.eup %4055 }
 0x267   :  { %4059 = vrcp.f32 %v1594_v6  ;;  %v1601_v23 = vadd.f32 1.0, %v4056_v11 }
 0x271   :  { %v1505_v16 = vpop.f32.mrf.mxu0  ;;  %v1576_v28 = vpop.f32.mrf.mxu1 }
 0x272   :  { %v4058_v20 = vpop.eup %4057  ;;  %v1581_v18 = vadd.f32 %v1505_v16, %v5402_v55  ;;  %v1583_v55 = vadd.f32 %v1576_v28, %v5405_v52  ;;  %v5722_v52 = vld [vmem:[#allocation17 + $0x3f0] sm:$0xff] }
 0x273   :  { %v1605_v45 = vmul.f32 %v4058_v20, %v4054_v15  ;;  %v1507_v54 = vpop.f32.mrf.mxu0  ;;  %v1578_v26 = vpop.f32.mrf.mxu1  ;;  %v5746_v28 = vld [vmem:[#allocation17 + $0x3b0] sm:$0xff] }
 0x274   :  { %v4060_v12 = vpop.eup %4059  ;;  %v3909_v32 = vmul.f32 -1.442695, %v1581_v18  ;;  %v1582_v7 = vadd.f32 %v1507_v54, %v5408_v21  ;;  %v1584_v14 = vadd.f32 %v1578_v26, %v5411_v48  ;;  %v5719_v48 = vld [vmem:[#allocation17 + $0x3e0] sm:$0xff]  ;;  %v5728_v54 = vld [vmem:[#allocation17 + $0x3d8] sm:$0xff] }
 0x275   :  { %v1604_v19 = vmul.f32 %v4060_v12, %v5423_v25  ;;  %v5731_v12 = vld [vmem:[#allocation17 + $0x3c0] sm:$0xff]  ;;  %v5752_v26 = vld [vmem:[#allocation17 + $0x398] sm:$0xff] }
 0x276   :  { %4061 = vpow2.f32 %v3909_v32  ;;  %v3910_v24 = vmul.f32 -1.442695, %v1582_v7  ;;  %v3911_v6 = vmul.f32 -1.442695, %v1584_v14  ;;  %v5734_v32 = vld [vmem:[#allocation17 + $0x3d0] sm:$0xff]  ;;  %v5737_v7 = vld [vmem:[#allocation17 + $0x3a8] sm:$0xff] }
 0x277   :  { %v5710_v29 = vadd.f32 %v1605_v45, %v1604_v19  ;;  %v5725_v45 = vld [vmem:[#allocation17 + $0x3c8] sm:$0xff]  ;;  %v5740_v19 = vld [vmem:[#allocation17 + $0x3b8] sm:$0xff]  ;;  %7671 = vst [vmem:[#allocation82_spill] sm:$0xff] %v5752_v26 }
 0x278   :  { %4063 = vpow2.f32 %v3910_v24  ;;  %v5749_v24 = vld [vmem:[#allocation17 + $0x388] sm:$0xff] }
 0x279   :  { %4065 = vrcp.f32 %v1601_v23  ;;  %v5743_v23 = vld [vmem:[#allocation17 + $0x3a0] sm:$0xff]  ;;  %7670 = vst [vmem:[#allocation81_spill] sm:$0xff] %v5749_v24 }
 0x27a   :  { %4067 = vtanh.f32 %v5710_v29 }
 0x27b   :  { %4069 = vtanh.f32 %v1583_v55  ;;  %v5755_v55 = vld [vmem:[#allocation17 + $0x380] sm:$0xff] }
 0x27c   :  { %4071 = vpow2.f32 %v3911_v6  ;;  %7672 = vst [vmem:[#allocation83_spill] sm:$0xff] %v5755_v55  ;;  %v5758_v6 = vld [vmem:[#allocation17 + $0x390] sm:$0xff] }
 0x27d   :  { %7673 = vst [vmem:[#allocation84_spill] sm:$0xff] %v5758_v6 }
 0x283   :  { %v4062_v15 = vpop.eup %4061 }
 0x284   :  { %v1612_v21 = vadd.f32 1.0, %v4062_v15 }
 0x285   :  { %v4064_v25 = vpop.eup %4063 }
 0x286   :  { %v4066_v11 = vpop.eup %4065  ;;  %4073 = vrcp.f32 %v1612_v21  ;;  %v1618_v16 = vadd.f32 1.0, %v4064_v25  ;;  %v5761_v21 = vld [vmem:[#allocation17 + $0x368] sm:$0xff]  ;;  %v5764_v25 = vld [vmem:[#allocation17 + $0x378] sm:$0xff] }
 0x287   :  { %v4068_v20 = vpop.eup %4067  ;;  %7674 = vst [vmem:[#allocation85_spill] sm:$0xff] %v5761_v21  ;;  %7675 = vst [vmem:[#allocation86_spill] sm:$0xff] %v5764_v25 }
 0x288   :  { %4075 = vrcp.f32 %v1618_v16  ;;  %v5715_v18 = vmul.f32 %v4068_v20, %v4066_v11  ;;  %v4070_v14 = vpop.eup %4069  ;;  %v5767_v16 = vld [vmem:[#allocation17 + $0x360] sm:$0xff]  ;;  %v5770_v20 = vld [vmem:[#allocation17 + $0x370] sm:$0xff] }
 0x289   :  { %v4072_v15 = vpop.eup %4071  ;;  %7676 = vst [vmem:[#allocation87_spill] sm:$0xff] %v5767_v16  ;;  %7677 = vst [vmem:[#allocation126_spill] sm:$0xff] %v5770_v20 }
 0x28a   :  { %1709 = vmatmul.mubr.f32.vlgmr.msra.gmra.mxu0 %v5715_v18  ;;  %1780 = vmatmul.mubr.f32.vlgmr.msra.gmra.mxu1 %v5715_v18 }
 0x28b   :  { %1798 = vmatpush1.msra.mxu0 %v5719_v48  ;;  %1869 = vmatpush1.msra.mxu1 %v5722_v52 }
 0x28c   :  { %1799 = vmatprep.subr.mxu0 %v5725_v45  ;;  %1870 = vmatprep.subr.mxu1 %v5728_v54 }
 0x28d   :  { %1800 = vmatpush1.msra.mxu0 %v5731_v12  ;;  %1871 = vmatpush1.msra.mxu1 %v5734_v32 }
 0x28e   :  { %1801 = vmatprep.subr.mxu0 %v5737_v7  ;;  %1872 = vmatprep.subr.mxu1 %v5740_v19 }
 0x28f   :  { %1802 = vmatpush1.msra.mxu0 %v5743_v23  ;;  %1873 = vmatpush1.msra.mxu1 %v5746_v28 }
 0x290   :  { %1803 = vmatprep.subr.mxu0 %v5749_v24  ;;  %1874 = vmatprep.subr.mxu1 %v5752_v26  ;;  %v5776_v26 = vld [vmem:[#allocation17 + $0x358] sm:$0xff]  ;;  %v5779_v24 = vld [vmem:[#allocation17 + $0x340] sm:$0xff] }
 0x291   :  { %1804 = vmatpush1.msra.mxu0 %v5755_v55  ;;  %1875 = vmatpush1.msra.mxu1 %v5758_v6  ;;  %v5773_v6 = vld [vmem:[#allocation17 + $0x348] sm:$0xff]  ;;  %7679 = vst [vmem:[#allocation128_spill] sm:$0xff] %v5776_v26  ;;  %7680 = vst [vmem:[#allocation129_spill] sm:$0xff] %v5779_v24 }
 0x292   :  { %1805 = vmatprep.subr.mxu0 %v5761_v21  ;;  %1876 = vmatprep.subr.mxu1 %v5764_v25  ;;  %7678 = vst [vmem:[#allocation127_spill] sm:$0xff] %v5773_v6  ;;  %v1625_v25 = vadd.f32 1.0, %v4072_v15  ;;  %v5795_v15 = vld [vmem:[#allocation17 + $0x330] sm:$0xff] }
 0x293   :  { %v4074_v11 = vpop.eup %4073  ;;  %1806 = vmatpush1.msra.mxu0 %v5767_v16  ;;  %1877 = vmatpush1.msra.mxu1 %v5770_v20  ;;  %v5782_v16 = vld [vmem:[#allocation17 + $0x350] sm:$0xff]  ;;  %7684 = vst [vmem:[#allocation133_spill] sm:$0xff] %v5795_v15 }
 0x294   :  { %v1629_v55 = vmul.f32 %v4074_v11, %v4070_v14  ;;  %1807 = vmatprep.subr.mxu0 %v5773_v6  ;;  %1878 = vmatprep.subr.mxu1 %v5776_v26  ;;  %7681 = vst [vmem:[#allocation130_spill] sm:$0xff] %v5782_v16  ;;  %v5786_v11 = vld [vmem:[#allocation17 + $0x328] sm:$0xff]  ;;  %v5789_v6 = vld [vmem:[#allocation17 + $0x338] sm:$0xff]  ;;  %v5792_v26 = vld [vmem:[#allocation17 + $0x320] sm:$0xff]  ;;  %4077 = vrcp.f32 %v1625_v25 }
 0x295   :  { %v4076_v21 = vpop.eup %4075  ;;  %1808 = vmatpush1.msra.mxu0 %v5779_v24  ;;  %1879 = vmatpush1.msra.mxu1 %v5782_v16  ;;  %7682 = vst [vmem:[#allocation131_spill] sm:$0xff] %v5789_v6  ;;  %7683 = vst [vmem:[#allocation132_spill] sm:$0xff] %v5792_v26  ;;  %v5800_v16 = vld [vmem:[#allocation17 + $0x308] sm:$0xff]  ;;  %v5822_v25 = vld [vmem:[#allocation17 + $0x2f0] sm:$0xff] }
 0x296   :  { %v1628_v14 = vmul.f32 %v4076_v21, %v5460_v59  ;;  %1809 = vmatprep.subr.mxu0 %v5786_v11  ;;  %1880 = vmatprep.subr.mxu1 %v5789_v6  ;;  %7685 = vst [vmem:[#allocation134_spill] sm:$0xff] %v5800_v16  ;;  %v5803_v59 = vld [vmem:[#allocation17 + $0x318] sm:$0xff]  ;;  %v5806_v21 = vld [vmem:[#allocation17 + $0x300] sm:$0xff]  ;;  %7692 = vst [vmem:[#allocation141_spill] sm:$0xff] %v5822_v25 }
 0x297   :  { %1810 = vmatpush1.msra.mxu0 %v5792_v26  ;;  %1881 = vmatpush1.msra.mxu1 %v5795_v15  ;;  %7686 = vst [vmem:[#allocation135_spill] sm:$0xff] %v5803_v59  ;;  %7687 = vst [vmem:[#allocation136_spill] sm:$0xff] %v5806_v21  ;;  %v5809_v26 = vld [vmem:[#allocation17 + $0x310] sm:$0xff]  ;;  %v5812_v15 = vld [vmem:[#allocation17 + $0x2e8] sm:$0xff] }
 0x298   :  { %v5798_v24 = vadd.f32 %v1629_v55, %v1628_v14  ;;  %1811 = vmatprep.subr.mxu0 %v5800_v16  ;;  %1882 = vmatprep.subr.mxu1 %v5803_v59  ;;  %7688 = vst [vmem:[#allocation137_spill] sm:$0xff] %v5809_v26  ;;  %7689 = vst [vmem:[#allocation138_spill] sm:$0xff] %v5812_v15  ;;  %v5815_v55 = vld [vmem:[#allocation17 + $0x2f8] sm:$0xff]  ;;  %v5819_v14 = vld [vmem:[#allocation17 + $0x2e0] sm:$0xff] }
 0x299   :  { %1812 = vmatpush1.msra.mxu0 %v5806_v21  ;;  %1883 = vmatpush1.msra.mxu1 %v5809_v26  ;;  %7690 = vst [vmem:[#allocation139_spill] sm:$0xff] %v5815_v55  ;;  %7691 = vst [vmem:[#allocation140_spill] sm:$0xff] %v5819_v14  ;;  %v5825_v21 = vld [vmem:[#allocation17 + $0x2c8] sm:$0xff]  ;;  %v5828_v26 = vld [vmem:[#allocation17 + $0x2d8] sm:$0xff] }
 0x29a   :  { %1813 = vmatprep.subr.mxu0 %v5812_v15  ;;  %1884 = vmatprep.subr.mxu1 %v5815_v55  ;;  %4079 = vtanh.f32 %v5798_v24  ;;  %7693 = vst [vmem:[#allocation142_spill] sm:$0xff] %v5825_v21  ;;  %7694 = vst [vmem:[#allocation143_spill] sm:$0xff] %v5828_v26  ;;  %v5831_v15 = vld [vmem:[#allocation17 + $0x2c0] sm:$0xff]  ;;  %v5834_v55 = vld [vmem:[#allocation17 + $0x2d0] sm:$0xff] }
 0x29b   :  { %1814 = vmatpush1.msra.mxu0 %v5819_v14  ;;  %1885 = vmatpush1.msra.mxu1 %v5822_v25  ;;  %7695 = vst [vmem:[#allocation144_spill] sm:$0xff] %v5831_v15  ;;  %7696 = vst [vmem:[#allocation145_spill] sm:$0xff] %v5834_v55  ;;  %v5837_v14 = vld [vmem:[#allocation17 + $0x2a8] sm:$0xff]  ;;  %v5840_v25 = vld [vmem:[#allocation17 + $0x2b8] sm:$0xff] }
 0x29c   :  { %1815 = vmatprep.subr.mxu0 %v5825_v21  ;;  %1886 = vmatprep.subr.mxu1 %v5828_v26  ;;  %7697 = vst [vmem:[#allocation146_spill] sm:$0xff] %v5837_v14  ;;  %7698 = vst [vmem:[#allocation147_spill] sm:$0xff] %v5840_v25  ;;  %v5843_v21 = vld [vmem:[#allocation17 + $0x2a0] sm:$0xff]  ;;  %v5846_v26 = vld [vmem:[#allocation17 + $0x2b0] sm:$0xff] }
 0x29d   :  { %1816 = vmatpush1.msra.mxu0 %v5831_v15  ;;  %1887 = vmatpush1.msra.mxu1 %v5834_v55  ;;  %7699 = vst [vmem:[#allocation148_spill] sm:$0xff] %v5843_v21  ;;  %7700 = vst [vmem:[#allocation149_spill] sm:$0xff] %v5846_v26  ;;  %v5849_v15 = vld [vmem:[#allocation17 + $0x288] sm:$0xff]  ;;  %v5852_v55 = vld [vmem:[#allocation17 + $0x298] sm:$0xff] }
 0x29e   :  { %1817 = vmatprep.subr.mxu0 %v5837_v14  ;;  %1888 = vmatprep.subr.mxu1 %v5840_v25  ;;  %7701 = vst [vmem:[#allocation150_spill] sm:$0xff] %v5849_v15  ;;  %7702 = vst [vmem:[#allocation151_spill] sm:$0xff] %v5852_v55  ;;  %v5855_v14 = vld [vmem:[#allocation17 + $0x280] sm:$0xff]  ;;  %v5858_v25 = vld [vmem:[#allocation17 + $0x290] sm:$0xff] }
 0x29f   :  { %1818 = vmatpush1.msra.mxu0 %v5843_v21  ;;  %1889 = vmatpush1.msra.mxu1 %v5846_v26  ;;  %7703 = vst [vmem:[#allocation152_spill] sm:$0xff] %v5855_v14  ;;  %7704 = vst [vmem:[#allocation153_spill] sm:$0xff] %v5858_v25  ;;  %v5861_v21 = vld [vmem:[#allocation17 + $0x268] sm:$0xff]  ;;  %v5864_v26 = vld [vmem:[#allocation17 + $0x278] sm:$0xff] }
 0x2a0   :  { %1819 = vmatprep.subr.mxu0 %v5849_v15  ;;  %1890 = vmatprep.subr.mxu1 %v5852_v55  ;;  %7705 = vst [vmem:[#allocation154_spill] sm:$0xff] %v5861_v21  ;;  %7706 = vst [vmem:[#allocation155_spill] sm:$0xff] %v5864_v26  ;;  %v5867_v15 = vld [vmem:[#allocation17 + $0x260] sm:$0xff]  ;;  %v5870_v55 = vld [vmem:[#allocation17 + $0x270] sm:$0xff] }
 0x2a1   :  { %1820 = vmatpush1.msra.mxu0 %v5855_v14  ;;  %1891 = vmatpush1.msra.mxu1 %v5858_v25  ;;  %7707 = vst [vmem:[#allocation156_spill] sm:$0xff] %v5867_v15  ;;  %7708 = vst [vmem:[#allocation157_spill] sm:$0xff] %v5870_v55  ;;  %v5873_v14 = vld [vmem:[#allocation17 + $0x248] sm:$0xff]  ;;  %v5876_v25 = vld [vmem:[#allocation17 + $0x258] sm:$0xff] }
 0x2a2   :  { %1821 = vmatprep.subr.mxu0 %v5861_v21  ;;  %1892 = vmatprep.subr.mxu1 %v5864_v26  ;;  %7709 = vst [vmem:[#allocation158_spill] sm:$0xff] %v5873_v14  ;;  %7710 = vst [vmem:[#allocation159_spill] sm:$0xff] %v5876_v25  ;;  %v5879_v21 = vld [vmem:[#allocation17 + $0x240] sm:$0xff]  ;;  %v5882_v26 = vld [vmem:[#allocation17 + $0x250] sm:$0xff] }
 0x2a3   :  { %1822 = vmatpush1.msra.mxu0 %v5867_v15  ;;  %1893 = vmatpush1.msra.mxu1 %v5870_v55  ;;  %7711 = vst [vmem:[#allocation160_spill] sm:$0xff] %v5879_v21  ;;  %7712 = vst [vmem:[#allocation161_spill] sm:$0xff] %v5882_v26  ;;  %v4078_v15 = vpop.eup %4077  ;;  %v5885_v59 = vld [vmem:[#allocation17 + $0x228] sm:$0xff]  ;;  %v5888_v55 = vld [vmem:[#allocation17 + $0x238] sm:$0xff] }
 0x2a4   :  { %1823 = vmatprep.subr.mxu0 %v5873_v14  ;;  %1894 = vmatprep.subr.mxu1 %v5876_v25  ;;  %7713 = vst [vmem:[#allocation162_spill] sm:$0xff] %v5885_v59  ;;  %7714 = vst [vmem:[#allocation163_spill] sm:$0xff] %v5888_v55  ;;  %v5891_v16 = vld [vmem:[#allocation17 + $0x220] sm:$0xff]  ;;  %v5894_v25 = vld [vmem:[#allocation17 + $0x230] sm:$0xff] }
 0x2a5   :  { %1824 = vmatpush1.msra.mxu0 %v5879_v21  ;;  %1895 = vmatpush1.msra.mxu1 %v5882_v26  ;;  %7715 = vst [vmem:[#allocation164_spill] sm:$0xff] %v5891_v16  ;;  %7716 = vst [vmem:[#allocation165_spill] sm:$0xff] %v5894_v25  ;;  %v5897_v21 = vld [vmem:[#allocation17 + $0x208] sm:$0xff]  ;;  %v5900_v26 = vld [vmem:[#allocation17 + $0x218] sm:$0xff] }
 0x2a6   :  { %1825 = vmatprep.subr.mxu0 %v5885_v59  ;;  %1896 = vmatprep.subr.mxu1 %v5888_v55  ;;  %v5905_v55 = vld [vmem:[#allocation17 + $0x200] sm:$0xff] }
 0x2a7   :  { %v4080_v14 = vpop.eup %4079  ;;  %1826 = vmatpush1.msra.mxu0 %v5891_v16  ;;  %1897 = vmatpush1.msra.mxu1 %v5894_v25  ;;  %v5909_v16 = vld [vmem:[#allocation17 + $0x210] sm:$0xff] }
 0x2a8   :  { %1827 = vmatprep.subr.mxu0 %v5897_v21  ;;  %1898 = vmatprep.subr.mxu1 %v5900_v26  ;;  %v5903_v59 = vmul.f32 %v4080_v14, %v4078_v15  ;;  %v7717_v15 = vld [vmem:[#allocation54_spill] sm:$0xff]  ;;  %v7718_v14 = vld [vmem:[#allocation55_spill] sm:$0xff] }
 0x2a9   :  { %1828 = vmatpush1.msra.mxu0 %v5905_v55  ;;  %1861 = vmatprep.mubr.f32.mxu0 %v7508_v31 }
 0x2aa   :  { %1899 = vmatpush1.msra.mxu1 %v5909_v16  ;;  %1932 = vmatprep.mubr.f32.mxu1 %v7508_v31 }
 0x2ab   :  { %1862 = vmatmul.mubr.f32.vlgmr.msra.gmra.mxu0 %v5903_v59  ;;  %1933 = vmatmul.mubr.f32.vlgmr.msra.gmra.mxu1 %v5903_v59 }
 0x2ac   :  { %2002 = vmatprep.subr.mxu0 %v5503_v0  ;;  %2073 = vmatprep.subr.mxu1 %v5506_v34 }
 0x2ad   :  { %2003 = vmatpush1.msra.mxu0 %v5509_v35  ;;  %2074 = vmatpush1.msra.mxu1 %v5512_v38 }
 0x2ae   :  { %2004 = vmatprep.subr.mxu0 %v5515_v33  ;;  %2075 = vmatprep.subr.mxu1 %v5518_v39 }
 0x2af   :  { %2005 = vmatpush1.msra.mxu0 %v5521_v56  ;;  %2076 = vmatpush1.msra.mxu1 %v5524_v10 }
 0x2b0   :  { %2006 = vmatprep.subr.mxu0 %v5527_v27  ;;  %2077 = vmatprep.subr.mxu1 %v5530_v44 }
 0x2b1   :  { %2007 = vmatpush1.msra.mxu0 %v5533_v60  ;;  %2078 = vmatpush1.msra.mxu1 %v5536_v43 }
 0x2b2   :  { %2008 = vmatprep.subr.mxu0 %v5539_v42  ;;  %2079 = vmatprep.subr.mxu1 %v5542_v13 }
 0x2b3   :  { %2009 = vmatpush1.msra.mxu0 %v5545_v4  ;;  %2080 = vmatpush1.msra.mxu1 %v5548_v30 }
 0x2b4   :  { %2010 = vmatprep.subr.mxu0 %v5551_v37  ;;  %2081 = vmatprep.subr.mxu1 %v5554_v22 }
 0x2b5   :  { %2011 = vmatpush1.msra.mxu0 %v5557_v36  ;;  %2082 = vmatpush1.msra.mxu1 %v5560_v50 }
 0x2b6   :  { %2012 = vmatprep.subr.mxu0 %v5563_v61  ;;  %2083 = vmatprep.subr.mxu1 %v5566_v8 }
 0x2b7   :  { %2013 = vmatpush1.msra.mxu0 %v5569_v58  ;;  %2084 = vmatpush1.msra.mxu1 %v5572_v1 }
 0x2b8   :  { %2014 = vmatprep.subr.mxu0 %v5575_v62  ;;  %2085 = vmatprep.subr.mxu1 %v5578_v5 }
 0x2b9   :  { %2015 = vmatpush1.msra.mxu0 %v5581_v51  ;;  %2086 = vmatpush1.msra.mxu1 %v5584_v46  ;;  %v7747_v51 = vld [vmem:[#allocation26_spill] sm:$0xff] }
 0x2ba   :  { %2016 = vmatprep.subr.mxu0 %v5587_v40  ;;  %2087 = vmatprep.subr.mxu1 %v5590_v17  ;;  %v7746_v40 = vld [vmem:[#allocation28_spill] sm:$0xff] }
 0x2bb   :  { %2017 = vmatpush1.msra.mxu0 %v5593_v47  ;;  %2088 = vmatpush1.msra.mxu1 %v5596_v57  ;;  %v7719_v47 = vld [vmem:[#allocation56_spill] sm:$0xff]  ;;  %v7720_v57 = vld [vmem:[#allocation57_spill] sm:$0xff] }
 0x2bc   :  { %2018 = vmatprep.subr.mxu0 %v5599_v41  ;;  %2089 = vmatprep.subr.mxu1 %v5602_v3  ;;  %v7721_v41 = vld [vmem:[#allocation58_spill] sm:$0xff]  ;;  %v7722_v3 = vld [vmem:[#allocation59_spill] sm:$0xff] }
 0x2bd   :  { %2019 = vmatpush1.msra.mxu0 %v5605_v63  ;;  %2090 = vmatpush1.msra.mxu1 %v5608_v2  ;;  %v7723_v63 = vld [vmem:[#allocation60_spill] sm:$0xff]  ;;  %v7724_v2 = vld [vmem:[#allocation61_spill] sm:$0xff] }
 0x2be   :  { %2020 = vmatprep.subr.mxu0 %v5611_v9  ;;  %2091 = vmatprep.subr.mxu1 %v5614_v49  ;;  %v7725_v9 = vld [vmem:[#allocation62_spill] sm:$0xff]  ;;  %v7726_v49 = vld [vmem:[#allocation63_spill] sm:$0xff] }
 0x2bf   :  { %2021 = vmatpush1.msra.mxu0 %v5617_v53  ;;  %2092 = vmatpush1.msra.mxu1 %v7717_v15  ;;  %v7727_v53 = vld [vmem:[#allocation64_spill] sm:$0xff]  ;;  %v7728_v15 = vld [vmem:[#allocation65_spill] sm:$0xff] }
 0x2c0   :  { %2022 = vmatprep.subr.mxu0 %v7718_v14  ;;  %2093 = vmatprep.subr.mxu1 %v7719_v47  ;;  %v7729_v14 = vld [vmem:[#allocation66_spill] sm:$0xff]  ;;  %v7730_v47 = vld [vmem:[#allocation67_spill] sm:$0xff] }
 0x2c1   :  { %2023 = vmatpush1.msra.mxu0 %v7720_v57  ;;  %2094 = vmatpush1.msra.mxu1 %v7721_v41  ;;  %v7731_v57 = vld [vmem:[#allocation68_spill] sm:$0xff]  ;;  %v7732_v41 = vld [vmem:[#allocation69_spill] sm:$0xff] }
 0x2c2   :  { %2024 = vmatprep.subr.mxu0 %v7722_v3  ;;  %2095 = vmatprep.subr.mxu1 %v7723_v63  ;;  %v7733_v3 = vld [vmem:[#allocation70_spill] sm:$0xff]  ;;  %v7734_v63 = vld [vmem:[#allocation71_spill] sm:$0xff] }
 0x2c3   :  { %2025 = vmatpush1.msra.mxu0 %v7724_v2  ;;  %2096 = vmatpush1.msra.mxu1 %v7725_v9  ;;  %v7735_v2 = vld [vmem:[#allocation72_spill] sm:$0xff]  ;;  %v7736_v9 = vld [vmem:[#allocation73_spill] sm:$0xff] }
 0x2c4   :  { %2026 = vmatprep.subr.mxu0 %v7726_v49  ;;  %2097 = vmatprep.subr.mxu1 %v7727_v53  ;;  %v7737_v49 = vld [vmem:[#allocation74_spill] sm:$0xff]  ;;  %v7738_v53 = vld [vmem:[#allocation75_spill] sm:$0xff] }
 0x2c5   :  { %2027 = vmatpush1.msra.mxu0 %v7728_v15  ;;  %2098 = vmatpush1.msra.mxu1 %v7729_v14  ;;  %v7739_v15 = vld [vmem:[#allocation76_spill] sm:$0xff]  ;;  %v7740_v14 = vld [vmem:[#allocation77_spill] sm:$0xff] }
 0x2c6   :  { %2028 = vmatprep.subr.mxu0 %v7730_v47  ;;  %2099 = vmatprep.subr.mxu1 %v7731_v57  ;;  %v7741_v47 = vld [vmem:[#allocation78_spill] sm:$0xff] }
 0x2c7   :  { %2029 = vmatpush1.msra.mxu0 %v7732_v41  ;;  %2100 = vmatpush1.msra.mxu1 %v7733_v3  ;;  %v7742_v3 = vld [vmem:[#allocation79_spill] sm:$0xff] }
 0x2c8   :  { %2030 = vmatprep.subr.mxu0 %v7734_v63  ;;  %2101 = vmatprep.subr.mxu1 %v7735_v2  ;;  %v7743_v63 = vld [vmem:[#allocation80_spill] sm:$0xff] }
 0x2c9   :  { %2031 = vmatpush1.msra.mxu0 %v7736_v9  ;;  %2102 = vmatpush1.msra.mxu1 %v7737_v49  ;;  %v7744_v9 = vld [vmem:[#allocation25_spill] sm:$0xff] }
 0x2ca   :  { %2032 = vmatprep.subr.mxu0 %v7738_v53  ;;  %2103 = vmatprep.subr.mxu1 %v7739_v15  ;;  %v7745_v53 = vld [vmem:[#allocation27_spill] sm:$0xff] }
 0x2cb   :  { %2033 = vmatpush1.msra.mxu0 %v7740_v14  ;;  %2104 = vmatpush1.msra.mxu1 %v7741_v47 }
 0x2cc   :  { %2066 = vmatprep.mubr.f32.mxu0 %v7508_v31  ;;  %2137 = vmatprep.mubr.f32.mxu1 %v7508_v31 }
 0x2cd   :  { %2155 = vmatprep.subr.mxu0 %v7742_v3  ;;  %2226 = vmatprep.subr.mxu1 %v7743_v63 }
 0x34a   :  { %v1710_v2 = vpop.f32.mrf.mxu0  ;;  %v1781_v15 = vpop.f32.mrf.mxu1 }
 0x34b   :  { %v1786_v41 = vadd.f32 %v1710_v2, %v7744_v9  ;;  %v1788_v5 = vadd.f32 %v1781_v15, %v7747_v51  ;;  %v7749_v51 = vld [vmem:[#allocation123_spill] sm:$0xff] }
 0x34c   :  { %v1712_v49 = vpop.f32.mrf.mxu0  ;;  %v1783_v47 = vpop.f32.mrf.mxu1 }
 0x34d   :  { %v3912_v57 = vmul.f32 -1.442695, %v1786_v41  ;;  %v1787_v17 = vadd.f32 %v1712_v49, %v7745_v53  ;;  %v1789_v46 = vadd.f32 %v1783_v47, %v7746_v40 }
 0x34f   :  { %4081 = vpow2.f32 %v3912_v57  ;;  %v3913_v14 = vmul.f32 -1.442695, %v1787_v17  ;;  %v3914_v62 = vmul.f32 -1.442695, %v1789_v46  ;;  %v7748_v17 = vld [vmem:[#allocation121_spill] sm:$0xff] }
 0x351   :  { %4083 = vpow2.f32 %v3913_v14 }
 0x352   :  { %4085 = vtanh.f32 %v1788_v5 }
 0x353   :  { %4087 = vpow2.f32 %v3914_v62 }
 0x35c   :  { %v4082_v3 = vpop.eup %4081 }
 0x35d   :  { %v1946_v1 = vadd.f32 1.0, %v4082_v3 }
 0x35e   :  { %v4084_v63 = vpop.eup %4083 }
 0x35f   :  { %4089 = vrcp.f32 %v1946_v1  ;;  %v1952_v9 = vadd.f32 1.0, %v4084_v63  ;;  %v4086_v41 = vpop.eup %4085 }
 0x360   :  { %v4088_v53 = vpop.eup %4087 }
 0x361   :  { %4091 = vrcp.f32 %v1952_v9  ;;  %v1959_v5 = vadd.f32 1.0, %v4088_v53  ;;  %v7750_v9 = vld [vmem:[#allocation124_spill] sm:$0xff] }
 0x36b   :  { %v1863_v49 = vpop.f32.mrf.mxu0  ;;  %v1934_v62 = vpop.f32.mrf.mxu1 }
 0x36c   :  { %v4090_v57 = vpop.eup %4089  ;;  %v1939_v2 = vadd.f32 %v1863_v49, %v7748_v17  ;;  %v7751_v49 = vld [vmem:[#allocation122_spill] sm:$0xff] }
 0x36d   :  { %v1963_v14 = vmul.f32 %v4090_v57, %v4086_v41  ;;  %v1865_v58 = vpop.f32.mrf.mxu0  ;;  %v1936_v15 = vpop.f32.mrf.mxu1  ;;  %v1941_v57 = vadd.f32 %v1934_v62, %v7751_v49 }
 0x36e   :  { %v4092_v40 = vpop.eup %4091  ;;  %v3915_v47 = vmul.f32 -1.442695, %v1939_v2  ;;  %v1940_v46 = vadd.f32 %v1865_v58, %v7749_v51  ;;  %v1942_v41 = vadd.f32 %v1936_v15, %v7750_v9  ;;  %v7755_v9 = vld [vmem:[#allocation83_spill] sm:$0xff] }
 0x36f   :  { %v1962_v3 = vmul.f32 %v4092_v40, %v5710_v29 }
 0x370   :  { %4093 = vpow2.f32 %v3915_v47  ;;  %v3916_v1 = vmul.f32 -1.442695, %v1940_v46  ;;  %v3917_v17 = vmul.f32 -1.442695, %v1942_v41  ;;  %v7752_v47 = vld [vmem:[#allocation125_spill] sm:$0xff]  ;;  %v7756_v41 = vld [vmem:[#allocation84_spill] sm:$0xff] }
 0x371   :  { %v5990_v63 = vadd.f32 %v1963_v14, %v1962_v3  ;;  %v1633_v51 = vadd.f32 %v5715_v18, %v7752_v47  ;;  %v1634_v46 = vmax.f32 %v7752_v47, %v5715_v18  ;;  %v7753_v18 = vld [vmem:[#allocation81_spill] sm:$0xff] }
 0x372   :  { %4095 = vpow2.f32 %v3916_v1  ;;  %v7754_v1 = vld [vmem:[#allocation82_spill] sm:$0xff] }
 0x373   :  { %4097 = vrcp.f32 %v1959_v5 }
 0x374   :  { %4099 = vtanh.f32 %v5990_v63 }
 0x375   :  { %4101 = vtanh.f32 %v1941_v57  ;;  %v7757_v57 = vld [vmem:[#allocation85_spill] sm:$0xff] }
 0x376   :  { %4103 = vpow2.f32 %v3917_v17  ;;  %v7758_v17 = vld [vmem:[#allocation86_spill] sm:$0xff] }
 0x37d   :  { %v4094_v2 = vpop.eup %4093 }
 0x37e   :  { %v1970_v58 = vadd.f32 1.0, %v4094_v2 }
 0x37f   :  { %v4096_v29 = vpop.eup %4095 }
 0x380   :  { %v4098_v53 = vpop.eup %4097  ;;  %4105 = vrcp.f32 %v1970_v58  ;;  %v1976_v40 = vadd.f32 1.0, %v4096_v29  ;;  %v7759_v58 = vld [vmem:[#allocation87_spill] sm:$0xff] }
 0x381   :  { %v4100_v14 = vpop.eup %4099 }
 0x382   :  { %4107 = vrcp.f32 %v1976_v40  ;;  %v1966_v3 = vmul.f32 %v4100_v14, %v4098_v53  ;;  %v4102_v15 = vpop.eup %4101  ;;  %v7760_v53 = vld [vmem:[#allocation127_spill] sm:$0xff]  ;;  %v7761_v40 = vld [vmem:[#allocation128_spill] sm:$0xff] }
 0x383   :  { %v4104_v49 = vpop.eup %4103 }
 0x384   :  { %2067 = vmatmul.mubr.f32.vlgmr.msra.gmra.mxu0 %v1966_v3  ;;  %2138 = vmatmul.mubr.f32.vlgmr.msra.gmra.mxu1 %v1966_v3  ;;  %v5999_v5 = vadd.f32 %v1966_v3, %v1633_v51  ;;  %v6001_v62 = vmax.f32 %v1634_v46, %v1966_v3  ;;  %v1983_v47 = vadd.f32 1.0, %v4104_v49  ;;  %v7762_v51 = vld [vmem:[#allocation129_spill] sm:$0xff]  ;;  %v7763_v46 = vld [vmem:[#allocation130_spill] sm:$0xff]  ;;  %v7768_v49 = vld [vmem:[#allocation136_spill] sm:$0xff] }
 0x385   :  { %2156 = vmatpush1.msra.mxu0 %v5719_v48  ;;  %2227 = vmatpush1.msra.mxu1 %v5722_v52 }
 0x386   :  { %2157 = vmatprep.subr.mxu0 %v5725_v45  ;;  %2228 = vmatprep.subr.mxu1 %v5728_v54  ;;  %4109 = vrcp.f32 %v1983_v47  ;;  %v7777_v47 = vld [vmem:[#allocation145_spill] sm:$0xff] }
 0x387   :  { %2158 = vmatpush1.msra.mxu0 %v5731_v12  ;;  %2229 = vmatpush1.msra.mxu1 %v5734_v32 }
 0x388   :  { %2159 = vmatprep.subr.mxu0 %v5737_v7  ;;  %2230 = vmatprep.subr.mxu1 %v5740_v19 }
 0x389   :  { %2160 = vmatpush1.msra.mxu0 %v5743_v23  ;;  %2231 = vmatpush1.msra.mxu1 %v5746_v28 }
 0x38a   :  { %2161 = vmatprep.subr.mxu0 %v7753_v18  ;;  %2232 = vmatprep.subr.mxu1 %v7754_v1 }
 0x38b   :  { %2162 = vmatpush1.msra.mxu0 %v7755_v9  ;;  %2233 = vmatpush1.msra.mxu1 %v7756_v41 }
 0x38c   :  { %2163 = vmatprep.subr.mxu0 %v7757_v57  ;;  %2234 = vmatprep.subr.mxu1 %v7758_v17 }
 0x38d   :  { %v4106_v2 = vpop.eup %4105  ;;  %2164 = vmatpush1.msra.mxu0 %v7759_v58  ;;  %2235 = vmatpush1.msra.mxu1 %v5770_v20  ;;  %v7764_v58 = vld [vmem:[#allocation132_spill] sm:$0xff]  ;;  %v7765_v20 = vld [vmem:[#allocation133_spill] sm:$0xff] }
 0x38e   :  { %v1987_v29 = vmul.f32 %v4106_v2, %v4102_v15  ;;  %2165 = vmatprep.subr.mxu0 %v7760_v53  ;;  %2236 = vmatprep.subr.mxu1 %v7761_v40  ;;  %v7766_v2 = vld [vmem:[#allocation134_spill] sm:$0xff]  ;;  %v7767_v40 = vld [vmem:[#allocation135_spill] sm:$0xff] }
 0x38f   :  { %v4108_v14 = vpop.eup %4107  ;;  %2166 = vmatpush1.msra.mxu0 %v7762_v51  ;;  %2237 = vmatpush1.msra.mxu1 %v7763_v46  ;;  %v7769_v46 = vld [vmem:[#allocation137_spill] sm:$0xff] }
 0x390   :  { %v1986_v3 = vmul.f32 %v4108_v14, %v5798_v24  ;;  %2167 = vmatprep.subr.mxu0 %v5786_v11  ;;  %2238 = vmatprep.subr.mxu1 %v5789_v6  ;;  %v7770_v24 = vld [vmem:[#allocation138_spill] sm:$0xff]  ;;  %v7771_v14 = vld [vmem:[#allocation139_spill] sm:$0xff]  ;;  %v7796_v6 = vld [vmem:[#allocation164_spill] sm:$0xff] }
 0x391   :  { %2168 = vmatpush1.msra.mxu0 %v7764_v58  ;;  %2239 = vmatpush1.msra.mxu1 %v7765_v20  ;;  %v7772_v58 = vld [vmem:[#allocation140_spill] sm:$0xff]  ;;  %v7773_v20 = vld [vmem:[#allocation141_spill] sm:$0xff] }
 0x392   :  { %v6030_v15 = vadd.f32 %v1987_v29, %v1986_v3  ;;  %2169 = vmatprep.subr.mxu0 %v7766_v2  ;;  %2240 = vmatprep.subr.mxu1 %v7767_v40  ;;  %v7774_v29 = vld [vmem:[#allocation142_spill] sm:$0xff]  ;;  %v7775_v3 = vld [vmem:[#allocation143_spill] sm:$0xff]  ;;  %v7776_v40 = vld [vmem:[#allocation144_spill] sm:$0xff] }
 0x393   :  { %2170 = vmatpush1.msra.mxu0 %v7768_v49  ;;  %2241 = vmatpush1.msra.mxu1 %v7769_v46  ;;  %v7778_v49 = vld [vmem:[#allocation146_spill] sm:$0xff]  ;;  %v7779_v46 = vld [vmem:[#allocation147_spill] sm:$0xff] }
 0x394   :  { %2171 = vmatprep.subr.mxu0 %v7770_v24  ;;  %2242 = vmatprep.subr.mxu1 %v7771_v14  ;;  %4111 = vtanh.f32 %v6030_v15  ;;  %v7780_v24 = vld [vmem:[#allocation148_spill] sm:$0xff]  ;;  %v7781_v14 = vld [vmem:[#allocation149_spill] sm:$0xff]  ;;  %v7782_v2 = vld [vmem:[#allocation150_spill] sm:$0xff] }
 0x395   :  { %2172 = vmatpush1.msra.mxu0 %v7772_v58  ;;  %2243 = vmatpush1.msra.mxu1 %v7773_v20  ;;  %v7783_v58 = vld [vmem:[#allocation151_spill] sm:$0xff]  ;;  %v7784_v20 = vld [vmem:[#allocation152_spill] sm:$0xff] }
 0x396   :  { %2173 = vmatprep.subr.mxu0 %v7774_v29  ;;  %2244 = vmatprep.subr.mxu1 %v7775_v3  ;;  %v7785_v29 = vld [vmem:[#allocation153_spill] sm:$0xff]  ;;  %v7786_v3 = vld [vmem:[#allocation154_spill] sm:$0xff] }
 0x397   :  { %2174 = vmatpush1.msra.mxu0 %v7776_v40  ;;  %2245 = vmatpush1.msra.mxu1 %v7777_v47  ;;  %v7787_v40 = vld [vmem:[#allocation155_spill] sm:$0xff]  ;;  %v7788_v47 = vld [vmem:[#allocation156_spill] sm:$0xff] }
 0x398   :  { %2175 = vmatprep.subr.mxu0 %v7778_v49  ;;  %2246 = vmatprep.subr.mxu1 %v7779_v46  ;;  %v7789_v49 = vld [vmem:[#allocation157_spill] sm:$0xff]  ;;  %v7790_v46 = vld [vmem:[#allocation158_spill] sm:$0xff] }
 0x399   :  { %2176 = vmatpush1.msra.mxu0 %v7780_v24  ;;  %2247 = vmatpush1.msra.mxu1 %v7781_v14  ;;  %v7791_v24 = vld [vmem:[#allocation159_spill] sm:$0xff]  ;;  %v7792_v14 = vld [vmem:[#allocation160_spill] sm:$0xff] }
 0x39a   :  { %2177 = vmatprep.subr.mxu0 %v7782_v2  ;;  %2248 = vmatprep.subr.mxu1 %v7783_v58  ;;  %v7793_v2 = vld [vmem:[#allocation161_spill] sm:$0xff]  ;;  %v4110_v58 = vpop.eup %4109 }
 0x39b   :  { %2178 = vmatpush1.msra.mxu0 %v7784_v20  ;;  %2249 = vmatpush1.msra.mxu1 %v7785_v29  ;;  %v7794_v20 = vld [vmem:[#allocation162_spill] sm:$0xff]  ;;  %v7795_v29 = vld [vmem:[#allocation163_spill] sm:$0xff] }
 0x39c   :  { %2179 = vmatprep.subr.mxu0 %v7786_v3  ;;  %2250 = vmatprep.subr.mxu1 %v7787_v40 }
 0x39d   :  { %2180 = vmatpush1.msra.mxu0 %v7788_v47  ;;  %2251 = vmatpush1.msra.mxu1 %v7789_v49  ;;  %v7797_v47 = vld [vmem:[#allocation36_spill] sm:$0xff] }
 0x39e   :  { %2181 = vmatprep.subr.mxu0 %v7790_v46  ;;  %2252 = vmatprep.subr.mxu1 %v7791_v24  ;;  %v1635_v49 = vadd.f32 %v5903_v59, %v7797_v47  ;;  %v1636_v24 = vmax.f32 %v7797_v47, %v5903_v59  ;;  %v7820_v59 = vld [vmem:[#allocation59_spill] sm:$0xff]  ;;  %v7826_v47 = vld [vmem:[#allocation65_spill] sm:$0xff] }
 0x39f   :  { %2182 = vmatpush1.msra.mxu0 %v7792_v14  ;;  %2253 = vmatpush1.msra.mxu1 %v7793_v2 }
 0x3a0   :  { %2183 = vmatprep.subr.mxu0 %v7794_v20  ;;  %2254 = vmatprep.subr.mxu1 %v7795_v29 }
 0x3a1   :  { %v4112_v3 = vpop.eup %4111  ;;  %2184 = vmatpush1.msra.mxu0 %v7796_v6  ;;  %2255 = vmatpush1.msra.mxu1 %v5894_v25 }
 0x3a2   :  { %2185 = vmatprep.subr.mxu0 %v5897_v21  ;;  %2256 = vmatprep.subr.mxu1 %v5900_v26  ;;  %v1990_v2 = vmul.f32 %v4112_v3, %v4110_v58  ;;  %v7821_v58 = vld [vmem:[#allocation60_spill] sm:$0xff] }
 0x3a3   :  { %2186 = vmatpush1.msra.mxu0 %v5905_v55  ;;  %2219 = vmatprep.mubr.f32.mxu0 %v7508_v31  ;;  %v7825_v3 = vld [vmem:[#allocation64_spill] sm:$0xff] }
 0x3a4   :  { %2257 = vmatpush1.msra.mxu1 %v5909_v16  ;;  %2290 = vmatprep.mubr.f32.mxu1 %v7508_v31  ;;  %v6075_v25 = vadd.f32 %v1990_v2, %v1635_v49  ;;  %v6077_v6 = vmax.f32 %v1636_v24, %v1990_v2  ;;  %v7823_v49 = vld [vmem:[#allocation62_spill] sm:$0xff]  ;;  %v7824_v24 = vld [vmem:[#allocation63_spill] sm:$0xff] }
 0x3a5   :  { %2220 = vmatmul.mubr.f32.vlgmr.msra.gmra.mxu0 %v1990_v2  ;;  %2291 = vmatmul.mubr.f32.vlgmr.msra.gmra.mxu1 %v1990_v2  ;;  %v7822_v2 = vld [vmem:[#allocation61_spill] sm:$0xff] }
 0x3a6   :  { %2359 = vmatprep.subr.mxu0 %v5503_v0  ;;  %2430 = vmatprep.subr.mxu1 %v5506_v34  ;;  %v7798_v0 = vld [vmem:[#allocation37_spill] sm:$0xff]  ;;  %v7799_v34 = vld [vmem:[#allocation38_spill] sm:$0xff] }
 0x3a7   :  { %2360 = vmatpush1.msra.mxu0 %v5509_v35  ;;  %2431 = vmatpush1.msra.mxu1 %v5512_v38  ;;  %v7800_v35 = vld [vmem:[#allocation39_spill] sm:$0xff]  ;;  %v7801_v38 = vld [vmem:[#allocation40_spill] sm:$0xff] }
 0x3a8   :  { %2361 = vmatprep.subr.mxu0 %v5515_v33  ;;  %2432 = vmatprep.subr.mxu1 %v5518_v39  ;;  %v7802_v33 = vld [vmem:[#allocation41_spill] sm:$0xff]  ;;  %v7803_v39 = vld [vmem:[#allocation42_spill] sm:$0xff] }
 0x3a9   :  { %2362 = vmatpush1.msra.mxu0 %v5521_v56  ;;  %2433 = vmatpush1.msra.mxu1 %v5524_v10  ;;  %v7804_v56 = vld [vmem:[#allocation43_spill] sm:$0xff]  ;;  %v7805_v10 = vld [vmem:[#allocation44_spill] sm:$0xff] }
 0x3aa   :  { %2363 = vmatprep.subr.mxu0 %v5527_v27  ;;  %2434 = vmatprep.subr.mxu1 %v5530_v44  ;;  %v7806_v27 = vld [vmem:[#allocation45_spill] sm:$0xff]  ;;  %v7807_v44 = vld [vmem:[#allocation46_spill] sm:$0xff] }
 0x3ab   :  { %2364 = vmatpush1.msra.mxu0 %v5533_v60  ;;  %2435 = vmatpush1.msra.mxu1 %v5536_v43  ;;  %v7808_v60 = vld [vmem:[#allocation47_spill] sm:$0xff]  ;;  %v7809_v43 = vld [vmem:[#allocation48_spill] sm:$0xff] }
 0x3ac   :  { %2365 = vmatprep.subr.mxu0 %v5539_v42  ;;  %2436 = vmatprep.subr.mxu1 %v5542_v13  ;;  %v7810_v42 = vld [vmem:[#allocation49_spill] sm:$0xff]  ;;  %v7811_v13 = vld [vmem:[#allocation50_spill] sm:$0xff] }
 0x3ad   :  { %2366 = vmatpush1.msra.mxu0 %v5545_v4  ;;  %2437 = vmatpush1.msra.mxu1 %v5548_v30  ;;  %v7812_v4 = vld [vmem:[#allocation51_spill] sm:$0xff]  ;;  %v7813_v30 = vld [vmem:[#allocation52_spill] sm:$0xff] }
 0x3ae   :  { %2367 = vmatprep.subr.mxu0 %v5551_v37  ;;  %2438 = vmatprep.subr.mxu1 %v5554_v22  ;;  %v7814_v37 = vld [vmem:[#allocation53_spill] sm:$0xff]  ;;  %v7815_v22 = vld [vmem:[#allocation54_spill] sm:$0xff] }
 0x3af   :  { %2368 = vmatpush1.msra.mxu0 %v5557_v36  ;;  %2439 = vmatpush1.msra.mxu1 %v5560_v50  ;;  %v7816_v36 = vld [vmem:[#allocation55_spill] sm:$0xff]  ;;  %v7817_v50 = vld [vmem:[#allocation56_spill] sm:$0xff] }
 0x3b0   :  { %2369 = vmatprep.subr.mxu0 %v5563_v61  ;;  %2440 = vmatprep.subr.mxu1 %v5566_v8  ;;  %v7818_v61 = vld [vmem:[#allocation57_spill] sm:$0xff]  ;;  %v7819_v8 = vld [vmem:[#allocation58_spill] sm:$0xff] }
 0x3b1   :  { %2370 = vmatpush1.msra.mxu0 %v7798_v0  ;;  %2441 = vmatpush1.msra.mxu1 %v7799_v34  ;;  %v7827_v0 = vld [vmem:[#allocation66_spill] sm:$0xff]  ;;  %v7828_v34 = vld [vmem:[#allocation67_spill] sm:$0xff] }
 0x3b2   :  { %2371 = vmatprep.subr.mxu0 %v7800_v35  ;;  %2442 = vmatprep.subr.mxu1 %v7801_v38  ;;  %v7829_v35 = vld [vmem:[#allocation68_spill] sm:$0xff]  ;;  %v7830_v38 = vld [vmem:[#allocation69_spill] sm:$0xff] }
 0x3b3   :  { %2372 = vmatpush1.msra.mxu0 %v7802_v33  ;;  %2443 = vmatpush1.msra.mxu1 %v7803_v39  ;;  %v7831_v33 = vld [vmem:[#allocation70_spill] sm:$0xff]  ;;  %v7832_v39 = vld [vmem:[#allocation71_spill] sm:$0xff] }
 0x3b4   :  { %2373 = vmatprep.subr.mxu0 %v7804_v56  ;;  %2444 = vmatprep.subr.mxu1 %v7805_v10  ;;  %v7833_v56 = vld [vmem:[#allocation72_spill] sm:$0xff]  ;;  %v7834_v10 = vld [vmem:[#allocation73_spill] sm:$0xff] }
 0x3b5   :  { %2374 = vmatpush1.msra.mxu0 %v7806_v27  ;;  %2445 = vmatpush1.msra.mxu1 %v7807_v44  ;;  %v7835_v27 = vld [vmem:[#allocation74_spill] sm:$0xff]  ;;  %v7836_v44 = vld [vmem:[#allocation75_spill] sm:$0xff] }
 0x3b6   :  { %2375 = vmatprep.subr.mxu0 %v7808_v60  ;;  %2446 = vmatprep.subr.mxu1 %v7809_v43  ;;  %v7837_v60 = vld [vmem:[#allocation76_spill] sm:$0xff]  ;;  %v7838_v43 = vld [vmem:[#allocation77_spill] sm:$0xff] }
 0x3b7   :  { %2376 = vmatpush1.msra.mxu0 %v7810_v42  ;;  %2447 = vmatpush1.msra.mxu1 %v7811_v13  ;;  %v7839_v42 = vld [vmem:[#allocation78_spill] sm:$0xff]  ;;  %v7840_v13 = vld [vmem:[#allocation79_spill] sm:$0xff] }
 0x3b8   :  { %2377 = vmatprep.subr.mxu0 %v7812_v4  ;;  %2448 = vmatprep.subr.mxu1 %v7813_v30  ;;  %v7841_v4 = vld [vmem:[#allocation80_spill] sm:$0xff] }
 0x3b9   :  { %2378 = vmatpush1.msra.mxu0 %v7814_v37  ;;  %2449 = vmatpush1.msra.mxu1 %v7815_v22  ;;  %v7842_v37 = vld [vmem:[#allocation29_spill] sm:$0xff] }
 0x3ba   :  { %2379 = vmatprep.subr.mxu0 %v7816_v36  ;;  %2450 = vmatprep.subr.mxu1 %v7817_v50 }
 0x3bb   :  { %2380 = vmatpush1.msra.mxu0 %v7818_v61  ;;  %2451 = vmatpush1.msra.mxu1 %v7819_v8  ;;  %v7843_v61 = vld [vmem:[#allocation31_spill] sm:$0xff] }
 0x3bc   :  { %2381 = vmatprep.subr.mxu0 %v7820_v59  ;;  %2452 = vmatprep.subr.mxu1 %v7821_v58 }
 0x3bd   :  { %2382 = vmatpush1.msra.mxu0 %v7822_v2  ;;  %2453 = vmatpush1.msra.mxu1 %v7823_v49  ;;  %v7844_v49 = vld [vmem:[#allocation32_spill] sm:$0xff] }
 0x3be   :  { %2383 = vmatprep.subr.mxu0 %v7824_v24  ;;  %2454 = vmatprep.subr.mxu1 %v7825_v3  ;;  %v7845_v3 = vld [vmem:[#allocation30_spill] sm:$0xff] }
 0x3bf   :  { %2384 = vmatpush1.msra.mxu0 %v7826_v47  ;;  %2455 = vmatpush1.msra.mxu1 %v7827_v0 }
 0x3c0   :  { %2385 = vmatprep.subr.mxu0 %v7828_v34  ;;  %2456 = vmatprep.subr.mxu1 %v7829_v35 }
 0x3c1   :  { %2386 = vmatpush1.msra.mxu0 %v7830_v38  ;;  %2457 = vmatpush1.msra.mxu1 %v7831_v33 }
 0x3c2   :  { %2387 = vmatprep.subr.mxu0 %v7832_v39  ;;  %2458 = vmatprep.subr.mxu1 %v7833_v56 }
 0x3c3   :  { %2388 = vmatpush1.msra.mxu0 %v7834_v10  ;;  %2459 = vmatpush1.msra.mxu1 %v7835_v27 }
 0x3c4   :  { %2389 = vmatprep.subr.mxu0 %v7836_v44  ;;  %2460 = vmatprep.subr.mxu1 %v7837_v60  ;;  %v7846_v44 = vld [vmem:[#allocation117_spill] sm:$0xff] }
 0x3c5   :  { %2390 = vmatpush1.msra.mxu0 %v7838_v43  ;;  %2461 = vmatpush1.msra.mxu1 %v7839_v42 }
 0x3c6   :  { %2423 = vmatprep.mubr.f32.mxu0 %v7508_v31  ;;  %2494 = vmatprep.mubr.f32.mxu1 %v7508_v31 }
 0x3c7   :  { %2511 = vmatprep.subr.mxu0 %v7840_v13  ;;  %2582 = vmatprep.subr.mxu1 %v7841_v4 }
 0x444   :  { %v2068_v30 = vpop.f32.mrf.mxu0  ;;  %v2139_v59 = vpop.f32.mrf.mxu1 }
 0x445   :  { %v2144_v22 = vadd.f32 %v2068_v30, %v7842_v37  ;;  %v2146_v47 = vadd.f32 %v2139_v59, %v7845_v3  ;;  %v7847_v30 = vld [vmem:[#allocation119_spill] sm:$0xff] }
 0x446   :  { %v2070_v36 = vpop.f32.mrf.mxu0  ;;  %v2141_v2 = vpop.f32.mrf.mxu1 }
 0x447   :  { %v3918_v50 = vmul.f32 -1.442695, %v2144_v22  ;;  %v2145_v8 = vadd.f32 %v2070_v36, %v7843_v61  ;;  %v2147_v24 = vadd.f32 %v2141_v2, %v7844_v49  ;;  %v7849_v49 = vld [vmem:[#allocation118_spill] sm:$0xff] }
 0x449   :  { %4113 = vpow2.f32 %v3918_v50  ;;  %v3919_v58 = vmul.f32 -1.442695, %v2145_v8  ;;  %v3920_v0 = vmul.f32 -1.442695, %v2147_v24 }
 0x44b   :  { %4115 = vpow2.f32 %v3919_v58  ;;  %v7848_v58 = vld [vmem:[#allocation120_spill] sm:$0xff] }
 0x44c   :  { %4117 = vtanh.f32 %v2146_v47 }
 0x44d   :  { %4119 = vpow2.f32 %v3920_v0 }
 0x456   :  { %v4114_v34 = vpop.eup %4113 }
 0x457   :  { %v2304_v35 = vadd.f32 1.0, %v4114_v34 }
 0x458   :  { %v4116_v38 = vpop.eup %4115 }
 0x459   :  { %4121 = vrcp.f32 %v2304_v35  ;;  %v2310_v33 = vadd.f32 1.0, %v4116_v38  ;;  %v4118_v39 = vpop.eup %4117 }
 0x45a   :  { %v4120_v56 = vpop.eup %4119 }
 0x45b   :  { %4123 = vrcp.f32 %v2310_v33  ;;  %v2317_v36 = vadd.f32 1.0, %v4120_v56  ;;  %v6409_v56 = vld [vmem:[#allocation17 + $0x40] sm:$0xff] }
 0x45c   :  { %7914 = vst [vmem:[#allocation44_spill] sm:$0xff] %v6409_v56 }
 0x465   :  { %v2221_v10 = vpop.f32.mrf.mxu0  ;;  %v2292_v50 = vpop.f32.mrf.mxu1 }
 0x466   :  { %v4122_v27 = vpop.eup %4121  ;;  %v2297_v60 = vadd.f32 %v2221_v10, %v7846_v44  ;;  %v2299_v24 = vadd.f32 %v2292_v50, %v7849_v49  ;;  %v7863_v10 = vld [vmem:[#allocation140_spill] sm:$0xff]  ;;  %v7865_v44 = vld [vmem:[#allocation142_spill] sm:$0xff]  ;;  %v7880_v49 = vld [vmem:[#allocation159_spill] sm:$0xff] }
 0x467   :  { %v2321_v43 = vmul.f32 %v4122_v27, %v4118_v39  ;;  %v2223_v42 = vpop.f32.mrf.mxu0  ;;  %v2294_v59 = vpop.f32.mrf.mxu1  ;;  %v7864_v27 = vld [vmem:[#allocation141_spill] sm:$0xff]  ;;  %v7875_v50 = vld [vmem:[#allocation152_spill] sm:$0xff] }
 0x468   :  { %v4124_v13 = vpop.eup %4123  ;;  %v3921_v4 = vmul.f32 -1.442695, %v2297_v60  ;;  %v2298_v37 = vadd.f32 %v2223_v42, %v7847_v30  ;;  %v2300_v2 = vadd.f32 %v2294_v59, %v7848_v58  ;;  %v7866_v60 = vld [vmem:[#allocation143_spill] sm:$0xff]  ;;  %v7868_v42 = vld [vmem:[#allocation145_spill] sm:$0xff]  ;;  %v7871_v30 = vld [vmem:[#allocation148_spill] sm:$0xff] }
 0x469   :  { %v2320_v22 = vmul.f32 %v4124_v13, %v5990_v63  ;;  %v7869_v13 = vld [vmem:[#allocation146_spill] sm:$0xff]  ;;  %v7878_v58 = vld [vmem:[#allocation156_spill] sm:$0xff] }
 0x46a   :  { %4125 = vpow2.f32 %v3921_v4  ;;  %v3922_v61 = vmul.f32 -1.442695, %v2298_v37  ;;  %v3923_v3 = vmul.f32 -1.442695, %v2300_v2  ;;  %v7870_v4 = vld [vmem:[#allocation147_spill] sm:$0xff]  ;;  %v7872_v37 = vld [vmem:[#allocation149_spill] sm:$0xff] }
 0x46b   :  { %v6154_v8 = vadd.f32 %v2321_v43, %v2320_v22  ;;  %v7867_v43 = vld [vmem:[#allocation144_spill] sm:$0xff]  ;;  %v7873_v22 = vld [vmem:[#allocation150_spill] sm:$0xff]  ;;  %v7879_v2 = vld [vmem:[#allocation157_spill] sm:$0xff] }
 0x46c   :  { %4127 = vpow2.f32 %v3922_v61  ;;  %v7876_v61 = vld [vmem:[#allocation153_spill] sm:$0xff]  ;;  %v7877_v59 = vld [vmem:[#allocation154_spill] sm:$0xff] }
 0x46d   :  { %4129 = vrcp.f32 %v2317_v36  ;;  %v7874_v36 = vld [vmem:[#allocation151_spill] sm:$0xff] }
 0x46e   :  { %4131 = vtanh.f32 %v6154_v8 }
 0x46f   :  { %4133 = vtanh.f32 %v2299_v24  ;;  %v7881_v24 = vld [vmem:[#allocation161_spill] sm:$0xff] }
 0x470   :  { %4135 = vpow2.f32 %v3923_v3 }
 0x477   :  { %v4126_v47 = vpop.eup %4125 }
 0x478   :  { %v2328_v0 = vadd.f32 1.0, %v4126_v47 }
 0x479   :  { %v4128_v63 = vpop.eup %4127 }
 0x47a   :  { %v4130_v34 = vpop.eup %4129  ;;  %4137 = vrcp.f32 %v2328_v0  ;;  %v2334_v35 = vadd.f32 1.0, %v4128_v63  ;;  %v7882_v0 = vld [vmem:[#allocation164_spill] sm:$0xff]  ;;  %v6265_v63 = vld [vmem:[#allocation17 + $0x1c0] sm:$0xff] }
 0x47b   :  { %v4132_v38 = vpop.eup %4131 }
 0x47c   :  { %4139 = vrcp.f32 %v2334_v35  ;;  %v6159_v33 = vmul.f32 %v4132_v38, %v4130_v34  ;;  %v6268_v34 = vld [vmem:[#allocation17 + $0x1d0] sm:$0xff]  ;;  %v6271_v35 = vld [vmem:[#allocation17 + $0x1a8] sm:$0xff]  ;;  %v6274_v38 = vld [vmem:[#allocation17 + $0x1b8] sm:$0xff] }
 0x47e   :  { %2424 = vmatmul.mubr.f32.vlgmr.msra.gmra.mxu0 %v6159_v33  ;;  %2495 = vmatmul.mubr.f32.vlgmr.msra.gmra.mxu1 %v6159_v33  ;;  %v6165_v39 = vadd.f32 %v6159_v33, %v5999_v5 }
 0x47f   :  { %2512 = vmatpush1.msra.mxu0 %v5719_v48  ;;  %2583 = vmatpush1.msra.mxu1 %v5722_v52  ;;  %v4134_v48 = vpop.eup %4133 }
 0x480   :  { %2513 = vmatprep.subr.mxu0 %v5725_v45  ;;  %2584 = vmatprep.subr.mxu1 %v5728_v54  ;;  %v4136_v52 = vpop.eup %4135  ;;  %v7850_v54 = vld [vmem:[#allocation87_spill] sm:$0xff] }
 0x481   :  { %2514 = vmatpush1.msra.mxu0 %v5731_v12  ;;  %2585 = vmatpush1.msra.mxu1 %v5734_v32  ;;  %v7851_v12 = vld [vmem:[#allocation126_spill] sm:$0xff] }
 0x482   :  { %2515 = vmatprep.subr.mxu0 %v5737_v7  ;;  %2586 = vmatprep.subr.mxu1 %v5740_v19  ;;  %v7852_v7 = vld [vmem:[#allocation128_spill] sm:$0xff] }
 0x483   :  { %2516 = vmatpush1.msra.mxu0 %v5743_v23  ;;  %2587 = vmatpush1.msra.mxu1 %v5746_v28  ;;  %v2341_v23 = vadd.f32 1.0, %v4136_v52  ;;  %v7853_v28 = vld [vmem:[#allocation130_spill] sm:$0xff]  ;;  %v6280_v52 = vld [vmem:[#allocation17 + $0x1b0] sm:$0xff] }
 0x484   :  { %2517 = vmatprep.subr.mxu0 %v7753_v18  ;;  %2588 = vmatprep.subr.mxu1 %v7754_v1  ;;  %v7854_v18 = vld [vmem:[#allocation131_spill] sm:$0xff]  ;;  %v7855_v1 = vld [vmem:[#allocation132_spill] sm:$0xff] }
 0x485   :  { %2518 = vmatpush1.msra.mxu0 %v7755_v9  ;;  %2589 = vmatpush1.msra.mxu1 %v7756_v41  ;;  %v7856_v9 = vld [vmem:[#allocation133_spill] sm:$0xff]  ;;  %4141 = vrcp.f32 %v2341_v23  ;;  %v6301_v23 = vld [vmem:[#allocation17 + $0x160] sm:$0xff] }
 0x486   :  { %2519 = vmatprep.subr.mxu0 %v7757_v57  ;;  %2590 = vmatprep.subr.mxu1 %v7758_v17  ;;  %v7857_v57 = vld [vmem:[#allocation134_spill] sm:$0xff]  ;;  %v7858_v17 = vld [vmem:[#allocation135_spill] sm:$0xff] }
 0x487   :  { %v4138_v45 = vpop.eup %4137  ;;  %2520 = vmatpush1.msra.mxu0 %v7850_v54  ;;  %2591 = vmatpush1.msra.mxu1 %v7851_v12  ;;  %v6286_v54 = vld [vmem:[#allocation17 + $0x198] sm:$0xff]  ;;  %v6289_v12 = vld [vmem:[#allocation17 + $0x180] sm:$0xff] }
 0x488   :  { %v2345_v32 = vmul.f32 %v4138_v45, %v4134_v48  ;;  %2521 = vmatprep.subr.mxu0 %v7760_v53  ;;  %2592 = vmatprep.subr.mxu1 %v7852_v7  ;;  %v7859_v53 = vld [vmem:[#allocation136_spill] sm:$0xff]  ;;  %v6277_v48 = vld [vmem:[#allocation17 + $0x1a0] sm:$0xff]  ;;  %v6283_v45 = vld [vmem:[#allocation17 + $0x188] sm:$0xff] }
 0x489   :  { %v4140_v19 = vpop.eup %4139  ;;  %2522 = vmatpush1.msra.mxu0 %v7762_v51  ;;  %2593 = vmatpush1.msra.mxu1 %v7853_v28  ;;  %v7860_v51 = vld [vmem:[#allocation137_spill] sm:$0xff]  ;;  %v6295_v7 = vld [vmem:[#allocation17 + $0x168] sm:$0xff]  ;;  %v6304_v28 = vld [vmem:[#allocation17 + $0x170] sm:$0xff] }
 0x48a   :  { %v2344_v5 = vmul.f32 %v4140_v19, %v6030_v15  ;;  %2523 = vmatprep.subr.mxu0 %v5786_v11  ;;  %2594 = vmatprep.subr.mxu1 %v7854_v18  ;;  %v7861_v15 = vld [vmem:[#allocation138_spill] sm:$0xff]  ;;  %v7862_v11 = vld [vmem:[#allocation139_spill] sm:$0xff]  ;;  %v6298_v19 = vld [vmem:[#allocation17 + $0x178] sm:$0xff] }
 0x48b   :  { %2524 = vmatpush1.msra.mxu0 %v7855_v1  ;;  %2595 = vmatpush1.msra.mxu1 %v7856_v9  ;;  %v6310_v18 = vld [vmem:[#allocation17 + $0x158] sm:$0xff]  ;;  %v6313_v1 = vld [vmem:[#allocation17 + $0x140] sm:$0xff]  ;;  %v6316_v9 = vld [vmem:[#allocation17 + $0x150] sm:$0xff] }
 0x48c   :  { %v6196_v41 = vadd.f32 %v2345_v32, %v2344_v5  ;;  %2525 = vmatprep.subr.mxu0 %v7857_v57  ;;  %2596 = vmatprep.subr.mxu1 %v7858_v17  ;;  %v6292_v32 = vld [vmem:[#allocation17 + $0x190] sm:$0xff]  ;;  %v6307_v5 = vld [vmem:[#allocation17 + $0x148] sm:$0xff]  ;;  %v6322_v17 = vld [vmem:[#allocation17 + $0x138] sm:$0xff] }
 0x48d   :  { %2526 = vmatpush1.msra.mxu0 %v7859_v53  ;;  %2597 = vmatpush1.msra.mxu1 %v7860_v51  ;;  %v6319_v57 = vld [vmem:[#allocation17 + $0x128] sm:$0xff]  ;;  %7885 = vst [vmem:[#allocation27_spill] sm:$0xff] %v6322_v17  ;;  %v6325_v53 = vld [vmem:[#allocation17 + $0x120] sm:$0xff]  ;;  %v6328_v51 = vld [vmem:[#allocation17 + $0x130] sm:$0xff] }
 0x48e   :  { %2527 = vmatprep.subr.mxu0 %v7861_v15  ;;  %2598 = vmatprep.subr.mxu1 %v7862_v11  ;;  %4143 = vtanh.f32 %v6196_v41  ;;  %7884 = vst [vmem:[#allocation25_spill] sm:$0xff] %v6319_v57  ;;  %7886 = vst [vmem:[#allocation28_spill] sm:$0xff] %v6325_v53  ;;  %v6331_v15 = vld [vmem:[#allocation17 + $0x108] sm:$0xff]  ;;  %v6334_v11 = vld [vmem:[#allocation17 + $0x118] sm:$0xff] }
 0x48f   :  { %2528 = vmatpush1.msra.mxu0 %v7863_v10  ;;  %2599 = vmatpush1.msra.mxu1 %v7864_v27  ;;  %7887 = vst [vmem:[#allocation26_spill] sm:$0xff] %v6328_v51  ;;  %7888 = vst [vmem:[#allocation121_spill] sm:$0xff] %v6331_v15  ;;  %v6337_v10 = vld [vmem:[#allocation17 + $0x100] sm:$0xff]  ;;  %v6340_v27 = vld [vmem:[#allocation17 + $0x110] sm:$0xff] }
 0x490   :  { %2529 = vmatprep.subr.mxu0 %v7865_v44  ;;  %2600 = vmatprep.subr.mxu1 %v7866_v60  ;;  %7889 = vst [vmem:[#allocation123_spill] sm:$0xff] %v6334_v11  ;;  %7890 = vst [vmem:[#allocation124_spill] sm:$0xff] %v6337_v10  ;;  %v6343_v44 = vld [vmem:[#allocation17 + $0xe8] sm:$0xff]  ;;  %v6346_v60 = vld [vmem:[#allocation17 + $0xf8] sm:$0xff] }
 0x491   :  { %2530 = vmatpush1.msra.mxu0 %v7867_v43  ;;  %2601 = vmatpush1.msra.mxu1 %v7868_v42  ;;  %7891 = vst [vmem:[#allocation122_spill] sm:$0xff] %v6340_v27  ;;  %7892 = vst [vmem:[#allocation125_spill] sm:$0xff] %v6343_v44  ;;  %v6349_v43 = vld [vmem:[#allocation17 + $0xe0] sm:$0xff]  ;;  %v6352_v42 = vld [vmem:[#allocation17 + $0xf0] sm:$0xff] }
 0x492   :  { %2531 = vmatprep.subr.mxu0 %v7869_v13  ;;  %2602 = vmatprep.subr.mxu1 %v7870_v4  ;;  %v4142_v3 = vpop.eup %4141  ;;  %7893 = vst [vmem:[#allocation81_spill] sm:$0xff] %v6346_v60  ;;  %7894 = vst [vmem:[#allocation82_spill] sm:$0xff] %v6349_v43  ;;  %v6355_v13 = vld [vmem:[#allocation17 + $0xc8] sm:$0xff]  ;;  %v6358_v4 = vld [vmem:[#allocation17 + $0xd8] sm:$0xff] }
 0x493   :  { %2532 = vmatpush1.msra.mxu0 %v7871_v30  ;;  %2603 = vmatpush1.msra.mxu1 %v7872_v37  ;;  %7895 = vst [vmem:[#allocation83_spill] sm:$0xff] %v6352_v42  ;;  %7896 = vst [vmem:[#allocation84_spill] sm:$0xff] %v6355_v13  ;;  %v6361_v30 = vld [vmem:[#allocation17 + $0xc0] sm:$0xff]  ;;  %v6364_v37 = vld [vmem:[#allocation17 + $0xd0] sm:$0xff] }
 0x494   :  { %2533 = vmatprep.subr.mxu0 %v7873_v22  ;;  %2604 = vmatprep.subr.mxu1 %v7874_v36  ;;  %7897 = vst [vmem:[#allocation85_spill] sm:$0xff] %v6358_v4  ;;  %7898 = vst [vmem:[#allocation86_spill] sm:$0xff] %v6361_v30  ;;  %v6367_v22 = vld [vmem:[#allocation17 + $0xa8] sm:$0xff]  ;;  %v6370_v36 = vld [vmem:[#allocation17 + $0xb8] sm:$0xff] }
 0x495   :  { %2534 = vmatpush1.msra.mxu0 %v7875_v50  ;;  %2605 = vmatpush1.msra.mxu1 %v7876_v61  ;;  %7899 = vst [vmem:[#allocation127_spill] sm:$0xff] %v6364_v37  ;;  %7900 = vst [vmem:[#allocation129_spill] sm:$0xff] %v6367_v22  ;;  %v6373_v50 = vld [vmem:[#allocation17 + $0xa0] sm:$0xff]  ;;  %v6376_v61 = vld [vmem:[#allocation17 + $0xb0] sm:$0xff] }
 0x496   :  { %2535 = vmatprep.subr.mxu0 %v7877_v59  ;;  %2606 = vmatprep.subr.mxu1 %v7787_v40  ;;  %v7883_v40 = vld [vmem:[#allocation165_spill] sm:$0xff]  ;;  %7901 = vst [vmem:[#allocation155_spill] sm:$0xff] %v6370_v36  ;;  %7902 = vst [vmem:[#allocation158_spill] sm:$0xff] %v6373_v50  ;;  %v6379_v59 = vld [vmem:[#allocation17 + $0x88] sm:$0xff] }
 0x497   :  { %2536 = vmatpush1.msra.mxu0 %v7878_v58  ;;  %2607 = vmatpush1.msra.mxu1 %v7879_v2  ;;  %7903 = vst [vmem:[#allocation160_spill] sm:$0xff] %v6376_v61  ;;  %7904 = vst [vmem:[#allocation162_spill] sm:$0xff] %v6379_v59  ;;  %v6382_v58 = vld [vmem:[#allocation17 + $0x98] sm:$0xff]  ;;  %v6385_v2 = vld [vmem:[#allocation17 + $0x80] sm:$0xff] }
 0x498   :  { %2537 = vmatprep.subr.mxu0 %v7790_v46  ;;  %2608 = vmatprep.subr.mxu1 %v7880_v49  ;;  %7905 = vst [vmem:[#allocation163_spill] sm:$0xff] %v6382_v58  ;;  %7906 = vst [vmem:[#allocation36_spill] sm:$0xff] %v6385_v2  ;;  %v6388_v49 = vld [vmem:[#allocation17 + $0x90] sm:$0xff] }
 0x499   :  { %2538 = vmatpush1.msra.mxu0 %v7792_v14  ;;  %2609 = vmatpush1.msra.mxu1 %v7881_v24  ;;  %7907 = vst [vmem:[#allocation37_spill] sm:$0xff] %v6388_v49  ;;  %v6391_v24 = vld [vmem:[#allocation17 + $0x68] sm:$0xff]  ;;  %v6406_v14 = vld [vmem:[#allocation17 + $0x58] sm:$0xff] }
 0x49a   :  { %2539 = vmatprep.subr.mxu0 %v7794_v20  ;;  %2610 = vmatprep.subr.mxu1 %v7795_v29  ;;  %v6262_v29 = vld [vmem:[#allocation17 + $0x1d8] sm:$0xff]  ;;  %7908 = vst [vmem:[#allocation38_spill] sm:$0xff] %v6391_v24  ;;  %7913 = vst [vmem:[#allocation43_spill] sm:$0xff] %v6406_v14 }
 0x49b   :  { %v4144_v47 = vpop.eup %4143  ;;  %2540 = vmatpush1.msra.mxu0 %v7882_v0  ;;  %2611 = vmatpush1.msra.mxu1 %v7883_v40  ;;  %v6400_v0 = vld [vmem:[#allocation17 + $0x70] sm:$0xff]  ;;  %v6403_v40 = vld [vmem:[#allocation17 + $0x48] sm:$0xff] }
 0x49c   :  { %2541 = vmatprep.subr.mxu0 %v5897_v21  ;;  %2612 = vmatprep.subr.mxu1 %v5900_v26  ;;  %v6233_v46 = vmul.f32 %v4144_v47, %v4142_v3  ;;  %v6247_v26 = vld [vmem:[#allocation17 + $0x1e8] sm:$0xff]  ;;  %v6250_v21 = vld [vmem:[#allocation17 + $0x1f8] sm:$0xff]  ;;  %v6397_v47 = vld [vmem:[#allocation17 + $0x60] sm:$0xff]  ;;  %7911 = vst [vmem:[#allocation41_spill] sm:$0xff] %v6400_v0 }
 0x49d   :  { %2542 = vmatpush1.msra.mxu0 %v5905_v55  ;;  %2575 = vmatprep.mubr.f32.mxu0 %v7508_v31  ;;  %v6256_v55 = vld [vmem:[#allocation17 + $0x1f0] sm:$0xff]  ;;  %v6394_v3 = vld [vmem:[#allocation17 + $0x78] sm:$0xff]  ;;  %7910 = vst [vmem:[#allocation40_spill] sm:$0xff] %v6397_v47  ;;  %7912 = vst [vmem:[#allocation42_spill] sm:$0xff] %v6403_v40 }
 0x49e   :  { %2613 = vmatpush1.msra.mxu1 %v5909_v16  ;;  %2646 = vmatprep.mubr.f32.mxu1 %v7508_v31  ;;  %v6241_v20 = vadd.f32 %v6233_v46, %v6075_v25  ;;  %v6253_v16 = vld [vmem:[#allocation17 + $0x1e0] sm:$0xff]  ;;  %v6259_v25 = vld [vmem:[#allocation17 + $0x1c8] sm:$0xff]  ;;  %7909 = vst [vmem:[#allocation39_spill] sm:$0xff] %v6394_v3 }
 0x49f   :  { %2576 = vmatmul.mubr.f32.vlgmr.msra.gmra.mxu0 %v6233_v46  ;;  %2647 = vmatmul.mubr.f32.vlgmr.msra.gmra.mxu1 %v6233_v46 }
 0x4a0   :  { %2715 = vmatprep.subr.mxu0 %v6247_v26  ;;  %2786 = vmatprep.subr.mxu1 %v6250_v21 }
 0x4a1   :  { %2716 = vmatpush1.msra.mxu0 %v6253_v16  ;;  %2787 = vmatpush1.msra.mxu1 %v6256_v55 }
 0x4a2   :  { %2717 = vmatprep.subr.mxu0 %v6259_v25  ;;  %2788 = vmatprep.subr.mxu1 %v6262_v29 }
 0x4a3   :  { %2718 = vmatpush1.msra.mxu0 %v6265_v63  ;;  %2789 = vmatpush1.msra.mxu1 %v6268_v34 }
 0x4a4   :  { %2719 = vmatprep.subr.mxu0 %v6271_v35  ;;  %2790 = vmatprep.subr.mxu1 %v6274_v38 }
 0x4a5   :  { %2720 = vmatpush1.msra.mxu0 %v6277_v48  ;;  %2791 = vmatpush1.msra.mxu1 %v6280_v52 }
 0x4a6   :  { %2721 = vmatprep.subr.mxu0 %v6283_v45  ;;  %2792 = vmatprep.subr.mxu1 %v6286_v54 }
 0x4a7   :  { %2722 = vmatpush1.msra.mxu0 %v6289_v12  ;;  %2793 = vmatpush1.msra.mxu1 %v6292_v32 }
 0x4a8   :  { %2723 = vmatprep.subr.mxu0 %v6295_v7  ;;  %2794 = vmatprep.subr.mxu1 %v6298_v19 }
 0x4a9   :  { %2724 = vmatpush1.msra.mxu0 %v6301_v23  ;;  %2795 = vmatpush1.msra.mxu1 %v6304_v28 }
 0x4aa   :  { %2725 = vmatprep.subr.mxu0 %v6307_v5  ;;  %2796 = vmatprep.subr.mxu1 %v6310_v18 }
 0x4ab   :  { %2726 = vmatpush1.msra.mxu0 %v6313_v1  ;;  %2797 = vmatpush1.msra.mxu1 %v6316_v9 }
 0x4ac   :  { %2727 = vmatprep.subr.mxu0 %v6319_v57  ;;  %2798 = vmatprep.subr.mxu1 %v6322_v17 }
 0x4ad   :  { %2728 = vmatpush1.msra.mxu0 %v6325_v53  ;;  %2799 = vmatpush1.msra.mxu1 %v6328_v51 }
 0x4ae   :  { %2729 = vmatprep.subr.mxu0 %v6331_v15  ;;  %2800 = vmatprep.subr.mxu1 %v6334_v11 }
 0x4af   :  { %2730 = vmatpush1.msra.mxu0 %v6337_v10  ;;  %2801 = vmatpush1.msra.mxu1 %v6340_v27 }
 0x4b0   :  { %2731 = vmatprep.subr.mxu0 %v6343_v44  ;;  %2802 = vmatprep.subr.mxu1 %v6346_v60 }
 0x4b1   :  { %2732 = vmatpush1.msra.mxu0 %v6349_v43  ;;  %2803 = vmatpush1.msra.mxu1 %v6352_v42 }
 0x4b2   :  { %2733 = vmatprep.subr.mxu0 %v6355_v13  ;;  %2804 = vmatprep.subr.mxu1 %v6358_v4 }
 0x4b3   :  { %2734 = vmatpush1.msra.mxu0 %v6361_v30  ;;  %2805 = vmatpush1.msra.mxu1 %v6364_v37 }
 0x4b4   :  { %2735 = vmatprep.subr.mxu0 %v6367_v22  ;;  %2806 = vmatprep.subr.mxu1 %v6370_v36  ;;  %v7929_v22 = vld [vmem:[#allocation34_spill] sm:$0xff] }
 0x4b5   :  { %2736 = vmatpush1.msra.mxu0 %v6373_v50  ;;  %2807 = vmatpush1.msra.mxu1 %v6376_v61  ;;  %v7928_v50 = vld [vmem:[#allocation88_spill] sm:$0xff] }
 0x4b6   :  { %2737 = vmatprep.subr.mxu0 %v6379_v59  ;;  %2808 = vmatprep.subr.mxu1 %v6382_v58 }
 0x4b7   :  { %2738 = vmatpush1.msra.mxu0 %v6385_v2  ;;  %2809 = vmatpush1.msra.mxu1 %v6388_v49  ;;  %v7927_v2 = vld [vmem:[#allocation35_spill] sm:$0xff] }
 0x4b8   :  { %2739 = vmatprep.subr.mxu0 %v6391_v24  ;;  %2810 = vmatprep.subr.mxu1 %v6394_v3  ;;  %v6412_v3 = vld [vmem:[#allocation17 + $0x50] sm:$0xff] }
 0x4b9   :  { %2740 = vmatpush1.msra.mxu0 %v6397_v47  ;;  %2811 = vmatpush1.msra.mxu1 %v6400_v0  ;;  %7915 = vst [vmem:[#allocation45_spill] sm:$0xff] %v6412_v3  ;;  %v6415_v47 = vld [vmem:[#allocation17 + $0x28] sm:$0xff]  ;;  %v6418_v0 = vld [vmem:[#allocation17 + $0x38] sm:$0xff] }
 0x4ba   :  { %2741 = vmatprep.subr.mxu0 %v6403_v40  ;;  %2812 = vmatprep.subr.mxu1 %v6406_v14  ;;  %7916 = vst [vmem:[#allocation46_spill] sm:$0xff] %v6415_v47  ;;  %7917 = vst [vmem:[#allocation47_spill] sm:$0xff] %v6418_v0  ;;  %v6421_v40 = vld [vmem:[#allocation17 + $0x20] sm:$0xff]  ;;  %v6424_v14 = vld [vmem:[#allocation17 + $0x30] sm:$0xff] }
 0x4bb   :  { %2742 = vmatpush1.msra.mxu0 %v6409_v56  ;;  %2813 = vmatpush1.msra.mxu1 %v6412_v3  ;;  %7918 = vst [vmem:[#allocation48_spill] sm:$0xff] %v6421_v40  ;;  %7919 = vst [vmem:[#allocation49_spill] sm:$0xff] %v6424_v14  ;;  %v6427_v56 = vld [vmem:[#allocation17 + $0x8] sm:$0xff]  ;;  %v6430_v3 = vld [vmem:[#allocation17 + $0x18] sm:$0xff] }
 0x4bc   :  { %2743 = vmatprep.subr.mxu0 %v6415_v47  ;;  %2814 = vmatprep.subr.mxu1 %v6418_v0  ;;  %7920 = vst [vmem:[#allocation50_spill] sm:$0xff] %v6427_v56  ;;  %7921 = vst [vmem:[#allocation51_spill] sm:$0xff] %v6430_v3  ;;  %v6433_v47 = vld [vmem:[#allocation17] sm:$0xff]  ;;  %v6436_v0 = vld [vmem:[#allocation17 + $0x10] sm:$0xff] }
 0x4bd   :  { %2744 = vmatpush1.msra.mxu0 %v6421_v40  ;;  %2815 = vmatpush1.msra.mxu1 %v6424_v14  ;;  %7922 = vst [vmem:[#allocation52_spill] sm:$0xff] %v6433_v47  ;;  %7923 = vst [vmem:[#allocation53_spill] sm:$0xff] %v6436_v0  ;;  %v6441_v14 = vld [vmem:[#allocation17 + $0x3e8] sm:$0xff]  ;;  %v7926_v40 = vld [vmem:[#allocation33_spill] sm:$0xff] }
 0x4be   :  { %2745 = vmatprep.subr.mxu0 %v6427_v56  ;;  %2816 = vmatprep.subr.mxu1 %v6430_v3  ;;  %7924 = vst [vmem:[#allocation54_spill] sm:$0xff] %v6441_v14  ;;  %v6444_v56 = vld [vmem:[#allocation17 + $0x3f8] sm:$0xff] }
 0x4bf   :  { %2746 = vmatpush1.msra.mxu0 %v6433_v47  ;;  %2817 = vmatpush1.msra.mxu1 %v6436_v0  ;;  %7925 = vst [vmem:[#allocation55_spill] sm:$0xff] %v6444_v56 }
 0x4c0   :  { %2779 = vmatprep.mubr.f32.mxu0 %v7508_v31  ;;  %2850 = vmatprep.mubr.f32.mxu1 %v7508_v31 }
 0x4c1   :  { %2867 = vmatprep.subr.mxu0 %v6441_v14  ;;  %2938 = vmatprep.subr.mxu1 %v6444_v56 }
 0x53e   :  { %v2425_v3 = vpop.f32.mrf.mxu0  ;;  %v2496_v0 = vpop.f32.mrf.mxu1 }
 0x53f   :  { %v2501_v24 = vadd.f32 %v2425_v3, %v7926_v40  ;;  %v2503_v14 = vadd.f32 %v2496_v0, %v7929_v22  ;;  %v7931_v22 = vld [vmem:[#allocation115_spill] sm:$0xff] }
 0x540   :  { %v2427_v47 = vpop.f32.mrf.mxu0  ;;  %v2498_v61 = vpop.f32.mrf.mxu1 }
 0x541   :  { %v3924_v49 = vmul.f32 -1.442695, %v2501_v24  ;;  %v2502_v58 = vadd.f32 %v2427_v47, %v7927_v2  ;;  %v2504_v36 = vadd.f32 %v2498_v61, %v7928_v50 }
 0x543   :  { %4145 = vpow2.f32 %v3924_v49  ;;  %v3925_v59 = vmul.f32 -1.442695, %v2502_v58  ;;  %v3926_v37 = vmul.f32 -1.442695, %v2504_v36  ;;  %v7930_v58 = vld [vmem:[#allocation113_spill] sm:$0xff] }
 0x545   :  { %4147 = vpow2.f32 %v3925_v59 }
 0x546   :  { %4149 = vtanh.f32 %v2503_v14 }
 0x547   :  { %4151 = vpow2.f32 %v3926_v37 }
 0x550   :  { %v4146_v30 = vpop.eup %4145 }
 0x551   :  { %v2660_v4 = vadd.f32 1.0, %v4146_v30 }
 0x552   :  { %v4148_v56 = vpop.eup %4147 }
 0x553   :  { %4153 = vrcp.f32 %v2660_v4  ;;  %v2666_v3 = vadd.f32 1.0, %v4148_v56  ;;  %v4150_v24 = vpop.eup %4149 }
 0x554   :  { %v4152_v2 = vpop.eup %4151 }
 0x555   :  { %4155 = vrcp.f32 %v2666_v3  ;;  %v2673_v14 = vadd.f32 1.0, %v4152_v2  ;;  %v7932_v3 = vld [vmem:[#allocation116_spill] sm:$0xff] }
 0x55f   :  { %v2577_v49 = vpop.f32.mrf.mxu0  ;;  %v2648_v37 = vpop.f32.mrf.mxu1 }
 0x560   :  { %v4154_v47 = vpop.eup %4153  ;;  %v2653_v59 = vadd.f32 %v2577_v49, %v7930_v58  ;;  %v7933_v49 = vld [vmem:[#allocation114_spill] sm:$0xff] }
 0x561   :  { %v2677_v40 = vmul.f32 %v4154_v47, %v4150_v24  ;;  %v2579_v13 = vpop.f32.mrf.mxu0  ;;  %v2650_v0 = vpop.f32.mrf.mxu1  ;;  %v2655_v47 = vadd.f32 %v2648_v37, %v7933_v49  ;;  %v6470_v37 = vld [vmem:[#allocation17 + $0x3f0] sm:$0xff] }
 0x562   :  { %v4156_v50 = vpop.eup %4155  ;;  %v3927_v61 = vmul.f32 -1.442695, %v2653_v59  ;;  %v2654_v36 = vadd.f32 %v2579_v13, %v7931_v22  ;;  %v2656_v24 = vadd.f32 %v2650_v0, %v7932_v3  ;;  %v6476_v0 = vld [vmem:[#allocation17 + $0x3d8] sm:$0xff]  ;;  %v6494_v49 = vld [vmem:[#allocation17 + $0x3b0] sm:$0xff] }
 0x563   :  { %v2676_v30 = vmul.f32 %v4156_v50, %v6154_v8  ;;  %v6488_v3 = vld [vmem:[#allocation17 + $0x3b8] sm:$0xff]  ;;  %7935 = vst [vmem:[#allocation56_spill] sm:$0xff] %v6494_v49 }
 0x564   :  { %4157 = vpow2.f32 %v3927_v61  ;;  %v3928_v4 = vmul.f32 -1.442695, %v2654_v36  ;;  %v3929_v58 = vmul.f32 -1.442695, %v2656_v24  ;;  %v7934_v36 = vmax.f32 %v6001_v62, %v6159_v33  ;;  %v6482_v62 = vld [vmem:[#allocation17 + $0x3d0] sm:$0xff]  ;;  %v6485_v33 = vld [vmem:[#allocation17 + $0x3a8] sm:$0xff] }
 0x565   :  { %v6454_v56 = vadd.f32 %v2677_v40, %v2676_v30  ;;  %v6491_v24 = vld [vmem:[#allocation17 + $0x3a0] sm:$0xff] }
 0x566   :  { %4159 = vpow2.f32 %v3928_v4  ;;  %v6473_v4 = vld [vmem:[#allocation17 + $0x3c8] sm:$0xff] }
 0x567   :  { %4161 = vrcp.f32 %v2673_v14  ;;  %v6467_v14 = vld [vmem:[#allocation17 + $0x3e0] sm:$0xff] }
 0x568   :  { %4163 = vtanh.f32 %v6454_v56 }
 0x569   :  { %4165 = vtanh.f32 %v2655_v47  ;;  %v6497_v47 = vld [vmem:[#allocation17 + $0x388] sm:$0xff] }
 0x56a   :  { %4167 = vpow2.f32 %v3929_v58  ;;  %7936 = vst [vmem:[#allocation57_spill] sm:$0xff] %v6497_v47  ;;  %v6500_v58 = vld [vmem:[#allocation17 + $0x398] sm:$0xff] }
 0x56b   :  { %7937 = vst [vmem:[#allocation58_spill] sm:$0xff] %v6500_v58 }
 0x571   :  { %v4158_v59 = vpop.eup %4157 }
 0x572   :  { %v2684_v13 = vadd.f32 1.0, %v4158_v59 }
 0x573   :  { %v4160_v8 = vpop.eup %4159 }
 0x574   :  { %v4162_v2 = vpop.eup %4161  ;;  %4169 = vrcp.f32 %v2684_v13  ;;  %v2690_v50 = vadd.f32 1.0, %v4160_v8  ;;  %v6503_v13 = vld [vmem:[#allocation17 + $0x380] sm:$0xff]  ;;  %v6506_v8 = vld [vmem:[#allocation17 + $0x390] sm:$0xff] }
 0x575   :  { %v4164_v40 = vpop.eup %4163  ;;  %7938 = vst [vmem:[#allocation59_spill] sm:$0xff] %v6503_v13  ;;  %7939 = vst [vmem:[#allocation60_spill] sm:$0xff] %v6506_v8 }
 0x576   :  { %4171 = vrcp.f32 %v2690_v50  ;;  %v2680_v61 = vmul.f32 %v4164_v40, %v4162_v2  ;;  %v4166_v59 = vpop.eup %4165  ;;  %v6509_v50 = vld [vmem:[#allocation17 + $0x368] sm:$0xff]  ;;  %v6512_v40 = vld [vmem:[#allocation17 + $0x378] sm:$0xff] }
 0x577   :  { %v4168_v2 = vpop.eup %4167  ;;  %7940 = vst [vmem:[#allocation61_spill] sm:$0xff] %v6509_v50  ;;  %7941 = vst [vmem:[#allocation62_spill] sm:$0xff] %v6512_v40 }
 0x578   :  { %2780 = vmatmul.mubr.f32.vlgmr.msra.gmra.mxu0 %v2680_v61  ;;  %2851 = vmatmul.mubr.f32.vlgmr.msra.gmra.mxu1 %v2680_v61  ;;  %v6460_v22 = vadd.f32 %v2680_v61, %v6165_v39  ;;  %v6465_v30 = vmax.f32 %v7934_v36, %v2680_v61  ;;  %v6479_v39 = vld [vmem:[#allocation17 + $0x3c0] sm:$0xff] }
 0x579   :  { %2868 = vmatpush1.msra.mxu0 %v6467_v14  ;;  %2939 = vmatpush1.msra.mxu1 %v6470_v37  ;;  %v6515_v36 = vld [vmem:[#allocation17 + $0x360] sm:$0xff] }
 0x57a   :  { %2869 = vmatprep.subr.mxu0 %v6473_v4  ;;  %2940 = vmatprep.subr.mxu1 %v6476_v0  ;;  %7942 = vst [vmem:[#allocation63_spill] sm:$0xff] %v6515_v36 }
 0x57b   :  { %2870 = vmatpush1.msra.mxu0 %v6479_v39  ;;  %2941 = vmatpush1.msra.mxu1 %v6482_v62 }
 0x57c   :  { %2871 = vmatprep.subr.mxu0 %v6485_v33  ;;  %2942 = vmatprep.subr.mxu1 %v6488_v3 }
 0x57d   :  { %2872 = vmatpush1.msra.mxu0 %v6491_v24  ;;  %2943 = vmatpush1.msra.mxu1 %v6494_v49  ;;  %v6527_v49 = vld [vmem:[#allocation17 + $0x340] sm:$0xff] }
 0x57e   :  { %2873 = vmatprep.subr.mxu0 %v6497_v47  ;;  %2944 = vmatprep.subr.mxu1 %v6500_v58  ;;  %v6518_v58 = vld [vmem:[#allocation17 + $0x370] sm:$0xff]  ;;  %v6524_v47 = vld [vmem:[#allocation17 + $0x358] sm:$0xff]  ;;  %7946 = vst [vmem:[#allocation67_spill] sm:$0xff] %v6527_v49 }
 0x57f   :  { %2874 = vmatpush1.msra.mxu0 %v6503_v13  ;;  %2945 = vmatpush1.msra.mxu1 %v6506_v8  ;;  %7943 = vst [vmem:[#allocation64_spill] sm:$0xff] %v6518_v58  ;;  %v6521_v8 = vld [vmem:[#allocation17 + $0x348] sm:$0xff]  ;;  %7945 = vst [vmem:[#allocation66_spill] sm:$0xff] %v6524_v47 }
 0x580   :  { %2875 = vmatprep.subr.mxu0 %v6509_v50  ;;  %2946 = vmatprep.subr.mxu1 %v6512_v40  ;;  %7944 = vst [vmem:[#allocation65_spill] sm:$0xff] %v6521_v8  ;;  %v2697_v40 = vadd.f32 1.0, %v4168_v2  ;;  %v6543_v2 = vld [vmem:[#allocation17 + $0x330] sm:$0xff] }
 0x581   :  { %v4170_v61 = vpop.eup %4169  ;;  %2876 = vmatpush1.msra.mxu0 %v6515_v36  ;;  %2947 = vmatpush1.msra.mxu1 %v6518_v58  ;;  %v6530_v36 = vld [vmem:[#allocation17 + $0x350] sm:$0xff]  ;;  %7950 = vst [vmem:[#allocation71_spill] sm:$0xff] %v6543_v2 }
 0x582   :  { %v2701_v13 = vmul.f32 %v4170_v61, %v4166_v59  ;;  %2877 = vmatprep.subr.mxu0 %v6521_v8  ;;  %2948 = vmatprep.subr.mxu1 %v6524_v47  ;;  %7947 = vst [vmem:[#allocation68_spill] sm:$0xff] %v6530_v36  ;;  %v6534_v61 = vld [vmem:[#allocation17 + $0x328] sm:$0xff]  ;;  %v6537_v8 = vld [vmem:[#allocation17 + $0x338] sm:$0xff]  ;;  %v6540_v47 = vld [vmem:[#allocation17 + $0x320] sm:$0xff]  ;;  %4173 = vrcp.f32 %v2697_v40 }
 0x583   :  { %v4172_v50 = vpop.eup %4171  ;;  %2878 = vmatpush1.msra.mxu0 %v6527_v49  ;;  %2949 = vmatpush1.msra.mxu1 %v6530_v36  ;;  %7948 = vst [vmem:[#allocation69_spill] sm:$0xff] %v6537_v8  ;;  %7949 = vst [vmem:[#allocation70_spill] sm:$0xff] %v6540_v47  ;;  %v6548_v36 = vld [vmem:[#allocation17 + $0x308] sm:$0xff]  ;;  %v6570_v40 = vld [vmem:[#allocation17 + $0x2f0] sm:$0xff] }
 0x584   :  { %v2700_v59 = vmul.f32 %v4172_v50, %v6196_v41  ;;  %2879 = vmatprep.subr.mxu0 %v6534_v61  ;;  %2950 = vmatprep.subr.mxu1 %v6537_v8  ;;  %7951 = vst [vmem:[#allocation72_spill] sm:$0xff] %v6548_v36  ;;  %v6551_v41 = vld [vmem:[#allocation17 + $0x318] sm:$0xff]  ;;  %v6554_v50 = vld [vmem:[#allocation17 + $0x300] sm:$0xff]  ;;  %7958 = vst [vmem:[#allocation79_spill] sm:$0xff] %v6570_v40 }
 0x585   :  { %2880 = vmatpush1.msra.mxu0 %v6540_v47  ;;  %2951 = vmatpush1.msra.mxu1 %v6543_v2  ;;  %7952 = vst [vmem:[#allocation73_spill] sm:$0xff] %v6551_v41  ;;  %7953 = vst [vmem:[#allocation74_spill] sm:$0xff] %v6554_v50  ;;  %v6557_v47 = vld [vmem:[#allocation17 + $0x310] sm:$0xff]  ;;  %v6560_v2 = vld [vmem:[#allocation17 + $0x2e8] sm:$0xff] }
 0x586   :  { %v6546_v49 = vadd.f32 %v2701_v13, %v2700_v59  ;;  %2881 = vmatprep.subr.mxu0 %v6548_v36  ;;  %2952 = vmatprep.subr.mxu1 %v6551_v41  ;;  %7954 = vst [vmem:[#allocation75_spill] sm:$0xff] %v6557_v47  ;;  %7955 = vst [vmem:[#allocation76_spill] sm:$0xff] %v6560_v2  ;;  %v6563_v13 = vld [vmem:[#allocation17 + $0x2f8] sm:$0xff]  ;;  %v6567_v59 = vld [vmem:[#allocation17 + $0x2e0] sm:$0xff] }
 0x587   :  { %2882 = vmatpush1.msra.mxu0 %v6554_v50  ;;  %2953 = vmatpush1.msra.mxu1 %v6557_v47  ;;  %7956 = vst [vmem:[#allocation77_spill] sm:$0xff] %v6563_v13  ;;  %7957 = vst [vmem:[#allocation78_spill] sm:$0xff] %v6567_v59  ;;  %v6573_v50 = vld [vmem:[#allocation17 + $0x2c8] sm:$0xff]  ;;  %v6576_v47 = vld [vmem:[#allocation17 + $0x2d8] sm:$0xff] }
 0x588   :  { %2883 = vmatprep.subr.mxu0 %v6560_v2  ;;  %2954 = vmatprep.subr.mxu1 %v6563_v13  ;;  %4175 = vtanh.f32 %v6546_v49  ;;  %7959 = vst [vmem:[#allocation80_spill] sm:$0xff] %v6573_v50  ;;  %7960 = vst [vmem:[#allocation29_spill] sm:$0xff] %v6576_v47  ;;  %v6579_v2 = vld [vmem:[#allocation17 + $0x2c0] sm:$0xff]  ;;  %v6582_v13 = vld [vmem:[#allocation17 + $0x2d0] sm:$0xff] }
 0x589   :  { %2884 = vmatpush1.msra.mxu0 %v6567_v59  ;;  %2955 = vmatpush1.msra.mxu1 %v6570_v40  ;;  %7961 = vst [vmem:[#allocation31_spill] sm:$0xff] %v6579_v2  ;;  %7962 = vst [vmem:[#allocation32_spill] sm:$0xff] %v6582_v13  ;;  %v6585_v59 = vld [vmem:[#allocation17 + $0x2a8] sm:$0xff]  ;;  %v6588_v40 = vld [vmem:[#allocation17 + $0x2b8] sm:$0xff] }
 0x58a   :  { %2885 = vmatprep.subr.mxu0 %v6573_v50  ;;  %2956 = vmatprep.subr.mxu1 %v6576_v47  ;;  %7963 = vst [vmem:[#allocation30_spill] sm:$0xff] %v6585_v59  ;;  %7964 = vst [vmem:[#allocation117_spill] sm:$0xff] %v6588_v40  ;;  %v6591_v50 = vld [vmem:[#allocation17 + $0x2a0] sm:$0xff]  ;;  %v6594_v47 = vld [vmem:[#allocation17 + $0x2b0] sm:$0xff] }
 0x58b   :  { %2886 = vmatpush1.msra.mxu0 %v6579_v2  ;;  %2957 = vmatpush1.msra.mxu1 %v6582_v13  ;;  %7965 = vst [vmem:[#allocation119_spill] sm:$0xff] %v6591_v50  ;;  %7966 = vst [vmem:[#allocation120_spill] sm:$0xff] %v6594_v47  ;;  %v6597_v2 = vld [vmem:[#allocation17 + $0x288] sm:$0xff]  ;;  %v6600_v13 = vld [vmem:[#allocation17 + $0x298] sm:$0xff] }
 0x58c   :  { %2887 = vmatprep.subr.mxu0 %v6585_v59  ;;  %2958 = vmatprep.subr.mxu1 %v6588_v40  ;;  %7967 = vst [vmem:[#allocation118_spill] sm:$0xff] %v6597_v2  ;;  %7968 = vst [vmem:[#allocation87_spill] sm:$0xff] %v6600_v13  ;;  %v6603_v59 = vld [vmem:[#allocation17 + $0x280] sm:$0xff]  ;;  %v6606_v40 = vld [vmem:[#allocation17 + $0x290] sm:$0xff] }
 0x58d   :  { %2888 = vmatpush1.msra.mxu0 %v6591_v50  ;;  %2959 = vmatpush1.msra.mxu1 %v6594_v47  ;;  %7969 = vst [vmem:[#allocation126_spill] sm:$0xff] %v6603_v59  ;;  %7970 = vst [vmem:[#allocation128_spill] sm:$0xff] %v6606_v40  ;;  %v6609_v50 = vld [vmem:[#allocation17 + $0x268] sm:$0xff]  ;;  %v6612_v47 = vld [vmem:[#allocation17 + $0x278] sm:$0xff] }
 0x58e   :  { %2889 = vmatprep.subr.mxu0 %v6597_v2  ;;  %2960 = vmatprep.subr.mxu1 %v6600_v13  ;;  %7971 = vst [vmem:[#allocation130_spill] sm:$0xff] %v6609_v50  ;;  %7972 = vst [vmem:[#allocation131_spill] sm:$0xff] %v6612_v47  ;;  %v6615_v2 = vld [vmem:[#allocation17 + $0x260] sm:$0xff]  ;;  %v6618_v13 = vld [vmem:[#allocation17 + $0x270] sm:$0xff] }
 0x58f   :  { %2890 = vmatpush1.msra.mxu0 %v6603_v59  ;;  %2961 = vmatpush1.msra.mxu1 %v6606_v40  ;;  %7973 = vst [vmem:[#allocation132_spill] sm:$0xff] %v6615_v2  ;;  %7974 = vst [vmem:[#allocation133_spill] sm:$0xff] %v6618_v13  ;;  %v6621_v59 = vld [vmem:[#allocation17 + $0x248] sm:$0xff]  ;;  %v6624_v40 = vld [vmem:[#allocation17 + $0x258] sm:$0xff] }
 0x590   :  { %2891 = vmatprep.subr.mxu0 %v6609_v50  ;;  %2962 = vmatprep.subr.mxu1 %v6612_v47  ;;  %7975 = vst [vmem:[#allocation134_spill] sm:$0xff] %v6621_v59  ;;  %7976 = vst [vmem:[#allocation135_spill] sm:$0xff] %v6624_v40  ;;  %v6627_v50 = vld [vmem:[#allocation17 + $0x240] sm:$0xff]  ;;  %v6630_v47 = vld [vmem:[#allocation17 + $0x250] sm:$0xff] }
 0x591   :  { %2892 = vmatpush1.msra.mxu0 %v6615_v2  ;;  %2963 = vmatpush1.msra.mxu1 %v6618_v13  ;;  %7977 = vst [vmem:[#allocation136_spill] sm:$0xff] %v6627_v50  ;;  %7978 = vst [vmem:[#allocation137_spill] sm:$0xff] %v6630_v47  ;;  %v4174_v2 = vpop.eup %4173  ;;  %v6633_v41 = vld [vmem:[#allocation17 + $0x228] sm:$0xff]  ;;  %v6636_v13 = vld [vmem:[#allocation17 + $0x238] sm:$0xff] }
 0x592   :  { %2893 = vmatprep.subr.mxu0 %v6621_v59  ;;  %2964 = vmatprep.subr.mxu1 %v6624_v40  ;;  %7979 = vst [vmem:[#allocation138_spill] sm:$0xff] %v6633_v41  ;;  %7980 = vst [vmem:[#allocation139_spill] sm:$0xff] %v6636_v13  ;;  %v6639_v36 = vld [vmem:[#allocation17 + $0x220] sm:$0xff]  ;;  %v6642_v40 = vld [vmem:[#allocation17 + $0x230] sm:$0xff] }
 0x593   :  { %2894 = vmatpush1.msra.mxu0 %v6627_v50  ;;  %2965 = vmatpush1.msra.mxu1 %v6630_v47  ;;  %7981 = vst [vmem:[#allocation140_spill] sm:$0xff] %v6639_v36  ;;  %7982 = vst [vmem:[#allocation141_spill] sm:$0xff] %v6642_v40  ;;  %v6645_v50 = vld [vmem:[#allocation17 + $0x208] sm:$0xff]  ;;  %v6648_v47 = vld [vmem:[#allocation17 + $0x218] sm:$0xff] }
 0x594   :  { %2895 = vmatprep.subr.mxu0 %v6633_v41  ;;  %2966 = vmatprep.subr.mxu1 %v6636_v13  ;;  %7983 = vst [vmem:[#allocation142_spill] sm:$0xff] %v6645_v50  ;;  %7984 = vst [vmem:[#allocation143_spill] sm:$0xff] %v6648_v47  ;;  %v6651_v8 = vld [vmem:[#allocation17 + $0x200] sm:$0xff] }
 0x595   :  { %v4176_v59 = vpop.eup %4175  ;;  %2896 = vmatpush1.msra.mxu0 %v6639_v36  ;;  %2967 = vmatpush1.msra.mxu1 %v6642_v40  ;;  %v6655_v36 = vld [vmem:[#allocation17 + $0x210] sm:$0xff] }
 0x596   :  { %2897 = vmatprep.subr.mxu0 %v6645_v50  ;;  %2968 = vmatprep.subr.mxu1 %v6648_v47  ;;  %v2704_v41 = vmul.f32 %v4176_v59, %v4174_v2  ;;  %v7985_v50 = vmax.f32 %v6077_v6, %v6233_v46  ;;  %v7986_v6 = vld [vmem:[#allocation84_spill] sm:$0xff]  ;;  %v7987_v46 = vld [vmem:[#allocation85_spill] sm:$0xff]  ;;  %v7989_v2 = vld [vmem:[#allocation127_spill] sm:$0xff] }
 0x597   :  { %2898 = vmatpush1.msra.mxu0 %v6651_v8  ;;  %2931 = vmatprep.mubr.f32.mxu0 %v7508_v31  ;;  %v7992_v59 = vld [vmem:[#allocation158_spill] sm:$0xff] }
 0x598   :  { %2969 = vmatpush1.msra.mxu1 %v6655_v36  ;;  %3002 = vmatprep.mubr.f32.mxu1 %v7508_v31  ;;  %v6660_v40 = vadd.f32 %v2704_v41, %v6241_v20  ;;  %v6665_v47 = vmax.f32 %v7985_v50, %v2704_v41  ;;  %v7988_v20 = vld [vmem:[#allocation86_spill] sm:$0xff]  ;;  %v7991_v50 = vld [vmem:[#allocation155_spill] sm:$0xff] }
 0x599   :  { %2932 = vmatmul.mubr.f32.vlgmr.msra.gmra.mxu0 %v2704_v41  ;;  %3003 = vmatmul.mubr.f32.vlgmr.msra.gmra.mxu1 %v2704_v41  ;;  %v7990_v41 = vld [vmem:[#allocation129_spill] sm:$0xff] }
 0x59a   :  { %3071 = vmatprep.subr.mxu0 %v6247_v26  ;;  %3142 = vmatprep.subr.mxu1 %v6250_v21 }
 0x59b   :  { %3072 = vmatpush1.msra.mxu0 %v6253_v16  ;;  %3143 = vmatpush1.msra.mxu1 %v6256_v55 }
 0x59c   :  { %3073 = vmatprep.subr.mxu0 %v6259_v25  ;;  %3144 = vmatprep.subr.mxu1 %v6262_v29 }
 0x59d   :  { %3074 = vmatpush1.msra.mxu0 %v6265_v63  ;;  %3145 = vmatpush1.msra.mxu1 %v6268_v34 }
 0x59e   :  { %3075 = vmatprep.subr.mxu0 %v6271_v35  ;;  %3146 = vmatprep.subr.mxu1 %v6274_v38 }
 0x59f   :  { %3076 = vmatpush1.msra.mxu0 %v6277_v48  ;;  %3147 = vmatpush1.msra.mxu1 %v6280_v52 }
 0x5a0   :  { %3077 = vmatprep.subr.mxu0 %v6283_v45  ;;  %3148 = vmatprep.subr.mxu1 %v6286_v54 }
 0x5a1   :  { %3078 = vmatpush1.msra.mxu0 %v6289_v12  ;;  %3149 = vmatpush1.msra.mxu1 %v6292_v32 }
 0x5a2   :  { %3079 = vmatprep.subr.mxu0 %v6295_v7  ;;  %3150 = vmatprep.subr.mxu1 %v6298_v19 }
 0x5a3   :  { %3080 = vmatpush1.msra.mxu0 %v6301_v23  ;;  %3151 = vmatpush1.msra.mxu1 %v6304_v28 }
 0x5a4   :  { %3081 = vmatprep.subr.mxu0 %v6307_v5  ;;  %3152 = vmatprep.subr.mxu1 %v6310_v18 }
 0x5a5   :  { %3082 = vmatpush1.msra.mxu0 %v6313_v1  ;;  %3153 = vmatpush1.msra.mxu1 %v6316_v9 }
 0x5a6   :  { %3083 = vmatprep.subr.mxu0 %v6319_v57  ;;  %3154 = vmatprep.subr.mxu1 %v6322_v17 }
 0x5a7   :  { %3084 = vmatpush1.msra.mxu0 %v6325_v53  ;;  %3155 = vmatpush1.msra.mxu1 %v6328_v51 }
 0x5a8   :  { %3085 = vmatprep.subr.mxu0 %v6331_v15  ;;  %3156 = vmatprep.subr.mxu1 %v6334_v11  ;;  %v8019_v15 = vld [vmem:[#allocation90_spill] sm:$0xff] }
 0x5a9   :  { %3086 = vmatpush1.msra.mxu0 %v6337_v10  ;;  %3157 = vmatpush1.msra.mxu1 %v6340_v27  ;;  %v8018_v10 = vld [vmem:[#allocation92_spill] sm:$0xff] }
 0x5aa   :  { %3087 = vmatprep.subr.mxu0 %v6343_v44  ;;  %3158 = vmatprep.subr.mxu1 %v6346_v60  ;;  %v7993_v44 = vld [vmem:[#allocation160_spill] sm:$0xff]  ;;  %v7994_v60 = vld [vmem:[#allocation162_spill] sm:$0xff] }
 0x5ab   :  { %3088 = vmatpush1.msra.mxu0 %v6349_v43  ;;  %3159 = vmatpush1.msra.mxu1 %v6352_v42  ;;  %v7995_v43 = vld [vmem:[#allocation163_spill] sm:$0xff]  ;;  %v7996_v42 = vld [vmem:[#allocation36_spill] sm:$0xff] }
 0x5ac   :  { %3089 = vmatprep.subr.mxu0 %v7986_v6  ;;  %3160 = vmatprep.subr.mxu1 %v7987_v46  ;;  %v7997_v6 = vld [vmem:[#allocation37_spill] sm:$0xff]  ;;  %v7998_v46 = vld [vmem:[#allocation38_spill] sm:$0xff] }
 0x5ad   :  { %3090 = vmatpush1.msra.mxu0 %v7988_v20  ;;  %3161 = vmatpush1.msra.mxu1 %v7989_v2  ;;  %v7999_v20 = vld [vmem:[#allocation39_spill] sm:$0xff]  ;;  %v8000_v2 = vld [vmem:[#allocation40_spill] sm:$0xff] }
 0x5ae   :  { %3091 = vmatprep.subr.mxu0 %v7990_v41  ;;  %3162 = vmatprep.subr.mxu1 %v7991_v50  ;;  %v8001_v41 = vld [vmem:[#allocation41_spill] sm:$0xff]  ;;  %v8002_v50 = vld [vmem:[#allocation42_spill] sm:$0xff] }
 0x5af   :  { %3092 = vmatpush1.msra.mxu0 %v7992_v59  ;;  %3163 = vmatpush1.msra.mxu1 %v7993_v44  ;;  %v8003_v59 = vld [vmem:[#allocation43_spill] sm:$0xff]  ;;  %v8004_v44 = vld [vmem:[#allocation44_spill] sm:$0xff] }
 0x5b0   :  { %3093 = vmatprep.subr.mxu0 %v7994_v60  ;;  %3164 = vmatprep.subr.mxu1 %v7995_v43  ;;  %v8005_v60 = vld [vmem:[#allocation45_spill] sm:$0xff]  ;;  %v8006_v43 = vld [vmem:[#allocation46_spill] sm:$0xff] }
 0x5b1   :  { %3094 = vmatpush1.msra.mxu0 %v7996_v42  ;;  %3165 = vmatpush1.msra.mxu1 %v7997_v6  ;;  %v8007_v42 = vld [vmem:[#allocation47_spill] sm:$0xff]  ;;  %v8008_v6 = vld [vmem:[#allocation48_spill] sm:$0xff] }
 0x5b2   :  { %3095 = vmatprep.subr.mxu0 %v7998_v46  ;;  %3166 = vmatprep.subr.mxu1 %v7999_v20  ;;  %v8009_v46 = vld [vmem:[#allocation49_spill] sm:$0xff]  ;;  %v8010_v20 = vld [vmem:[#allocation50_spill] sm:$0xff] }
 0x5b3   :  { %3096 = vmatpush1.msra.mxu0 %v8000_v2  ;;  %3167 = vmatpush1.msra.mxu1 %v8001_v41  ;;  %v8011_v2 = vld [vmem:[#allocation51_spill] sm:$0xff]  ;;  %v8012_v41 = vld [vmem:[#allocation52_spill] sm:$0xff] }
 0x5b4   :  { %3097 = vmatprep.subr.mxu0 %v8002_v50  ;;  %3168 = vmatprep.subr.mxu1 %v8003_v59  ;;  %v8013_v50 = vld [vmem:[#allocation53_spill] sm:$0xff] }
 0x5b5   :  { %3098 = vmatpush1.msra.mxu0 %v8004_v44  ;;  %3169 = vmatpush1.msra.mxu1 %v8005_v60  ;;  %v8014_v60 = vld [vmem:[#allocation54_spill] sm:$0xff] }
 0x5b6   :  { %3099 = vmatprep.subr.mxu0 %v8006_v43  ;;  %3170 = vmatprep.subr.mxu1 %v8007_v42  ;;  %v8015_v43 = vld [vmem:[#allocation55_spill] sm:$0xff] }
 0x5b7   :  { %3100 = vmatpush1.msra.mxu0 %v8008_v6  ;;  %3171 = vmatpush1.msra.mxu1 %v8009_v46  ;;  %v8016_v6 = vld [vmem:[#allocation89_spill] sm:$0xff] }
 0x5b8   :  { %3101 = vmatprep.subr.mxu0 %v8010_v20  ;;  %3172 = vmatprep.subr.mxu1 %v8011_v2  ;;  %v8017_v20 = vld [vmem:[#allocation91_spill] sm:$0xff] }
 0x5b9   :  { %3102 = vmatpush1.msra.mxu0 %v8012_v41  ;;  %3173 = vmatpush1.msra.mxu1 %v8013_v50 }
 0x5ba   :  { %3135 = vmatprep.mubr.f32.mxu0 %v7508_v31  ;;  %3206 = vmatprep.mubr.f32.mxu1 %v7508_v31 }
 0x5bb   :  { %3223 = vmatprep.subr.mxu0 %v8014_v60  ;;  %3294 = vmatprep.subr.mxu1 %v8015_v43 }
 0x638   :  { %v2781_v42 = vpop.f32.mrf.mxu0  ;;  %v2852_v2 = vpop.f32.mrf.mxu1 }
 0x639   :  { %v2857_v44 = vadd.f32 %v2781_v42, %v8016_v6  ;;  %v2859_v51 = vadd.f32 %v2852_v2, %v8019_v15  ;;  %v8021_v15 = vld [vmem:[#allocation111_spill] sm:$0xff] }
 0x63a   :  { %v2783_v46 = vpop.f32.mrf.mxu0  ;;  %v2854_v50 = vpop.f32.mrf.mxu1 }
 0x63b   :  { %v3930_v59 = vmul.f32 -1.442695, %v2857_v44  ;;  %v2858_v27 = vadd.f32 %v2783_v46, %v8017_v20  ;;  %v2860_v11 = vadd.f32 %v2854_v50, %v8018_v10 }
 0x63d   :  { %4177 = vpow2.f32 %v3930_v59  ;;  %v3931_v41 = vmul.f32 -1.442695, %v2858_v27  ;;  %v3932_v53 = vmul.f32 -1.442695, %v2860_v11  ;;  %v8020_v27 = vld [vmem:[#allocation109_spill] sm:$0xff] }
 0x63f   :  { %4179 = vpow2.f32 %v3931_v41 }
 0x640   :  { %4181 = vtanh.f32 %v2859_v51 }
 0x641   :  { %4183 = vpow2.f32 %v3932_v53 }
 0x64a   :  { %v4178_v60 = vpop.eup %4177 }
 0x64b   :  { %v3016_v17 = vadd.f32 1.0, %v4178_v60 }
 0x64c   :  { %v4180_v43 = vpop.eup %4179 }
 0x64d   :  { %4185 = vrcp.f32 %v3016_v17  ;;  %v3022_v42 = vadd.f32 1.0, %v4180_v43  ;;  %v4182_v44 = vpop.eup %4181 }
 0x64e   :  { %v4184_v6 = vpop.eup %4183 }
 0x64f   :  { %4187 = vrcp.f32 %v3022_v42  ;;  %v3029_v51 = vadd.f32 1.0, %v4184_v6  ;;  %v8022_v42 = vld [vmem:[#allocation112_spill] sm:$0xff] }
 0x659   :  { %v2933_v46 = vpop.f32.mrf.mxu0  ;;  %v3004_v53 = vpop.f32.mrf.mxu1 }
 0x65a   :  { %v4186_v20 = vpop.eup %4185  ;;  %v3009_v41 = vadd.f32 %v2933_v46, %v8020_v27  ;;  %v8023_v46 = vld [vmem:[#allocation110_spill] sm:$0xff] }
 0x65b   :  { %v3033_v59 = vmul.f32 %v4186_v20, %v4182_v44  ;;  %v2935_v57 = vpop.f32.mrf.mxu0  ;;  %v3006_v2 = vpop.f32.mrf.mxu1  ;;  %v3011_v20 = vadd.f32 %v3004_v53, %v8023_v46  ;;  %v8030_v46 = vld [vmem:[#allocation62_spill] sm:$0xff] }
 0x65c   :  { %v4188_v10 = vpop.eup %4187  ;;  %v3933_v50 = vmul.f32 -1.442695, %v3009_v41  ;;  %v3010_v11 = vadd.f32 %v2935_v57, %v8021_v15  ;;  %v3012_v44 = vadd.f32 %v3006_v2, %v8022_v42  ;;  %v8028_v2 = vld [vmem:[#allocation60_spill] sm:$0xff] }
 0x65d   :  { %v3032_v60 = vmul.f32 %v4188_v10, %v6454_v56 }
 0x65e   :  { %4189 = vpow2.f32 %v3933_v50  ;;  %v3934_v17 = vmul.f32 -1.442695, %v3010_v11  ;;  %v3935_v27 = vmul.f32 -1.442695, %v3012_v44  ;;  %v8029_v44 = vld [vmem:[#allocation61_spill] sm:$0xff]  ;;  %v8035_v11 = vld [vmem:[#allocation68_spill] sm:$0xff] }
 0x65f   :  { %v6742_v43 = vadd.f32 %v3033_v59, %v3032_v60  ;;  %v8025_v60 = vld [vmem:[#allocation57_spill] sm:$0xff] }
 0x660   :  { %4191 = vpow2.f32 %v3934_v17  ;;  %v8027_v17 = vld [vmem:[#allocation59_spill] sm:$0xff] }
 0x661   :  { %4193 = vrcp.f32 %v3029_v51  ;;  %v8026_v51 = vld [vmem:[#allocation58_spill] sm:$0xff] }
 0x662   :  { %4195 = vtanh.f32 %v6742_v43 }
 0x663   :  { %4197 = vtanh.f32 %v3011_v20 }
 0x664   :  { %4199 = vpow2.f32 %v3935_v27  ;;  %v8031_v27 = vld [vmem:[#allocation63_spill] sm:$0xff] }
 0x66b   :  { %v4190_v41 = vpop.eup %4189 }
 0x66c   :  { %v3040_v57 = vadd.f32 1.0, %v4190_v41 }
 0x66d   :  { %v4192_v56 = vpop.eup %4191 }
 0x66e   :  { %v4194_v6 = vpop.eup %4193  ;;  %4201 = vrcp.f32 %v3040_v57  ;;  %v3046_v10 = vadd.f32 1.0, %v4192_v56  ;;  %v8032_v57 = vld [vmem:[#allocation65_spill] sm:$0xff]  ;;  %v8033_v56 = vld [vmem:[#allocation66_spill] sm:$0xff] }
 0x66f   :  { %v4196_v59 = vpop.eup %4195 }
 0x670   :  { %4203 = vrcp.f32 %v3046_v10  ;;  %v6747_v50 = vmul.f32 %v4196_v59, %v4194_v6  ;;  %v4198_v53 = vpop.eup %4197  ;;  %v8034_v59 = vld [vmem:[#allocation67_spill] sm:$0xff] }
 0x671   :  { %v4200_v42 = vpop.eup %4199 }
 0x672   :  { %3136 = vmatmul.mubr.f32.vlgmr.msra.gmra.mxu0 %v6747_v50  ;;  %3207 = vmatmul.mubr.f32.vlgmr.msra.gmra.mxu1 %v6747_v50  ;;  %v6753_v15 = vadd.f32 %v6747_v50, %v6460_v22  ;;  %v8024_v22 = vld [vmem:[#allocation56_spill] sm:$0xff]  ;;  %v3053_v10 = vadd.f32 1.0, %v4200_v42  ;;  %v8041_v42 = vld [vmem:[#allocation74_spill] sm:$0xff] }
 0x673   :  { %3224 = vmatpush1.msra.mxu0 %v6467_v14  ;;  %3295 = vmatpush1.msra.mxu1 %v6470_v37 }
 0x674   :  { %3225 = vmatprep.subr.mxu0 %v6473_v4  ;;  %3296 = vmatprep.subr.mxu1 %v6476_v0  ;;  %4205 = vrcp.f32 %v3053_v10  ;;  %v8050_v10 = vld [vmem:[#allocation32_spill] sm:$0xff] }
 0x675   :  { %3226 = vmatpush1.msra.mxu0 %v6479_v39  ;;  %3297 = vmatpush1.msra.mxu1 %v6482_v62 }
 0x676   :  { %3227 = vmatprep.subr.mxu0 %v6485_v33  ;;  %3298 = vmatprep.subr.mxu1 %v6488_v3 }
 0x677   :  { %3228 = vmatpush1.msra.mxu0 %v6491_v24  ;;  %3299 = vmatpush1.msra.mxu1 %v8024_v22 }
 0x678   :  { %3229 = vmatprep.subr.mxu0 %v8025_v60  ;;  %3300 = vmatprep.subr.mxu1 %v8026_v51 }
 0x679   :  { %3230 = vmatpush1.msra.mxu0 %v8027_v17  ;;  %3301 = vmatpush1.msra.mxu1 %v8028_v2 }
 0x67a   :  { %3231 = vmatprep.subr.mxu0 %v8029_v44  ;;  %3302 = vmatprep.subr.mxu1 %v8030_v46  ;;  %v8036_v46 = vld [vmem:[#allocation69_spill] sm:$0xff] }
 0x67b   :  { %v4202_v20 = vpop.eup %4201  ;;  %3232 = vmatpush1.msra.mxu0 %v8031_v27  ;;  %3303 = vmatpush1.msra.mxu1 %v6518_v58  ;;  %v8037_v27 = vld [vmem:[#allocation70_spill] sm:$0xff]  ;;  %v8038_v58 = vld [vmem:[#allocation71_spill] sm:$0xff] }
 0x67c   :  { %v3057_v41 = vmul.f32 %v4202_v20, %v4198_v53  ;;  %3233 = vmatprep.subr.mxu0 %v8032_v57  ;;  %3304 = vmatprep.subr.mxu1 %v8033_v56  ;;  %v8039_v20 = vld [vmem:[#allocation72_spill] sm:$0xff]  ;;  %v8040_v56 = vld [vmem:[#allocation73_spill] sm:$0xff] }
 0x67d   :  { %v4204_v6 = vpop.eup %4203  ;;  %3234 = vmatpush1.msra.mxu0 %v8034_v59  ;;  %3305 = vmatpush1.msra.mxu1 %v8035_v11  ;;  %v8042_v11 = vld [vmem:[#allocation75_spill] sm:$0xff] }
 0x67e   :  { %v3056_v44 = vmul.f32 %v4204_v6, %v6546_v49  ;;  %3235 = vmatprep.subr.mxu0 %v6534_v61  ;;  %3306 = vmatprep.subr.mxu1 %v8036_v46  ;;  %v8043_v49 = vld [vmem:[#allocation76_spill] sm:$0xff]  ;;  %v8044_v6 = vld [vmem:[#allocation77_spill] sm:$0xff] }
 0x67f   :  { %3236 = vmatpush1.msra.mxu0 %v8037_v27  ;;  %3307 = vmatpush1.msra.mxu1 %v8038_v58  ;;  %v8045_v27 = vld [vmem:[#allocation78_spill] sm:$0xff]  ;;  %v8046_v58 = vld [vmem:[#allocation79_spill] sm:$0xff] }
 0x680   :  { %v6784_v53 = vadd.f32 %v3057_v41, %v3056_v44  ;;  %3237 = vmatprep.subr.mxu0 %v8039_v20  ;;  %3308 = vmatprep.subr.mxu1 %v8040_v56  ;;  %v8047_v44 = vld [vmem:[#allocation80_spill] sm:$0xff]  ;;  %v8048_v41 = vld [vmem:[#allocation29_spill] sm:$0xff]  ;;  %v8049_v56 = vld [vmem:[#allocation31_spill] sm:$0xff] }
 0x681   :  { %3238 = vmatpush1.msra.mxu0 %v8041_v42  ;;  %3309 = vmatpush1.msra.mxu1 %v8042_v11  ;;  %v8051_v42 = vld [vmem:[#allocation30_spill] sm:$0xff]  ;;  %v8052_v11 = vld [vmem:[#allocation117_spill] sm:$0xff] }
 0x682   :  { %3239 = vmatprep.subr.mxu0 %v8043_v49  ;;  %3310 = vmatprep.subr.mxu1 %v8044_v6  ;;  %4207 = vtanh.f32 %v6784_v53  ;;  %v8053_v49 = vld [vmem:[#allocation119_spill] sm:$0xff]  ;;  %v8054_v6 = vld [vmem:[#allocation120_spill] sm:$0xff]  ;;  %v8055_v20 = vld [vmem:[#allocation118_spill] sm:$0xff] }
 0x683   :  { %3240 = vmatpush1.msra.mxu0 %v8045_v27  ;;  %3311 = vmatpush1.msra.mxu1 %v8046_v58  ;;  %v8056_v27 = vld [vmem:[#allocation87_spill] sm:$0xff]  ;;  %v8057_v58 = vld [vmem:[#allocation126_spill] sm:$0xff] }
 0x684   :  { %3241 = vmatprep.subr.mxu0 %v8047_v44  ;;  %3312 = vmatprep.subr.mxu1 %v8048_v41  ;;  %v8058_v44 = vld [vmem:[#allocation128_spill] sm:$0xff]  ;;  %v8059_v41 = vld [vmem:[#allocation130_spill] sm:$0xff] }
 0x685   :  { %3242 = vmatpush1.msra.mxu0 %v8049_v56  ;;  %3313 = vmatpush1.msra.mxu1 %v8050_v10  ;;  %v8060_v56 = vld [vmem:[#allocation131_spill] sm:$0xff]  ;;  %v8061_v10 = vld [vmem:[#allocation132_spill] sm:$0xff] }
 0x686   :  { %3243 = vmatprep.subr.mxu0 %v8051_v42  ;;  %3314 = vmatprep.subr.mxu1 %v8052_v11  ;;  %v8062_v42 = vld [vmem:[#allocation133_spill] sm:$0xff]  ;;  %v8063_v11 = vld [vmem:[#allocation134_spill] sm:$0xff] }
 0x687   :  { %3244 = vmatpush1.msra.mxu0 %v8053_v49  ;;  %3315 = vmatpush1.msra.mxu1 %v8054_v6  ;;  %v8064_v49 = vld [vmem:[#allocation135_spill] sm:$0xff]  ;;  %v8065_v6 = vld [vmem:[#allocation136_spill] sm:$0xff] }
 0x688   :  { %3245 = vmatprep.subr.mxu0 %v8055_v20  ;;  %3316 = vmatprep.subr.mxu1 %v8056_v27  ;;  %v8066_v20 = vld [vmem:[#allocation137_spill] sm:$0xff]  ;;  %v4206_v27 = vpop.eup %4205 }
 0x689   :  { %3246 = vmatpush1.msra.mxu0 %v8057_v58  ;;  %3317 = vmatpush1.msra.mxu1 %v8058_v44  ;;  %v8067_v58 = vld [vmem:[#allocation138_spill] sm:$0xff]  ;;  %v8068_v44 = vld [vmem:[#allocation140_spill] sm:$0xff] }
 0x68a   :  { %3247 = vmatprep.subr.mxu0 %v8059_v41  ;;  %3318 = vmatprep.subr.mxu1 %v8060_v56  ;;  %v8069_v56 = vld [vmem:[#allocation141_spill] sm:$0xff] }
 0x68b   :  { %3248 = vmatpush1.msra.mxu0 %v8061_v10  ;;  %3319 = vmatpush1.msra.mxu1 %v8062_v42  ;;  %v8070_v10 = vld [vmem:[#allocation142_spill] sm:$0xff]  ;;  %v8071_v42 = vld [vmem:[#allocation143_spill] sm:$0xff] }
 0x68c   :  { %3249 = vmatprep.subr.mxu0 %v8063_v11  ;;  %3320 = vmatprep.subr.mxu1 %v8064_v49 }
 0x68d   :  { %3250 = vmatpush1.msra.mxu0 %v8065_v6  ;;  %3321 = vmatpush1.msra.mxu1 %v8066_v20 }
 0x68e   :  { %3251 = vmatprep.subr.mxu0 %v8067_v58  ;;  %3322 = vmatprep.subr.mxu1 %v6636_v13 }
 0x68f   :  { %v4208_v41 = vpop.eup %4207  ;;  %3252 = vmatpush1.msra.mxu0 %v8068_v44  ;;  %3323 = vmatpush1.msra.mxu1 %v8069_v56 }
 0x690   :  { %3253 = vmatprep.subr.mxu0 %v8070_v10  ;;  %3324 = vmatprep.subr.mxu1 %v8071_v42  ;;  %v6821_v11 = vmul.f32 %v4208_v41, %v4206_v27  ;;  %v8097_v27 = vld [vmem:[#allocation39_spill] sm:$0xff]  ;;  %v8098_v41 = vld [vmem:[#allocation40_spill] sm:$0xff] }
 0x691   :  { %3254 = vmatpush1.msra.mxu0 %v6651_v8  ;;  %3287 = vmatprep.mubr.f32.mxu0 %v7508_v31 }
 0x692   :  { %3325 = vmatpush1.msra.mxu1 %v6655_v36  ;;  %3358 = vmatprep.mubr.f32.mxu1 %v7508_v31  ;;  %v6829_v13 = vadd.f32 %v6821_v11, %v6660_v40  ;;  %v3064_v56 = vmax.f32 %v6665_v47, %v6821_v11  ;;  %v8096_v40 = vld [vmem:[#allocation38_spill] sm:$0xff] }
 0x693   :  { %3288 = vmatmul.mubr.f32.vlgmr.msra.gmra.mxu0 %v6821_v11  ;;  %3359 = vmatmul.mubr.f32.vlgmr.msra.gmra.mxu1 %v6821_v11 }
 0x694   :  { %3427 = vmatprep.subr.mxu0 %v6247_v26  ;;  %3498 = vmatprep.subr.mxu1 %v6250_v21  ;;  %v8072_v26 = vld [vmem:[#allocation25_spill] sm:$0xff]  ;;  %v8073_v21 = vld [vmem:[#allocation27_spill] sm:$0xff] }
 0x695   :  { %3428 = vmatpush1.msra.mxu0 %v6253_v16  ;;  %3499 = vmatpush1.msra.mxu1 %v6256_v55  ;;  %v8074_v16 = vld [vmem:[#allocation28_spill] sm:$0xff]  ;;  %v8075_v55 = vld [vmem:[#allocation26_spill] sm:$0xff] }
 0x696   :  { %3429 = vmatprep.subr.mxu0 %v6259_v25  ;;  %3500 = vmatprep.subr.mxu1 %v6262_v29  ;;  %v8076_v25 = vld [vmem:[#allocation121_spill] sm:$0xff]  ;;  %v8077_v29 = vld [vmem:[#allocation123_spill] sm:$0xff] }
 0x697   :  { %3430 = vmatpush1.msra.mxu0 %v6265_v63  ;;  %3501 = vmatpush1.msra.mxu1 %v6268_v34  ;;  %v8078_v63 = vld [vmem:[#allocation124_spill] sm:$0xff]  ;;  %v8079_v34 = vld [vmem:[#allocation122_spill] sm:$0xff] }
 0x698   :  { %3431 = vmatprep.subr.mxu0 %v6271_v35  ;;  %3502 = vmatprep.subr.mxu1 %v6274_v38  ;;  %v8080_v35 = vld [vmem:[#allocation125_spill] sm:$0xff] }
 0x699   :  { %3432 = vmatpush1.msra.mxu0 %v6277_v48  ;;  %3503 = vmatpush1.msra.mxu1 %v6280_v52  ;;  %v8081_v38 = vld [vmem:[#allocation81_spill] sm:$0xff]  ;;  %v8082_v48 = vld [vmem:[#allocation82_spill] sm:$0xff]  ;;  %v8083_v52 = vld [vmem:[#allocation83_spill] sm:$0xff] }
 0x69a   :  { %3433 = vmatprep.subr.mxu0 %v6283_v45  ;;  %3504 = vmatprep.subr.mxu1 %v6286_v54  ;;  %v8084_v45 = vld [vmem:[#allocation84_spill] sm:$0xff]  ;;  %v8085_v54 = vld [vmem:[#allocation85_spill] sm:$0xff] }
 0x69b   :  { %3434 = vmatpush1.msra.mxu0 %v6289_v12  ;;  %3505 = vmatpush1.msra.mxu1 %v6292_v32  ;;  %v8086_v12 = vld [vmem:[#allocation86_spill] sm:$0xff]  ;;  %v8087_v32 = vld [vmem:[#allocation127_spill] sm:$0xff] }
 0x69c   :  { %3435 = vmatprep.subr.mxu0 %v6295_v7  ;;  %3506 = vmatprep.subr.mxu1 %v6298_v19  ;;  %v8088_v7 = vld [vmem:[#allocation129_spill] sm:$0xff]  ;;  %v8089_v19 = vld [vmem:[#allocation155_spill] sm:$0xff] }
 0x69d   :  { %3436 = vmatpush1.msra.mxu0 %v6301_v23  ;;  %3507 = vmatpush1.msra.mxu1 %v6304_v28  ;;  %v8090_v23 = vld [vmem:[#allocation158_spill] sm:$0xff]  ;;  %v8091_v28 = vld [vmem:[#allocation160_spill] sm:$0xff] }
 0x69e   :  { %3437 = vmatprep.subr.mxu0 %v6307_v5  ;;  %3508 = vmatprep.subr.mxu1 %v6310_v18  ;;  %v8092_v5 = vld [vmem:[#allocation162_spill] sm:$0xff]  ;;  %v8093_v18 = vld [vmem:[#allocation163_spill] sm:$0xff] }
 0x69f   :  { %3438 = vmatpush1.msra.mxu0 %v6313_v1  ;;  %3509 = vmatpush1.msra.mxu1 %v6316_v9  ;;  %v8094_v1 = vld [vmem:[#allocation36_spill] sm:$0xff]  ;;  %v8095_v9 = vld [vmem:[#allocation37_spill] sm:$0xff] }
 0x6a0   :  { %3439 = vmatprep.subr.mxu0 %v8072_v26  ;;  %3510 = vmatprep.subr.mxu1 %v8073_v21  ;;  %v8099_v26 = vld [vmem:[#allocation41_spill] sm:$0xff]  ;;  %v8100_v21 = vld [vmem:[#allocation42_spill] sm:$0xff] }
 0x6a1   :  { %3440 = vmatpush1.msra.mxu0 %v8074_v16  ;;  %3511 = vmatpush1.msra.mxu1 %v8075_v55  ;;  %v8101_v16 = vld [vmem:[#allocation43_spill] sm:$0xff]  ;;  %v8102_v55 = vld [vmem:[#allocation44_spill] sm:$0xff] }
 0x6a2   :  { %3441 = vmatprep.subr.mxu0 %v8076_v25  ;;  %3512 = vmatprep.subr.mxu1 %v8077_v29  ;;  %v8103_v25 = vld [vmem:[#allocation45_spill] sm:$0xff]  ;;  %v8104_v29 = vld [vmem:[#allocation46_spill] sm:$0xff] }
 0x6a3   :  { %3442 = vmatpush1.msra.mxu0 %v8078_v63  ;;  %3513 = vmatpush1.msra.mxu1 %v8079_v34  ;;  %v8105_v63 = vld [vmem:[#allocation47_spill] sm:$0xff]  ;;  %v8106_v34 = vld [vmem:[#allocation48_spill] sm:$0xff] }
 0x6a4   :  { %3443 = vmatprep.subr.mxu0 %v8080_v35  ;;  %3514 = vmatprep.subr.mxu1 %v8081_v38  ;;  %v8107_v35 = vld [vmem:[#allocation49_spill] sm:$0xff]  ;;  %v8108_v38 = vld [vmem:[#allocation50_spill] sm:$0xff] }
 0x6a5   :  { %3444 = vmatpush1.msra.mxu0 %v8082_v48  ;;  %3515 = vmatpush1.msra.mxu1 %v8083_v52  ;;  %v8109_v48 = vld [vmem:[#allocation51_spill] sm:$0xff]  ;;  %v8110_v52 = vld [vmem:[#allocation52_spill] sm:$0xff] }
 0x6a6   :  { %3445 = vmatprep.subr.mxu0 %v8084_v45  ;;  %3516 = vmatprep.subr.mxu1 %v8085_v54  ;;  %v8111_v45 = vld [vmem:[#allocation53_spill] sm:$0xff]  ;;  %v8112_v54 = vld [vmem:[#allocation54_spill] sm:$0xff] }
 0x6a7   :  { %3446 = vmatpush1.msra.mxu0 %v8086_v12  ;;  %3517 = vmatpush1.msra.mxu1 %v8087_v32  ;;  %v8113_v12 = vld [vmem:[#allocation55_spill] sm:$0xff] }
 0x6a8   :  { %3447 = vmatprep.subr.mxu0 %v8088_v7  ;;  %3518 = vmatprep.subr.mxu1 %v8089_v19  ;;  %v8114_v7 = vld [vmem:[#allocation93_spill] sm:$0xff] }
 0x6a9   :  { %3448 = vmatpush1.msra.mxu0 %v8090_v23  ;;  %3519 = vmatpush1.msra.mxu1 %v8091_v28 }
 0x6aa   :  { %3449 = vmatprep.subr.mxu0 %v8092_v5  ;;  %3520 = vmatprep.subr.mxu1 %v8093_v18  ;;  %v8115_v5 = vld [vmem:[#allocation95_spill] sm:$0xff] }
 0x6ab   :  { %3450 = vmatpush1.msra.mxu0 %v8094_v1  ;;  %3521 = vmatpush1.msra.mxu1 %v8095_v9 }
 0x6ac   :  { %3451 = vmatprep.subr.mxu0 %v8096_v40  ;;  %3522 = vmatprep.subr.mxu1 %v8097_v27  ;;  %v8116_v27 = vld [vmem:[#allocation96_spill] sm:$0xff] }
 0x6ad   :  { %3452 = vmatpush1.msra.mxu0 %v8098_v41  ;;  %3523 = vmatpush1.msra.mxu1 %v8099_v26  ;;  %v8117_v26 = vld [vmem:[#allocation94_spill] sm:$0xff] }
 0x6ae   :  { %3453 = vmatprep.subr.mxu0 %v8100_v21  ;;  %3524 = vmatprep.subr.mxu1 %v8101_v16 }
 0x6af   :  { %3454 = vmatpush1.msra.mxu0 %v8102_v55  ;;  %3525 = vmatpush1.msra.mxu1 %v8103_v25 }
 0x6b0   :  { %3455 = vmatprep.subr.mxu0 %v8104_v29  ;;  %3526 = vmatprep.subr.mxu1 %v8105_v63 }
 0x6b1   :  { %3456 = vmatpush1.msra.mxu0 %v8106_v34  ;;  %3527 = vmatpush1.msra.mxu1 %v8107_v35 }
 0x6b2   :  { %3457 = vmatprep.subr.mxu0 %v8108_v38  ;;  %3528 = vmatprep.subr.mxu1 %v8109_v48 }
 0x6b3   :  { %3458 = vmatpush1.msra.mxu0 %v8110_v52  ;;  %3529 = vmatpush1.msra.mxu1 %v8111_v45  ;;  %v8118_v52 = vld [vmem:[#allocation105_spill] sm:$0xff] }
 0x6b4   :  { %3491 = vmatprep.mubr.f32.mxu0 %v7508_v31  ;;  %3562 = vmatprep.mubr.f32.mxu1 %v7508_v31 }
 0x6b5   :  { %3579 = vmatprep.subr.mxu0 %v8112_v54  ;;  %3650 = vmatprep.subr.mxu1 %v8113_v12 }
 0x732   :  { %v3137_v32 = vpop.f32.mrf.mxu0  ;;  %v3208_v1 = vpop.f32.mrf.mxu1 }
 0x733   :  { %v3213_v19 = vadd.f32 %v3137_v32, %v8114_v7  ;;  %v3215_v21 = vadd.f32 %v3208_v1, %v8117_v26  ;;  %v8121_v26 = vld [vmem:[#allocation106_spill] sm:$0xff] }
 0x734   :  { %v3139_v23 = vpop.f32.mrf.mxu0  ;;  %v3210_v40 = vpop.f32.mrf.mxu1 }
 0x735   :  { %v3936_v28 = vmul.f32 -1.442695, %v3213_v19  ;;  %v3214_v18 = vadd.f32 %v3139_v23, %v8115_v5  ;;  %v3216_v41 = vadd.f32 %v3210_v40, %v8116_v27  ;;  %v8119_v19 = vld [vmem:[#allocation107_spill] sm:$0xff]  ;;  %v8120_v27 = vld [vmem:[#allocation108_spill] sm:$0xff] }
 0x737   :  { %4209 = vpow2.f32 %v3936_v28  ;;  %v3937_v9 = vmul.f32 -1.442695, %v3214_v18  ;;  %v3938_v16 = vmul.f32 -1.442695, %v3216_v41 }
 0x739   :  { %4211 = vpow2.f32 %v3937_v9 }
 0x73a   :  { %4213 = vtanh.f32 %v3215_v21 }
 0x73b   :  { %4215 = vpow2.f32 %v3938_v16 }
 0x744   :  { %v4210_v55 = vpop.eup %4209 }
 0x745   :  { %v3372_v25 = vadd.f32 1.0, %v4210_v55 }
 0x746   :  { %v4212_v29 = vpop.eup %4211 }
 0x747   :  { %4217 = vrcp.f32 %v3372_v25  ;;  %v3378_v63 = vadd.f32 1.0, %v4212_v29  ;;  %v4214_v34 = vpop.eup %4213 }
 0x748   :  { %v4216_v35 = vpop.eup %4215 }
 0x749   :  { %4219 = vrcp.f32 %v3378_v63  ;;  %v3385_v5 = vadd.f32 1.0, %v4216_v35 }
 0x753   :  { %v3289_v38 = vpop.f32.mrf.mxu0  ;;  %v3360_v18 = vpop.f32.mrf.mxu1 }
 0x754   :  { %v4218_v48 = vpop.eup %4217  ;;  %v3365_v45 = vadd.f32 %v3289_v38, %v8118_v52  ;;  %v3367_v21 = vadd.f32 %v3360_v18, %v8121_v26  ;;  %v8146_v18 = vld [vmem:[#allocation120_spill] sm:$0xff]  ;;  %v8151_v26 = vld [vmem:[#allocation130_spill] sm:$0xff] }
 0x755   :  { %v3389_v54 = vmul.f32 %v4218_v48, %v4214_v34  ;;  %v3291_v12 = vpop.f32.mrf.mxu0  ;;  %v3362_v40 = vpop.f32.mrf.mxu1  ;;  %v8122_v48 = vmax.f32 %v6465_v30, %v6747_v50 }
 0x756   :  { %v4220_v32 = vpop.eup %4219  ;;  %v3939_v7 = vmul.f32 -1.442695, %v3365_v45  ;;  %v3366_v23 = vadd.f32 %v3291_v12, %v8119_v19  ;;  %v3368_v41 = vadd.f32 %v3362_v40, %v8120_v27  ;;  %v8134_v45 = vld [vmem:[#allocation75_spill] sm:$0xff]  ;;  %v8139_v12 = vld [vmem:[#allocation80_spill] sm:$0xff]  ;;  %v8149_v27 = vld [vmem:[#allocation126_spill] sm:$0xff] }
 0x757   :  { %v3388_v28 = vmul.f32 %v4220_v32, %v6742_v43  ;;  %v8140_v32 = vld [vmem:[#allocation29_spill] sm:$0xff]  ;;  %v8142_v19 = vld [vmem:[#allocation32_spill] sm:$0xff]  ;;  %v8148_v40 = vld [vmem:[#allocation87_spill] sm:$0xff] }
 0x758   :  { %4221 = vpow2.f32 %v3939_v7  ;;  %v3940_v1 = vmul.f32 -1.442695, %v3366_v23  ;;  %v3941_v16 = vmul.f32 -1.442695, %v3368_v41  ;;  %v8141_v7 = vld [vmem:[#allocation31_spill] sm:$0xff]  ;;  %v8143_v23 = vld [vmem:[#allocation30_spill] sm:$0xff] }
 0x759   :  { %v6910_v9 = vadd.f32 %v3389_v54, %v3388_v28  ;;  %v8138_v54 = vld [vmem:[#allocation79_spill] sm:$0xff]  ;;  %v8144_v28 = vld [vmem:[#allocation117_spill] sm:$0xff]  ;;  %v8150_v41 = vld [vmem:[#allocation128_spill] sm:$0xff] }
 0x75a   :  { %4223 = vpow2.f32 %v3940_v1  ;;  %v8147_v1 = vld [vmem:[#allocation118_spill] sm:$0xff] }
 0x75b   :  { %4225 = vrcp.f32 %v3385_v5  ;;  %v8145_v5 = vld [vmem:[#allocation119_spill] sm:$0xff] }
 0x75c   :  { %4227 = vtanh.f32 %v6910_v9 }
 0x75d   :  { %4229 = vtanh.f32 %v3367_v21  ;;  %v8152_v21 = vld [vmem:[#allocation131_spill] sm:$0xff] }
 0x75e   :  { %4231 = vpow2.f32 %v3941_v16  ;;  %v8153_v16 = vld [vmem:[#allocation132_spill] sm:$0xff] }
 0x765   :  { %v4222_v55 = vpop.eup %4221 }
 0x766   :  { %v3396_v25 = vadd.f32 1.0, %v4222_v55  ;;  %v8154_v55 = vld [vmem:[#allocation133_spill] sm:$0xff] }
 0x767   :  { %v4224_v43 = vpop.eup %4223 }
 0x768   :  { %v4226_v29 = vpop.eup %4225  ;;  %4233 = vrcp.f32 %v3396_v25  ;;  %v3402_v63 = vadd.f32 1.0, %v4224_v43  ;;  %v8155_v25 = vld [vmem:[#allocation134_spill] sm:$0xff] }
 0x769   :  { %v4228_v34 = vpop.eup %4227 }
 0x76a   :  { %4235 = vrcp.f32 %v3402_v63  ;;  %v3392_v35 = vmul.f32 %v4228_v34, %v4226_v29  ;;  %v4230_v30 = vpop.eup %4229  ;;  %v8156_v29 = vld [vmem:[#allocation139_spill] sm:$0xff]  ;;  %v8157_v34 = vld [vmem:[#allocation141_spill] sm:$0xff] }
 0x76c   :  { %3492 = vmatmul.mubr.f32.vlgmr.msra.gmra.mxu0 %v3392_v35  ;;  %3563 = vmatmul.mubr.f32.vlgmr.msra.gmra.mxu1 %v3392_v35  ;;  %v6916_v38 = vadd.f32 %v3392_v35, %v6753_v15  ;;  %v6921_v52 = vmax.f32 %v8122_v48, %v3392_v35  ;;  %v8128_v15 = vld [vmem:[#allocation68_spill] sm:$0xff] }
 0x76d   :  { %3580 = vmatpush1.msra.mxu0 %v6467_v14  ;;  %3651 = vmatpush1.msra.mxu1 %v6470_v37  ;;  %v4232_v14 = vpop.eup %4231  ;;  %v8123_v37 = vld [vmem:[#allocation61_spill] sm:$0xff] }
 0x76e   :  { %3581 = vmatprep.subr.mxu0 %v6473_v4  ;;  %3652 = vmatprep.subr.mxu1 %v6476_v0  ;;  %v8124_v4 = vld [vmem:[#allocation62_spill] sm:$0xff]  ;;  %v3409_v50 = vadd.f32 1.0, %v4232_v14 }
 0x76f   :  { %3582 = vmatpush1.msra.mxu0 %v6479_v39  ;;  %3653 = vmatpush1.msra.mxu1 %v6482_v62  ;;  %v8125_v39 = vld [vmem:[#allocation63_spill] sm:$0xff]  ;;  %v8126_v62 = vld [vmem:[#allocation64_spill] sm:$0xff] }
 0x770   :  { %3583 = vmatprep.subr.mxu0 %v6485_v33  ;;  %3654 = vmatprep.subr.mxu1 %v6488_v3  ;;  %v8127_v3 = vld [vmem:[#allocation66_spill] sm:$0xff]  ;;  %4237 = vrcp.f32 %v3409_v50  ;;  %v8162_v50 = vld [vmem:[#allocation101_spill] sm:$0xff] }
 0x771   :  { %3584 = vmatpush1.msra.mxu0 %v6491_v24  ;;  %3655 = vmatpush1.msra.mxu1 %v8024_v22 }
 0x772   :  { %3585 = vmatprep.subr.mxu0 %v8025_v60  ;;  %3656 = vmatprep.subr.mxu1 %v8026_v51  ;;  %v8129_v60 = vld [vmem:[#allocation70_spill] sm:$0xff]  ;;  %v8130_v51 = vld [vmem:[#allocation71_spill] sm:$0xff] }
 0x773   :  { %3586 = vmatpush1.msra.mxu0 %v8027_v17  ;;  %3657 = vmatpush1.msra.mxu1 %v8028_v2  ;;  %v8131_v2 = vld [vmem:[#allocation72_spill] sm:$0xff] }
 0x774   :  { %3587 = vmatprep.subr.mxu0 %v8123_v37  ;;  %3658 = vmatprep.subr.mxu1 %v8124_v4  ;;  %v8161_v37 = vld [vmem:[#allocation98_spill] sm:$0xff] }
 0x775   :  { %v4234_v0 = vpop.eup %4233  ;;  %3588 = vmatpush1.msra.mxu0 %v8125_v39  ;;  %3659 = vmatpush1.msra.mxu1 %v8126_v62 }
 0x776   :  { %v3413_v33 = vmul.f32 %v4234_v0, %v4230_v30  ;;  %3589 = vmatprep.subr.mxu0 %v8032_v57  ;;  %3660 = vmatprep.subr.mxu1 %v8127_v3  ;;  %v8132_v57 = vld [vmem:[#allocation73_spill] sm:$0xff]  ;;  %v8160_v30 = vld [vmem:[#allocation100_spill] sm:$0xff] }
 0x777   :  { %v4236_v24 = vpop.eup %4235  ;;  %3590 = vmatpush1.msra.mxu0 %v8034_v59  ;;  %3661 = vmatpush1.msra.mxu1 %v8128_v15  ;;  %v8133_v59 = vld [vmem:[#allocation74_spill] sm:$0xff] }
 0x778   :  { %v3412_v22 = vmul.f32 %v4236_v24, %v6784_v53  ;;  %3591 = vmatprep.subr.mxu0 %v6534_v61  ;;  %3662 = vmatprep.subr.mxu1 %v8036_v46  ;;  %v8135_v53 = vld [vmem:[#allocation76_spill] sm:$0xff]  ;;  %v8136_v61 = vld [vmem:[#allocation77_spill] sm:$0xff]  ;;  %v8137_v46 = vld [vmem:[#allocation78_spill] sm:$0xff] }
 0x779   :  { %3592 = vmatpush1.msra.mxu0 %v8129_v60  ;;  %3663 = vmatpush1.msra.mxu1 %v8130_v51 }
 0x77a   :  { %v6950_v17 = vadd.f32 %v3413_v33, %v3412_v22  ;;  %3593 = vmatprep.subr.mxu0 %v8131_v2  ;;  %3664 = vmatprep.subr.mxu1 %v8132_v57  ;;  %v8163_v57 = vld [vmem:[#allocation103_spill] sm:$0xff] }
 0x77b   :  { %3594 = vmatpush1.msra.mxu0 %v8133_v59  ;;  %3665 = vmatpush1.msra.mxu1 %v8134_v45 }
 0x77c   :  { %3595 = vmatprep.subr.mxu0 %v8135_v53  ;;  %3666 = vmatprep.subr.mxu1 %v8136_v61  ;;  %4239 = vtanh.f32 %v6950_v17 }
 0x77d   :  { %3596 = vmatpush1.msra.mxu0 %v8137_v46  ;;  %3667 = vmatpush1.msra.mxu1 %v8138_v54  ;;  %v4238_v43 = vpop.eup %4237 }
 0x77e   :  { %3597 = vmatprep.subr.mxu0 %v8139_v12  ;;  %3668 = vmatprep.subr.mxu1 %v8140_v32  ;;  %v8164_v32 = vld [vmem:[#allocation104_spill] sm:$0xff] }
 0x77f   :  { %3598 = vmatpush1.msra.mxu0 %v8141_v7  ;;  %3669 = vmatpush1.msra.mxu1 %v8142_v19  ;;  %v8165_v19 = vld [vmem:[#allocation102_spill] sm:$0xff] }
 0x780   :  { %3599 = vmatprep.subr.mxu0 %v8143_v23  ;;  %3670 = vmatprep.subr.mxu1 %v8144_v28 }
 0x781   :  { %3600 = vmatpush1.msra.mxu0 %v8145_v5  ;;  %3671 = vmatpush1.msra.mxu1 %v8146_v18 }
 0x782   :  { %3601 = vmatprep.subr.mxu0 %v8147_v1  ;;  %3672 = vmatprep.subr.mxu1 %v8148_v40 }
 0x783   :  { %3602 = vmatpush1.msra.mxu0 %v8149_v27  ;;  %3673 = vmatpush1.msra.mxu1 %v8150_v41  ;;  %v3788_v41 = vld [vmem:[%s7034_s5] sm:$0x3] }
 0x784   :  { %3603 = vmatprep.subr.mxu0 %v8151_v26  ;;  %3674 = vmatprep.subr.mxu1 %v8152_v21 }
 0x785   :  { %3604 = vmatpush1.msra.mxu0 %v8153_v16  ;;  %3675 = vmatpush1.msra.mxu1 %v8154_v55  ;;  %v8166_v55 = vld [vmem:[#allocation23_spill] sm:$0xff] }
 0x786   :  { %3605 = vmatprep.subr.mxu0 %v8155_v25  ;;  %3676 = vmatprep.subr.mxu1 %v8064_v49  ;;  %v8158_v49 = vld [vmem:[#allocation97_spill] sm:$0xff]  ;;  %v3794_v25 = vrot.slane %v3788_v41, %v8166_v55 }
 0x787   :  { %3606 = vmatpush1.msra.mxu0 %v8065_v6  ;;  %3677 = vmatpush1.msra.mxu1 %v8066_v20 }
 0x788   :  { %3607 = vmatprep.subr.mxu0 %v8067_v58  ;;  %3678 = vmatprep.subr.mxu1 %v8156_v29 }
 0x789   :  { %v4240_v63 = vpop.eup %4239  ;;  %3608 = vmatpush1.msra.mxu0 %v8068_v44  ;;  %3679 = vmatpush1.msra.mxu1 %v8157_v34 }
 0x78a   :  { %3609 = vmatprep.subr.mxu0 %v8070_v10  ;;  %3680 = vmatprep.subr.mxu1 %v8071_v42  ;;  %v3416_v35 = vmul.f32 %v4240_v63, %v4238_v43  ;;  %v8159_v10 = vld [vmem:[#allocation99_spill] sm:$0xff]  ;;  %v8167_v43 = vld [vmem:[#allocation24_spill] sm:$0xff] }
 0x78b   :  { %3610 = vmatpush1.msra.mxu0 %v6651_v8  ;;  %3643 = vmatprep.mubr.f32.mxu0 %v7508_v31  ;;  %v3799_v29 = vrot.slane %v3788_v41, %v8167_v43 }
 0x78c   :  { %3681 = vmatpush1.msra.mxu1 %v6655_v36  ;;  %3714 = vmatprep.mubr.f32.mxu1 %v7508_v31  ;;  %v6992_v58 = vadd.f32 %v3416_v35, %v6829_v13  ;;  %v6997_v20 = vmax.f32 %v3064_v56, %v3416_v35 }
 0x78d   :  { %3644 = vmatmul.mubr.f32.vlgmr.msra.gmra.mxu0 %v3416_v35  ;;  %3715 = vmatmul.mubr.f32.vlgmr.msra.gmra.mxu1 %v3416_v35 }
 0x82c   :  { %v3493_v42 = vpop.f32.mrf.mxu0  ;;  %v3564_v36 = vpop.f32.mrf.mxu1 }
 0x82d   :  { %v3569_v6 = vadd.f32 %v3493_v42, %v8158_v49  ;;  %v3571_v47 = vadd.f32 %v3564_v36, %v8161_v37 }
 0x82e   :  { %v3495_v8 = vpop.f32.mrf.mxu0  ;;  %v3566_v13 = vpop.f32.mrf.mxu1 }
 0x82f   :  { %v3942_v44 = vmul.f32 -1.442695, %v3569_v6  ;;  %v3570_v48 = vadd.f32 %v3495_v8, %v8159_v10  ;;  %v3572_v14 = vadd.f32 %v3566_v13, %v8160_v30  ;;  %v3789_v13 = vld [vmem:[%s7034_s5 + $0x2] sm:$0x3] }
 0x831   :  { %4241 = vpow2.f32 %v3942_v44  ;;  %v3943_v31 = vmul.f32 -1.442695, %v3570_v48  ;;  %v3944_v11 = vmul.f32 -1.442695, %v3572_v14 }
 0x833   :  { %4243 = vpow2.f32 %v3943_v31 }
 0x834   :  { %4245 = vtanh.f32 %v3571_v47  ;;  %v3806_v47 = vrot.slane %v3789_v13, %v8166_v55 }
 0x835   :  { %4247 = vpow2.f32 %v3944_v11  ;;  %v3811_v11 = vrot.slane %v3789_v13, %v8167_v43 }
 0x83e   :  { %v4242_v56 = vpop.eup %4241 }
 0x83f   :  { %v3728_v4 = vadd.f32 1.0, %v4242_v56 }
 0x840   :  { %v4244_v0 = vpop.eup %4243 }
 0x841   :  { %4249 = vrcp.f32 %v3728_v4  ;;  %v3734_v39 = vadd.f32 1.0, %v4244_v0  ;;  %v4246_v62 = vpop.eup %4245 }
 0x842   :  { %v4248_v33 = vpop.eup %4247 }
 0x843   :  { %4251 = vrcp.f32 %v3734_v39  ;;  %v3741_v53 = vadd.f32 1.0, %v4248_v33 }
 0x84d   :  { %v3645_v3 = vpop.f32.mrf.mxu0  ;;  %v3716_v61 = vpop.f32.mrf.mxu1 }
 0x84e   :  { %v4250_v24 = vpop.eup %4249  ;;  %v3721_v15 = vadd.f32 %v3645_v3, %v8162_v50  ;;  %v3723_v23 = vadd.f32 %v3716_v61, %v8165_v19 }
 0x84f   :  { %v3745_v22 = vmul.f32 %v4250_v24, %v4246_v62  ;;  %v3647_v60 = vpop.f32.mrf.mxu0  ;;  %v3718_v12 = vpop.f32.mrf.mxu1 }
 0x850   :  { %v4252_v51 = vpop.eup %4251  ;;  %v3945_v2 = vmul.f32 -1.442695, %v3721_v15  ;;  %v3722_v59 = vadd.f32 %v3647_v60, %v8163_v57  ;;  %v3724_v7 = vadd.f32 %v3718_v12, %v8164_v32 }
 0x851   :  { %v3744_v45 = vmul.f32 %v4252_v51, %v6910_v9 }
 0x852   :  { %4253 = vpow2.f32 %v3945_v2  ;;  %v3946_v46 = vmul.f32 -1.442695, %v3722_v59  ;;  %v3947_v28 = vmul.f32 -1.442695, %v3724_v7 }
 0x853   :  { %v3746_v54 = vadd.f32 %v3745_v22, %v3744_v45 }
 0x854   :  { %4255 = vpow2.f32 %v3946_v46 }
 0x855   :  { %4257 = vrcp.f32 %v3741_v53 }
 0x856   :  { %4259 = vtanh.f32 %v3746_v54 }
 0x857   :  { %4261 = vtanh.f32 %v3723_v23 }
 0x858   :  { %4263 = vpow2.f32 %v3947_v28 }
 0x85f   :  { %v4254_v5 = vpop.eup %4253 }
 0x860   :  { %v3752_v18 = vadd.f32 1.0, %v4254_v5 }
 0x861   :  { %v4256_v1 = vpop.eup %4255 }
 0x862   :  { %v4258_v9 = vpop.eup %4257  ;;  %4265 = vrcp.f32 %v3752_v18  ;;  %v3758_v40 = vadd.f32 1.0, %v4256_v1 }
 0x863   :  { %v4260_v27 = vpop.eup %4259 }
 0x864   :  { %4267 = vrcp.f32 %v3758_v40  ;;  %v3748_v26 = vmul.f32 %v4260_v27, %v4258_v9  ;;  %v4262_v49 = vpop.eup %4261 }
 0x865   :  { %v4264_v6 = vpop.eup %4263 }
 0x866   :  { %v3773_v21 = vadd.f32 %v3748_v26, %v6916_v38  ;;  %v3774_v16 = vmax.f32 %v6921_v52, %v3748_v26  ;;  %v3765_v48 = vadd.f32 1.0, %v4264_v6 }
 0x868   :  { %v3790_v63 = vmul.f32 0.125, %v3773_v21  ;;  %v3800_v35 = vmul.f32 %v3799_v29, %v3774_v16  ;;  %4269 = vrcp.f32 %v3765_v48 }
 0x86a   :  { %v3795_v34 = vmul.f32 %v3794_v25, %v3790_v63 }
 0x86c   :  { %v3801_v42 = vadd.f32 %v3800_v35, %v3795_v34 }
 0x86e   :  { %3814 = vadd.xlane.f32.xlu0 %v3801_v42 }
 0x86f   :  { %v4266_v8 = vpop.eup %4265 }
 0x870   :  { %v3769_v44 = vmul.f32 %v4266_v8, %v4262_v49 }
 0x871   :  { %v4268_v10 = vpop.eup %4267 }
 0x872   :  { %v3768_v36 = vmul.f32 %v4268_v10, %v6950_v17 }
 0x874   :  { %v3770_v38 = vadd.f32 %v3769_v44, %v3768_v36 }
 0x875   :  { %v4270_v52 = vpop.eup %4269 }
 0x876   :  { %4271 = vtanh.f32 %v3770_v38 }
 0x883   :  { %v4272_v31 = vpop.eup %4271 }
 0x884   :  { %v3772_v30 = vmul.f32 %v4272_v31, %v4270_v52 }
 0x886   :  { %v3775_v14 = vadd.f32 %v3772_v30, %v6992_v58  ;;  %v3776_v37 = vmax.f32 %v6997_v20, %v3772_v30 }
 0x888   :  { %v3802_v56 = vmul.f32 0.125, %v3775_v14  ;;  %v3812_v4 = vmul.f32 %v3811_v11, %v3776_v37 }
 0x88a   :  { %v3807_v17 = vmul.f32 %v3806_v47, %v3802_v56 }
 0x88c   :  { %v3813_v0 = vadd.f32 %v3812_v4, %v3807_v17 }
 0x88e   :  { %3816 = vadd.xlane.f32.xlu0 %v3813_v0 }
 0x8f7   :  { %v3815_v39 = vpop.xlane.xlu0 %3814 }
 0x8f8   :  { %3819 = vst.msk [vmem:[%s7035_s6] sm:$0xff] %vm3818_vm1, %v3815_v39 }
 0x917   :  { %v3817_v62 = vpop.xlane.xlu0 %3816 }
 0x918   :  { %3820 = vst.msk [vmem:[%s7035_s6 + $0x8] sm:$0xff] %vm3818_vm1, %v3817_v62 }
 0x919   :  { %3825 = vsyncpa [#allocation13], 1 }
 0x91a   :  { %3826 = vsyncpa [#allocation15], 1 }
 0x91b   :  { %3827 = vsyncpa [#allocation18], 1 }

</bundles_post_ra>
